<compile_context>
chip_gen: v5e
topology: v5e:2x2
jax: 0.10.0
libtpu: 0.0.40
codegen_flags: <defaults>
</compile_context>

<pallas_src>
import math
import jax
import jax.numpy as jnp
from jax.experimental import pallas as pl
from jax.experimental.pallas import tpu as pltpu

# -------- small config consistent with the ViT module --------
IMG = 16
PATCH = 4
IN_CH = 3
EMBED = 32
DEPTH = 2
HEADS = 4
MLP_RATIO = 4.0
NUM_CLASSES = 10
BATCH = 2

GRID_SZ = IMG // PATCH
NUM_PATCHES = GRID_SZ * GRID_SZ          # 16
SEQ = NUM_PATCHES + 1                    # 17
TOTAL = BATCH * SEQ                      # 34 (batch folded into rows)
HEAD_DIM = EMBED // HEADS                # 8
MLP_HIDDEN = int(EMBED * MLP_RATIO)      # 128
PATCH_K = IN_CH * PATCH * PATCH          # 48
EPS = 1e-5                               # nn.LayerNorm default
SCALE = HEAD_DIM ** (-0.5)
LANES = 128


# ----------------------- packed-buffer layouts (static) -----------------------
def _make_layout(entries):
    """entries: list of (name, rows, cols). Returns {name: (row0, rows, cols)}, total_rows.
    Multi-row entries are 8-sublane aligned; single-row entries are packed densely."""
    layout, off = {}, 0
    for name, rows, cols in entries:
        if rows > 1 and off % 8 != 0:
            off += 8 - off % 8
        layout[name] = (off, rows, cols)
        off += rows
    if off % 8 != 0:
        off += 8 - off % 8
    return layout, off


_w_entries = [("patch_w", PATCH_K, EMBED)]
for _l in range(DEPTH):
    for _h in range(HEADS):
        _w_entries += [(f"wq_{_l}_{_h}", EMBED, HEAD_DIM),
                       (f"wk_{_l}_{_h}", EMBED, HEAD_DIM),
                       (f"wv_{_l}_{_h}", EMBED, HEAD_DIM)]
    for _h in range(HEADS):
        _w_entries.append((f"wp_{_l}_{_h}", HEAD_DIM, EMBED))
    _w_entries += [(f"fc1_{_l}", EMBED, MLP_HIDDEN),
                   (f"fc2_{_l}", MLP_HIDDEN, EMBED)]
_w_entries.append(("head_w", EMBED, NUM_CLASSES))
W_LAYOUT, W_ROWS = _make_layout(_w_entries)

_v_entries = [("patch_b", 1, EMBED),
              ("cls_pos", 1, EMBED),
              ("pos_patch", BATCH * NUM_PATCHES, EMBED),
              ("attn_mask", TOTAL, TOTAL)]
for _l in range(DEPTH):
    _v_entries += [(f"ln1w_{_l}", 1, EMBED), (f"ln1b_{_l}", 1, EMBED)]
    for _h in range(HEADS):
        _v_entries += [(f"bq_{_l}_{_h}", 1, HEAD_DIM),
                       (f"bk_{_l}_{_h}", 1, HEAD_DIM),
                       (f"bv_{_l}_{_h}", 1, HEAD_DIM)]
    _v_entries += [(f"projb_{_l}", 1, EMBED),
                   (f"ln2w_{_l}", 1, EMBED), (f"ln2b_{_l}", 1, EMBED),
                   (f"fc1b_{_l}", 1, MLP_HIDDEN), (f"fc2b_{_l}", 1, EMBED)]
_v_entries += [("norm_w", 1, EMBED), ("norm_b", 1, EMBED),
               ("head_b", 1, NUM_CLASSES)]
V_LAYOUT, V_ROWS = _make_layout(_v_entries)


# ----------------------- in-kernel helpers (f32 math) -----------------------
def _layer_norm(x, w, b):
    mu = jnp.mean(x, axis=-1, keepdims=True)
    xc = x - mu
    var = jnp.mean(xc * xc, axis=-1, keepdims=True)
    return xc * jax.lax.rsqrt(var + EPS) * w + b


def _gelu_exact(x):
    # nn.GELU() default = exact (erf) formulation
    return 0.5 * x * (1.0 + jax.lax.erf(x * (1.0 / math.sqrt(2.0))))


# ---------------------- single fused ViT forward kernel ----------------------
def _vit_fused_kernel(patches_ref, w_ref, v_ref, out_ref):
    bf16 = jnp.bfloat16
    f32 = jnp.float32

    def W(name):                          # static, aligned slice of the bf16 slab
        r0, r, c = W_LAYOUT[name]
        return w_ref[r0:r0 + r, 0:c]

    def V(name):                          # static slice of the f32 slab
        r0, r, c = V_LAYOUT[name]
        return v_ref[r0:r0 + r, 0:c]

    # ---- patch embedding: one MXU matmul for the whole batch ----
    tok = jnp.dot(patches_ref[...], W("patch_w"),
                  preferred_element_type=f32) + V("patch_b")        # (B*NP, E)
    tok = tok + V("pos_patch")                                      # pos[1:] pre-tiled

    # ---- token assembly: [cls ; patches_b] per batch, folded into rows ----
    cls_pos = V("cls_pos")                                          # cls_token + pos[0]
    pieces = []
    for b in range(BATCH):
        pieces += [cls_pos, tok[b * NUM_PATCHES:(b + 1) * NUM_PATCHES]]
    x = jnp.concatenate(pieces, axis=0)                             # (TOTAL, E) f32

    # Block-diagonal additive mask: keeps batch elements independent while all
    # matmuls / softmax run on the single folded (TOTAL, ...) tile.
    mask = V("attn_mask")                                           # (TOTAL, TOTAL)

    # ---- transformer blocks (dropout p=0.0 -> identity) ----
    for l in range(DEPTH):
        # attention sub-block:  x = x + Proj(MHSA(LN1(x)))
        hn = _layer_norm(x, V(f"ln1w_{l}"), V(f"ln1b_{l}"))
        hn_b = hn.astype(bf16)

        acc = None
        for h in range(HEADS):
            q = jnp.dot(hn_b, W(f"wq_{l}_{h}"),
                        preferred_element_type=f32) + V(f"bq_{l}_{h}")   # (TOTAL, D)
            k = jnp.dot(hn_b, W(f"wk_{l}_{h}"),
                        preferred_element_type=f32) + V(f"bk_{l}_{h}")
            v = jnp.dot(hn_b, W(f"wv_{l}_{h}"),
                        preferred_element_type=f32) + V(f"bv_{l}_{h}")

            s = jnp.einsum('qd,kd->qk', q.astype(bf16), k.astype(bf16),
                           preferred_element_type=f32) * SCALE + mask
            s = s - jnp.max(s, axis=-1, keepdims=True)
            e = jnp.exp(s)
            p = e * pl.reciprocal(jnp.sum(e, axis=-1, keepdims=True),
                                  approx=True)                           # softmax

            o = jnp.dot(p.astype(bf16), v.astype(bf16),
                        preferred_element_type=f32)                       # (TOTAL, D)
            # fold the head-sum into the projection: acc += o_h @ Wproj_h
            ph = jnp.dot(o.astype(bf16), W(f"wp_{l}_{h}"),
                         preferred_element_type=f32)                      # (TOTAL, E)
            acc = ph if acc is None else acc + ph

        x = x + acc + V(f"projb_{l}")

        # MLP sub-block:  x = x + FC2(GELU(FC1(LN2(x))))
        h2 = _layer_norm(x, V(f"ln2w_{l}"), V(f"ln2b_{l}"))
        h2 = jnp.dot(h2.astype(bf16), W(f"fc1_{l}"),
                     preferred_element_type=f32) + V(f"fc1b_{l}")
        h2 = _gelu_exact(h2)
        h2 = jnp.dot(h2.astype(bf16), W(f"fc2_{l}"),
                     preferred_element_type=f32) + V(f"fc2b_{l}")
        x = x + h2

    # ---- final LayerNorm + classification head on the cls rows ----
    cls_rows = jnp.concatenate(
        [x[b * SEQ: b * SEQ + 1, :] for b in range(BATCH)], axis=0)       # (B, E)
    hc = _layer_norm(cls_rows, V("norm_w"), V("norm_b"))
    out_ref[...] = (jnp.dot(hc.astype(bf16), W("head_w"),
                            preferred_element_type=f32) + V("head_b"))


# ------------------------------ packing (one-time) ------------------------------
def pack_params(params):
    """Pack all parameters into two slabs: a bf16 matmul-weight buffer and an f32
    vector buffer. Done ONCE outside the jitted forward (pre-cast / pre-reshape)."""
    bf16 = jnp.bfloat16
    wbuf = jnp.zeros((W_ROWS, LANES), bf16)
    vbuf = jnp.zeros((V_ROWS, LANES), jnp.float32)

    def put_w(buf, name, mat):
        r0, r, c = W_LAYOUT[name]
        return buf.at[r0:r0 + r, 0:c].set(jnp.asarray(mat, bf16).reshape(r, c))

    def put_v(buf, name, mat):
        r0, r, c = V_LAYOUT[name]
        return buf.at[r0:r0 + r, 0:c].set(
            jnp.asarray(mat, jnp.float32).reshape(r, c))

    pos = params["pos_embed"]
    wbuf = put_w(wbuf, "patch_w", params["patch_w"])
    wbuf = put_w(wbuf, "head_w", params["head_w"])
    vbuf = put_v(vbuf, "patch_b", params["patch_b"])
    vbuf = put_v(vbuf, "cls_pos", params["cls_token"] + pos[0:1])
    vbuf = put_v(vbuf, "pos_patch", jnp.tile(pos[1:], (BATCH, 1)))
    ids = jnp.arange(TOTAL) // SEQ
    vbuf = put_v(vbuf, "attn_mask",
                 jnp.where(ids[:, None] == ids[None, :], 0.0, -1e30))
    vbuf = put_v(vbuf, "norm_w", params["norm_w"])
    vbuf = put_v(vbuf, "norm_b", params["norm_b"])
    vbuf = put_v(vbuf, "head_b", params["head_b"])

    for l, blk in enumerate(params["blocks"]):
        (ln1w, ln1b, qkvw, qkvb, projw, projb,
         ln2w, ln2b, fc1w, fc1b, fc2w, fc2b) = blk
        vbuf = put_v(vbuf, f"ln1w_{l}", ln1w)
        vbuf = put_v(vbuf, f"ln1b_{l}", ln1b)
        vbuf = put_v(vbuf, f"projb_{l}", projb)
        vbuf = put_v(vbuf, f"ln2w_{l}", ln2w)
        vbuf = put_v(vbuf, f"ln2b_{l}", ln2b)
        vbuf = put_v(vbuf, f"fc1b_{l}", fc1b)
        vbuf = put_v(vbuf, f"fc2b_{l}", fc2b)
        wbuf = put_w(wbuf, f"fc1_{l}", fc1w)
        wbuf = put_w(wbuf, f"fc2_{l}", fc2w)
        for h in range(HEADS):
            c0 = h * HEAD_DIM
            wbuf = put_w(wbuf, f"wq_{l}_{h}", qkvw[:, c0:c0 + HEAD_DIM])
            wbuf = put_w(wbuf, f"wk_{l}_{h}",
                         qkvw[:, EMBED + c0:EMBED + c0 + HEAD_DIM])
            wbuf = put_w(wbuf, f"wv_{l}_{h}",
                         qkvw[:, 2 * EMBED + c0:2 * EMBED + c0 + HEAD_DIM])
            wbuf = put_w(wbuf, f"wp_{l}_{h}", projw[c0:c0 + HEAD_DIM, :])
            vbuf = put_v(vbuf, f"bq_{l}_{h}", qkvb[:, c0:c0 + HEAD_DIM])
            vbuf = put_v(vbuf, f"bk_{l}_{h}",
                         qkvb[:, EMBED + c0:EMBED + c0 + HEAD_DIM])
            vbuf = put_v(vbuf, f"bv_{l}_{h}",
                         qkvb[:, 2 * EMBED + c0:2 * EMBED + c0 + HEAD_DIM])
    return wbuf, vbuf


# ------------------------------ wrapper ------------------------------
def vit_forward(x_nchw, wbuf, vbuf):
    B = x_nchw.shape[0]
    assert B == BATCH, "kernel is specialized to BATCH"

    # patch extraction (pure layout glue): NCHW -> (B*NUM_PATCHES, C*p*p)
    patches = x_nchw.reshape(B, IN_CH, GRID_SZ, PATCH, GRID_SZ, PATCH)
    patches = patches.transpose(0, 2, 4, 1, 3, 5).reshape(B * NUM_PATCHES, PATCH_K)
    patches = patches.astype(jnp.bfloat16)

    vmem = pl.BlockSpec(memory_space=pltpu.MemorySpace.VMEM)
    # TODO(synk): on v7x, split the two batch elements across the 2 TensorCores
    # (grid=(2,) "parallel" or pl.core_map); kept grid-less for 1-TC v5e/v6e.
    return pl.pallas_call(
        _vit_fused_kernel,
        out_shape=jax.ShapeDtypeStruct((B, NUM_CLASSES), jnp.float32),
        in_specs=[vmem, vmem, vmem],
        out_specs=vmem,
    )(patches, wbuf, vbuf)


# ------------------------- parameter init -------------------------
def init_params(key):
    def nrm(k, shape, s=0.02):
        return jax.random.normal(k, shape, jnp.float32) * s

    keys = iter(jax.random.split(key, 64))
    params = {
        "patch_w": nrm(next(keys), (PATCH_K, EMBED)),
        "patch_b": nrm(next(keys), (1, EMBED)),
        "cls_token": nrm(next(keys), (1, EMBED)),
        "pos_embed": nrm(next(keys), (SEQ, EMBED)),
    }
    blocks = []
    for _ in range(DEPTH):
        blocks.append((
            jnp.ones((1, EMBED), jnp.float32),              # ln1 weight
            jnp.zeros((1, EMBED), jnp.float32),             # ln1 bias
            nrm(next(keys), (EMBED, 3 * EMBED)),            # qkv w
            nrm(next(keys), (1, 3 * EMBED)),                # qkv b
            nrm(next(keys), (EMBED, EMBED)),                # proj w
            nrm(next(keys), (1, EMBED)),                    # proj b
            jnp.ones((1, EMBED), jnp.float32),              # ln2 weight
            jnp.zeros((1, EMBED), jnp.float32),             # ln2 bias
            nrm(next(keys), (EMBED, MLP_HIDDEN)),           # fc1 w
            nrm(next(keys), (1, MLP_HIDDEN)),               # fc1 b
            nrm(next(keys), (MLP_HIDDEN, EMBED)),           # fc2 w
            nrm(next(keys), (1, EMBED)),                    # fc2 b
        ))
    params["blocks"] = blocks
    params["norm_w"] = jnp.ones((1, EMBED), jnp.float32)
    params["norm_b"] = jnp.zeros((1, EMBED), jnp.float32)
    params["head_w"] = nrm(next(keys), (EMBED, NUM_CLASSES))
    params["head_b"] = nrm(next(keys), (1, NUM_CLASSES))
    return params


if __name__ == "__main__":
    key = jax.random.PRNGKey(0)
    k_param, k_x = jax.random.split(key)
    params = init_params(k_param)
    wbuf, vbuf = pack_params(params)          # one-time packing / pre-cast
    x = jax.random.normal(k_x, (BATCH, IN_CH, IMG, IMG), jnp.float32)

    fwd = jax.jit(vit_forward)
    logits = fwd(x, wbuf, vbuf)
    jax.block_until_ready(logits)
    assert logits.shape == (BATCH, NUM_CLASSES)
    assert bool(jnp.all(jnp.isfinite(logits)))
    print("KERNEL_OK")
</pallas_src>

<mosaic_0001>
module attributes {stable_mosaic.version = 11 : i64} {
  func.func @_vit_fused_kernel(%arg0: memref<32x48xbf16, #tpu.memory_space<vmem>>, %arg1: memref<1232x128xbf16, #tpu.memory_space<vmem>>, %arg2: memref<120x128xf32, #tpu.memory_space<vmem>>, %arg3: memref<2x10xf32, #tpu.memory_space<vmem>>) attributes {dimension_semantics = [], scalar_prefetch = 0 : i64, scratch_operands = 0 : i64, tpu.core_type = #tpu.core_type<tc>} {
    %c0 = arith.constant 0 : index
    %c0_0 = arith.constant 0 : index
    %0 = vector.load %arg0[%c0, %c0_0] : memref<32x48xbf16, #tpu.memory_space<vmem>>, vector<32x48xbf16>
    %c0_1 = arith.constant 0 : index
    %c0_2 = arith.constant 0 : index
    %1 = vector.load %arg1[%c0_1, %c0_2] : memref<1232x128xbf16, #tpu.memory_space<vmem>>, vector<48x32xbf16>
    %cst = arith.constant dense<0.000000e+00> : vector<32x32xf32>
    %2 = tpu.matmul %0, %1, %cst {dimension_numbers = #tpu.dot_dimension_numbers<[1], [0], [0], [1], [0, 0, 1, 1], [], []>} : vector<32x48xbf16>, vector<48x32xbf16>, vector<32x32xf32> -> vector<32x32xf32>
    %c0_3 = arith.constant 0 : index
    %c0_4 = arith.constant 0 : index
    %3 = vector.load %arg2[%c0_3, %c0_4] : memref<120x128xf32, #tpu.memory_space<vmem>>, vector<1x32xf32>
    %4 = vector.broadcast %3 : vector<1x32xf32> to vector<32x32xf32>
    %5 = arith.addf %2, %4 : vector<32x32xf32>
    %c8 = arith.constant 8 : index
    %c0_5 = arith.constant 0 : index
    %6 = vector.load %arg2[%c8, %c0_5] : memref<120x128xf32, #tpu.memory_space<vmem>>, vector<32x32xf32>
    %7 = arith.addf %5, %6 : vector<32x32xf32>
    %c1 = arith.constant 1 : index
    %c0_6 = arith.constant 0 : index
    %8 = vector.load %arg2[%c1, %c0_6] : memref<120x128xf32, #tpu.memory_space<vmem>>, vector<1x32xf32>
    %9 = vector.extract_strided_slice %7 {offsets = [0, 0], sizes = [16, 32], strides = [1, 1]} : vector<32x32xf32> to vector<16x32xf32>
    %10 = vector.extract_strided_slice %7 {offsets = [16, 0], sizes = [16, 32], strides = [1, 1]} : vector<32x32xf32> to vector<16x32xf32>
    %11 = tpu.concatenate %8, %9, %8, %10 in 0 : vector<1x32xf32>, vector<16x32xf32>, vector<1x32xf32>, vector<16x32xf32> -> vector<34x32xf32>
    %c40 = arith.constant 40 : index
    %c0_7 = arith.constant 0 : index
    %12 = vector.load %arg2[%c40, %c0_7] : memref<120x128xf32, #tpu.memory_space<vmem>>, vector<34x34xf32>
    %c74 = arith.constant 74 : index
    %c0_8 = arith.constant 0 : index
    %13 = vector.load %arg2[%c74, %c0_8] : memref<120x128xf32, #tpu.memory_space<vmem>>, vector<1x32xf32>
    %c75 = arith.constant 75 : index
    %c0_9 = arith.constant 0 : index
    %14 = vector.load %arg2[%c75, %c0_9] : memref<120x128xf32, #tpu.memory_space<vmem>>, vector<1x32xf32>
    %cst_10 = arith.constant dense<0.000000e+00> : vector<34xf32>
    %15 = vector.multi_reduction <add>, %11, %cst_10 [1] : vector<34x32xf32> to vector<34xf32>
    %16 = vector.shape_cast %15 : vector<34xf32> to vector<34x1xf32>
    %cst_11 = arith.constant 3.200000e+01 : f32
    %17 = vector.broadcast %cst_11 : f32 to vector<34x1xf32>
    %18 = arith.divf %16, %17 : vector<34x1xf32>
    %19 = vector.broadcast %18 : vector<34x1xf32> to vector<34x32xf32>
    %20 = arith.subf %11, %19 : vector<34x32xf32>
    %21 = arith.mulf %20, %20 : vector<34x32xf32>
    %cst_12 = arith.constant dense<0.000000e+00> : vector<34xf32>
    %22 = vector.multi_reduction <add>, %21, %cst_12 [1] : vector<34x32xf32> to vector<34xf32>
    %23 = vector.shape_cast %22 : vector<34xf32> to vector<34x1xf32>
    %cst_13 = arith.constant 3.200000e+01 : f32
    %24 = vector.broadcast %cst_13 : f32 to vector<34x1xf32>
    %25 = arith.divf %23, %24 : vector<34x1xf32>
    %cst_14 = arith.constant 9.99999974E-6 : f32
    %26 = vector.broadcast %cst_14 : f32 to vector<34x1xf32>
    %27 = arith.addf %25, %26 : vector<34x1xf32>
    %28 = math.rsqrt %27 : vector<34x1xf32>
    %29 = vector.broadcast %28 : vector<34x1xf32> to vector<34x32xf32>
    %30 = arith.mulf %20, %29 : vector<34x32xf32>
    %31 = vector.broadcast %13 : vector<1x32xf32> to vector<34x32xf32>
    %32 = arith.mulf %30, %31 : vector<34x32xf32>
    %33 = vector.broadcast %14 : vector<1x32xf32> to vector<34x32xf32>
    %34 = arith.addf %32, %33 : vector<34x32xf32>
    %35 = arith.truncf %34 : vector<34x32xf32> to vector<34x32xbf16>
    %c48 = arith.constant 48 : index
    %c0_15 = arith.constant 0 : index
    %36 = vector.load %arg1[%c48, %c0_15] : memref<1232x128xbf16, #tpu.memory_space<vmem>>, vector<32x8xbf16>
    %cst_16 = arith.constant dense<0.000000e+00> : vector<34x8xf32>
    %37 = tpu.matmul %35, %36, %cst_16 {dimension_numbers = #tpu.dot_dimension_numbers<[1], [0], [0], [1], [0, 0, 1, 1], [], []>} : vector<34x32xbf16>, vector<32x8xbf16>, vector<34x8xf32> -> vector<34x8xf32>
    %c76 = arith.constant 76 : index
    %c0_17 = arith.constant 0 : index
    %38 = vector.load %arg2[%c76, %c0_17] : memref<120x128xf32, #tpu.memory_space<vmem>>, vector<1x8xf32>
    %39 = vector.broadcast %38 : vector<1x8xf32> to vector<34x8xf32>
    %40 = arith.addf %37, %39 : vector<34x8xf32>
    %c80 = arith.constant 80 : index
    %c0_18 = arith.constant 0 : index
    %41 = vector.load %arg1[%c80, %c0_18] : memref<1232x128xbf16, #tpu.memory_space<vmem>>, vector<32x8xbf16>
    %cst_19 = arith.constant dense<0.000000e+00> : vector<34x8xf32>
    %42 = tpu.matmul %35, %41, %cst_19 {dimension_numbers = #tpu.dot_dimension_numbers<[1], [0], [0], [1], [0, 0, 1, 1], [], []>} : vector<34x32xbf16>, vector<32x8xbf16>, vector<34x8xf32> -> vector<34x8xf32>
    %c77 = arith.constant 77 : index
    %c0_20 = arith.constant 0 : index
    %43 = vector.load %arg2[%c77, %c0_20] : memref<120x128xf32, #tpu.memory_space<vmem>>, vector<1x8xf32>
    %44 = vector.broadcast %43 : vector<1x8xf32> to vector<34x8xf32>
    %45 = arith.addf %42, %44 : vector<34x8xf32>
    %c112 = arith.constant 112 : index
    %c0_21 = arith.constant 0 : index
    %46 = vector.load %arg1[%c112, %c0_21] : memref<1232x128xbf16, #tpu.memory_space<vmem>>, vector<32x8xbf16>
    %cst_22 = arith.constant dense<0.000000e+00> : vector<34x8xf32>
    %47 = tpu.matmul %35, %46, %cst_22 {dimension_numbers = #tpu.dot_dimension_numbers<[1], [0], [0], [1], [0, 0, 1, 1], [], []>} : vector<34x32xbf16>, vector<32x8xbf16>, vector<34x8xf32> -> vector<34x8xf32>
    %c78 = arith.constant 78 : index
    %c0_23 = arith.constant 0 : index
    %48 = vector.load %arg2[%c78, %c0_23] : memref<120x128xf32, #tpu.memory_space<vmem>>, vector<1x8xf32>
    %49 = vector.broadcast %48 : vector<1x8xf32> to vector<34x8xf32>
    %50 = arith.addf %47, %49 : vector<34x8xf32>
    %51 = arith.truncf %40 : vector<34x8xf32> to vector<34x8xbf16>
    %52 = arith.truncf %45 : vector<34x8xf32> to vector<34x8xbf16>
    "tpu.trace_start"() <{level = 10 : i32, message = "qd,kd->qk"}> : () -> ()
    %cst_24 = arith.constant dense<0.000000e+00> : vector<34x34xf32>
    %53 = tpu.matmul %51, %52, %cst_24 {dimension_numbers = #tpu.dot_dimension_numbers<[1], [1], [0], [0], [0, 0, 1, 0], [], []>} : vector<34x8xbf16>, vector<34x8xbf16>, vector<34x34xf32> -> vector<34x34xf32>
    "tpu.trace_stop"() : () -> ()
    %cst_25 = arith.constant 0.353553385 : f32
    %54 = vector.broadcast %cst_25 : f32 to vector<34x34xf32>
    %55 = arith.mulf %53, %54 : vector<34x34xf32>
    %56 = arith.addf %55, %12 : vector<34x34xf32>
    %cst_26 = arith.constant dense<0xFF800000> : vector<34xf32>
    %57 = vector.multi_reduction <maximumf>, %56, %cst_26 [1] : vector<34x34xf32> to vector<34xf32>
    %58 = vector.shape_cast %57 : vector<34xf32> to vector<34x1xf32>
    %59 = vector.broadcast %58 : vector<34x1xf32> to vector<34x34xf32>
    %60 = arith.subf %56, %59 : vector<34x34xf32>
    %61 = math.exp %60 : vector<34x34xf32>
    %cst_27 = arith.constant dense<0.000000e+00> : vector<34xf32>
    %62 = vector.multi_reduction <add>, %61, %cst_27 [1] : vector<34x34xf32> to vector<34xf32>
    %63 = vector.shape_cast %62 : vector<34xf32> to vector<34x1xf32>
    %64 = tpu.reciprocal %63 {approx = true} : vector<34x1xf32> -> vector<34x1xf32>
    %65 = vector.broadcast %64 : vector<34x1xf32> to vector<34x34xf32>
    %66 = arith.mulf %61, %65 : vector<34x34xf32>
    %67 = arith.truncf %66 : vector<34x34xf32> to vector<34x34xbf16>
    %68 = arith.truncf %50 : vector<34x8xf32> to vector<34x8xbf16>
    %cst_28 = arith.constant dense<0.000000e+00> : vector<34x8xf32>
    %69 = tpu.matmul %67, %68, %cst_28 {dimension_numbers = #tpu.dot_dimension_numbers<[1], [0], [0], [1], [0, 0, 1, 1], [], []>} : vector<34x34xbf16>, vector<34x8xbf16>, vector<34x8xf32> -> vector<34x8xf32>
    %70 = arith.truncf %69 : vector<34x8xf32> to vector<34x8xbf16>
    %c432 = arith.constant 432 : index
    %c0_29 = arith.constant 0 : index
    %71 = vector.load %arg1[%c432, %c0_29] : memref<1232x128xbf16, #tpu.memory_space<vmem>>, vector<8x32xbf16>
    %cst_30 = arith.constant dense<0.000000e+00> : vector<34x32xf32>
    %72 = tpu.matmul %70, %71, %cst_30 {dimension_numbers = #tpu.dot_dimension_numbers<[1], [0], [0], [1], [0, 0, 1, 1], [], []>} : vector<34x8xbf16>, vector<8x32xbf16>, vector<34x32xf32> -> vector<34x32xf32>
    %c144 = arith.constant 144 : index
    %c0_31 = arith.constant 0 : index
    %73 = vector.load %arg1[%c144, %c0_31] : memref<1232x128xbf16, #tpu.memory_space<vmem>>, vector<32x8xbf16>
    %cst_32 = arith.constant dense<0.000000e+00> : vector<34x8xf32>
    %74 = tpu.matmul %35, %73, %cst_32 {dimension_numbers = #tpu.dot_dimension_numbers<[1], [0], [0], [1], [0, 0, 1, 1], [], []>} : vector<34x32xbf16>, vector<32x8xbf16>, vector<34x8xf32> -> vector<34x8xf32>
    %c79 = arith.constant 79 : index
    %c0_33 = arith.constant 0 : index
    %75 = vector.load %arg2[%c79, %c0_33] : memref<120x128xf32, #tpu.memory_space<vmem>>, vector<1x8xf32>
    %76 = vector.broadcast %75 : vector<1x8xf32> to vector<34x8xf32>
    %77 = arith.addf %74, %76 : vector<34x8xf32>
    %c176 = arith.constant 176 : index
    %c0_34 = arith.constant 0 : index
    %78 = vector.load %arg1[%c176, %c0_34] : memref<1232x128xbf16, #tpu.memory_space<vmem>>, vector<32x8xbf16>
    %cst_35 = arith.constant dense<0.000000e+00> : vector<34x8xf32>
    %79 = tpu.matmul %35, %78, %cst_35 {dimension_numbers = #tpu.dot_dimension_numbers<[1], [0], [0], [1], [0, 0, 1, 1], [], []>} : vector<34x32xbf16>, vector<32x8xbf16>, vector<34x8xf32> -> vector<34x8xf32>
    %c80_36 = arith.constant 80 : index
    %c0_37 = arith.constant 0 : index
    %80 = vector.load %arg2[%c80_36, %c0_37] : memref<120x128xf32, #tpu.memory_space<vmem>>, vector<1x8xf32>
    %81 = vector.broadcast %80 : vector<1x8xf32> to vector<34x8xf32>
    %82 = arith.addf %79, %81 : vector<34x8xf32>
    %c208 = arith.constant 208 : index
    %c0_38 = arith.constant 0 : index
    %83 = vector.load %arg1[%c208, %c0_38] : memref<1232x128xbf16, #tpu.memory_space<vmem>>, vector<32x8xbf16>
    %cst_39 = arith.constant dense<0.000000e+00> : vector<34x8xf32>
    %84 = tpu.matmul %35, %83, %cst_39 {dimension_numbers = #tpu.dot_dimension_numbers<[1], [0], [0], [1], [0, 0, 1, 1], [], []>} : vector<34x32xbf16>, vector<32x8xbf16>, vector<34x8xf32> -> vector<34x8xf32>
    %c81 = arith.constant 81 : index
    %c0_40 = arith.constant 0 : index
    %85 = vector.load %arg2[%c81, %c0_40] : memref<120x128xf32, #tpu.memory_space<vmem>>, vector<1x8xf32>
    %86 = vector.broadcast %85 : vector<1x8xf32> to vector<34x8xf32>
    %87 = arith.addf %84, %86 : vector<34x8xf32>
    %88 = arith.truncf %77 : vector<34x8xf32> to vector<34x8xbf16>
    %89 = arith.truncf %82 : vector<34x8xf32> to vector<34x8xbf16>
    "tpu.trace_start"() <{level = 10 : i32, message = "qd,kd->qk"}> : () -> ()
    %cst_41 = arith.constant dense<0.000000e+00> : vector<34x34xf32>
    %90 = tpu.matmul %88, %89, %cst_41 {dimension_numbers = #tpu.dot_dimension_numbers<[1], [1], [0], [0], [0, 0, 1, 0], [], []>} : vector<34x8xbf16>, vector<34x8xbf16>, vector<34x34xf32> -> vector<34x34xf32>
    "tpu.trace_stop"() : () -> ()
    %cst_42 = arith.constant 0.353553385 : f32
    %91 = vector.broadcast %cst_42 : f32 to vector<34x34xf32>
    %92 = arith.mulf %90, %91 : vector<34x34xf32>
    %93 = arith.addf %92, %12 : vector<34x34xf32>
    %cst_43 = arith.constant dense<0xFF800000> : vector<34xf32>
    %94 = vector.multi_reduction <maximumf>, %93, %cst_43 [1] : vector<34x34xf32> to vector<34xf32>
    %95 = vector.shape_cast %94 : vector<34xf32> to vector<34x1xf32>
    %96 = vector.broadcast %95 : vector<34x1xf32> to vector<34x34xf32>
    %97 = arith.subf %93, %96 : vector<34x34xf32>
    %98 = math.exp %97 : vector<34x34xf32>
    %cst_44 = arith.constant dense<0.000000e+00> : vector<34xf32>
    %99 = vector.multi_reduction <add>, %98, %cst_44 [1] : vector<34x34xf32> to vector<34xf32>
    %100 = vector.shape_cast %99 : vector<34xf32> to vector<34x1xf32>
    %101 = tpu.reciprocal %100 {approx = true} : vector<34x1xf32> -> vector<34x1xf32>
    %102 = vector.broadcast %101 : vector<34x1xf32> to vector<34x34xf32>
    %103 = arith.mulf %98, %102 : vector<34x34xf32>
    %104 = arith.truncf %103 : vector<34x34xf32> to vector<34x34xbf16>
    %105 = arith.truncf %87 : vector<34x8xf32> to vector<34x8xbf16>
    %cst_45 = arith.constant dense<0.000000e+00> : vector<34x8xf32>
    %106 = tpu.matmul %104, %105, %cst_45 {dimension_numbers = #tpu.dot_dimension_numbers<[1], [0], [0], [1], [0, 0, 1, 1], [], []>} : vector<34x34xbf16>, vector<34x8xbf16>, vector<34x8xf32> -> vector<34x8xf32>
    %107 = arith.truncf %106 : vector<34x8xf32> to vector<34x8xbf16>
    %c440 = arith.constant 440 : index
    %c0_46 = arith.constant 0 : index
    %108 = vector.load %arg1[%c440, %c0_46] : memref<1232x128xbf16, #tpu.memory_space<vmem>>, vector<8x32xbf16>
    %cst_47 = arith.constant dense<0.000000e+00> : vector<34x32xf32>
    %109 = tpu.matmul %107, %108, %cst_47 {dimension_numbers = #tpu.dot_dimension_numbers<[1], [0], [0], [1], [0, 0, 1, 1], [], []>} : vector<34x8xbf16>, vector<8x32xbf16>, vector<34x32xf32> -> vector<34x32xf32>
    %110 = arith.addf %72, %109 : vector<34x32xf32>
    %c240 = arith.constant 240 : index
    %c0_48 = arith.constant 0 : index
    %111 = vector.load %arg1[%c240, %c0_48] : memref<1232x128xbf16, #tpu.memory_space<vmem>>, vector<32x8xbf16>
    %cst_49 = arith.constant dense<0.000000e+00> : vector<34x8xf32>
    %112 = tpu.matmul %35, %111, %cst_49 {dimension_numbers = #tpu.dot_dimension_numbers<[1], [0], [0], [1], [0, 0, 1, 1], [], []>} : vector<34x32xbf16>, vector<32x8xbf16>, vector<34x8xf32> -> vector<34x8xf32>
    %c82 = arith.constant 82 : index
    %c0_50 = arith.constant 0 : index
    %113 = vector.load %arg2[%c82, %c0_50] : memref<120x128xf32, #tpu.memory_space<vmem>>, vector<1x8xf32>
    %114 = vector.broadcast %113 : vector<1x8xf32> to vector<34x8xf32>
    %115 = arith.addf %112, %114 : vector<34x8xf32>
    %c272 = arith.constant 272 : index
    %c0_51 = arith.constant 0 : index
    %116 = vector.load %arg1[%c272, %c0_51] : memref<1232x128xbf16, #tpu.memory_space<vmem>>, vector<32x8xbf16>
    %cst_52 = arith.constant dense<0.000000e+00> : vector<34x8xf32>
    %117 = tpu.matmul %35, %116, %cst_52 {dimension_numbers = #tpu.dot_dimension_numbers<[1], [0], [0], [1], [0, 0, 1, 1], [], []>} : vector<34x32xbf16>, vector<32x8xbf16>, vector<34x8xf32> -> vector<34x8xf32>
    %c83 = arith.constant 83 : index
    %c0_53 = arith.constant 0 : index
    %118 = vector.load %arg2[%c83, %c0_53] : memref<120x128xf32, #tpu.memory_space<vmem>>, vector<1x8xf32>
    %119 = vector.broadcast %118 : vector<1x8xf32> to vector<34x8xf32>
    %120 = arith.addf %117, %119 : vector<34x8xf32>
    %c304 = arith.constant 304 : index
    %c0_54 = arith.constant 0 : index
    %121 = vector.load %arg1[%c304, %c0_54] : memref<1232x128xbf16, #tpu.memory_space<vmem>>, vector<32x8xbf16>
    %cst_55 = arith.constant dense<0.000000e+00> : vector<34x8xf32>
    %122 = tpu.matmul %35, %121, %cst_55 {dimension_numbers = #tpu.dot_dimension_numbers<[1], [0], [0], [1], [0, 0, 1, 1], [], []>} : vector<34x32xbf16>, vector<32x8xbf16>, vector<34x8xf32> -> vector<34x8xf32>
    %c84 = arith.constant 84 : index
    %c0_56 = arith.constant 0 : index
    %123 = vector.load %arg2[%c84, %c0_56] : memref<120x128xf32, #tpu.memory_space<vmem>>, vector<1x8xf32>
    %124 = vector.broadcast %123 : vector<1x8xf32> to vector<34x8xf32>
    %125 = arith.addf %122, %124 : vector<34x8xf32>
    %126 = arith.truncf %115 : vector<34x8xf32> to vector<34x8xbf16>
    %127 = arith.truncf %120 : vector<34x8xf32> to vector<34x8xbf16>
    "tpu.trace_start"() <{level = 10 : i32, message = "qd,kd->qk"}> : () -> ()
    %cst_57 = arith.constant dense<0.000000e+00> : vector<34x34xf32>
    %128 = tpu.matmul %126, %127, %cst_57 {dimension_numbers = #tpu.dot_dimension_numbers<[1], [1], [0], [0], [0, 0, 1, 0], [], []>} : vector<34x8xbf16>, vector<34x8xbf16>, vector<34x34xf32> -> vector<34x34xf32>
    "tpu.trace_stop"() : () -> ()
    %cst_58 = arith.constant 0.353553385 : f32
    %129 = vector.broadcast %cst_58 : f32 to vector<34x34xf32>
    %130 = arith.mulf %128, %129 : vector<34x34xf32>
    %131 = arith.addf %130, %12 : vector<34x34xf32>
    %cst_59 = arith.constant dense<0xFF800000> : vector<34xf32>
    %132 = vector.multi_reduction <maximumf>, %131, %cst_59 [1] : vector<34x34xf32> to vector<34xf32>
    %133 = vector.shape_cast %132 : vector<34xf32> to vector<34x1xf32>
    %134 = vector.broadcast %133 : vector<34x1xf32> to vector<34x34xf32>
    %135 = arith.subf %131, %134 : vector<34x34xf32>
    %136 = math.exp %135 : vector<34x34xf32>
    %cst_60 = arith.constant dense<0.000000e+00> : vector<34xf32>
    %137 = vector.multi_reduction <add>, %136, %cst_60 [1] : vector<34x34xf32> to vector<34xf32>
    %138 = vector.shape_cast %137 : vector<34xf32> to vector<34x1xf32>
    %139 = tpu.reciprocal %138 {approx = true} : vector<34x1xf32> -> vector<34x1xf32>
    %140 = vector.broadcast %139 : vector<34x1xf32> to vector<34x34xf32>
    %141 = arith.mulf %136, %140 : vector<34x34xf32>
    %142 = arith.truncf %141 : vector<34x34xf32> to vector<34x34xbf16>
    %143 = arith.truncf %125 : vector<34x8xf32> to vector<34x8xbf16>
    %cst_61 = arith.constant dense<0.000000e+00> : vector<34x8xf32>
    %144 = tpu.matmul %142, %143, %cst_61 {dimension_numbers = #tpu.dot_dimension_numbers<[1], [0], [0], [1], [0, 0, 1, 1], [], []>} : vector<34x34xbf16>, vector<34x8xbf16>, vector<34x8xf32> -> vector<34x8xf32>
    %145 = arith.truncf %144 : vector<34x8xf32> to vector<34x8xbf16>
    %c448 = arith.constant 448 : index
    %c0_62 = arith.constant 0 : index
    %146 = vector.load %arg1[%c448, %c0_62] : memref<1232x128xbf16, #tpu.memory_space<vmem>>, vector<8x32xbf16>
    %cst_63 = arith.constant dense<0.000000e+00> : vector<34x32xf32>
    %147 = tpu.matmul %145, %146, %cst_63 {dimension_numbers = #tpu.dot_dimension_numbers<[1], [0], [0], [1], [0, 0, 1, 1], [], []>} : vector<34x8xbf16>, vector<8x32xbf16>, vector<34x32xf32> -> vector<34x32xf32>
    %148 = arith.addf %110, %147 : vector<34x32xf32>
    %c336 = arith.constant 336 : index
    %c0_64 = arith.constant 0 : index
    %149 = vector.load %arg1[%c336, %c0_64] : memref<1232x128xbf16, #tpu.memory_space<vmem>>, vector<32x8xbf16>
    %cst_65 = arith.constant dense<0.000000e+00> : vector<34x8xf32>
    %150 = tpu.matmul %35, %149, %cst_65 {dimension_numbers = #tpu.dot_dimension_numbers<[1], [0], [0], [1], [0, 0, 1, 1], [], []>} : vector<34x32xbf16>, vector<32x8xbf16>, vector<34x8xf32> -> vector<34x8xf32>
    %c85 = arith.constant 85 : index
    %c0_66 = arith.constant 0 : index
    %151 = vector.load %arg2[%c85, %c0_66] : memref<120x128xf32, #tpu.memory_space<vmem>>, vector<1x8xf32>
    %152 = vector.broadcast %151 : vector<1x8xf32> to vector<34x8xf32>
    %153 = arith.addf %150, %152 : vector<34x8xf32>
    %c368 = arith.constant 368 : index
    %c0_67 = arith.constant 0 : index
    %154 = vector.load %arg1[%c368, %c0_67] : memref<1232x128xbf16, #tpu.memory_space<vmem>>, vector<32x8xbf16>
    %cst_68 = arith.constant dense<0.000000e+00> : vector<34x8xf32>
    %155 = tpu.matmul %35, %154, %cst_68 {dimension_numbers = #tpu.dot_dimension_numbers<[1], [0], [0], [1], [0, 0, 1, 1], [], []>} : vector<34x32xbf16>, vector<32x8xbf16>, vector<34x8xf32> -> vector<34x8xf32>
    %c86 = arith.constant 86 : index
    %c0_69 = arith.constant 0 : index
    %156 = vector.load %arg2[%c86, %c0_69] : memref<120x128xf32, #tpu.memory_space<vmem>>, vector<1x8xf32>
    %157 = vector.broadcast %156 : vector<1x8xf32> to vector<34x8xf32>
    %158 = arith.addf %155, %157 : vector<34x8xf32>
    %c400 = arith.constant 400 : index
    %c0_70 = arith.constant 0 : index
    %159 = vector.load %arg1[%c400, %c0_70] : memref<1232x128xbf16, #tpu.memory_space<vmem>>, vector<32x8xbf16>
    %cst_71 = arith.constant dense<0.000000e+00> : vector<34x8xf32>
    %160 = tpu.matmul %35, %159, %cst_71 {dimension_numbers = #tpu.dot_dimension_numbers<[1], [0], [0], [1], [0, 0, 1, 1], [], []>} : vector<34x32xbf16>, vector<32x8xbf16>, vector<34x8xf32> -> vector<34x8xf32>
    %c87 = arith.constant 87 : index
    %c0_72 = arith.constant 0 : index
    %161 = vector.load %arg2[%c87, %c0_72] : memref<120x128xf32, #tpu.memory_space<vmem>>, vector<1x8xf32>
    %162 = vector.broadcast %161 : vector<1x8xf32> to vector<34x8xf32>
    %163 = arith.addf %160, %162 : vector<34x8xf32>
    %164 = arith.truncf %153 : vector<34x8xf32> to vector<34x8xbf16>
    %165 = arith.truncf %158 : vector<34x8xf32> to vector<34x8xbf16>
    "tpu.trace_start"() <{level = 10 : i32, message = "qd,kd->qk"}> : () -> ()
    %cst_73 = arith.constant dense<0.000000e+00> : vector<34x34xf32>
    %166 = tpu.matmul %164, %165, %cst_73 {dimension_numbers = #tpu.dot_dimension_numbers<[1], [1], [0], [0], [0, 0, 1, 0], [], []>} : vector<34x8xbf16>, vector<34x8xbf16>, vector<34x34xf32> -> vector<34x34xf32>
    "tpu.trace_stop"() : () -> ()
    %cst_74 = arith.constant 0.353553385 : f32
    %167 = vector.broadcast %cst_74 : f32 to vector<34x34xf32>
    %168 = arith.mulf %166, %167 : vector<34x34xf32>
    %169 = arith.addf %168, %12 : vector<34x34xf32>
    %cst_75 = arith.constant dense<0xFF800000> : vector<34xf32>
    %170 = vector.multi_reduction <maximumf>, %169, %cst_75 [1] : vector<34x34xf32> to vector<34xf32>
    %171 = vector.shape_cast %170 : vector<34xf32> to vector<34x1xf32>
    %172 = vector.broadcast %171 : vector<34x1xf32> to vector<34x34xf32>
    %173 = arith.subf %169, %172 : vector<34x34xf32>
    %174 = math.exp %173 : vector<34x34xf32>
    %cst_76 = arith.constant dense<0.000000e+00> : vector<34xf32>
    %175 = vector.multi_reduction <add>, %174, %cst_76 [1] : vector<34x34xf32> to vector<34xf32>
    %176 = vector.shape_cast %175 : vector<34xf32> to vector<34x1xf32>
    %177 = tpu.reciprocal %176 {approx = true} : vector<34x1xf32> -> vector<34x1xf32>
    %178 = vector.broadcast %177 : vector<34x1xf32> to vector<34x34xf32>
    %179 = arith.mulf %174, %178 : vector<34x34xf32>
    %180 = arith.truncf %179 : vector<34x34xf32> to vector<34x34xbf16>
    %181 = arith.truncf %163 : vector<34x8xf32> to vector<34x8xbf16>
    %cst_77 = arith.constant dense<0.000000e+00> : vector<34x8xf32>
    %182 = tpu.matmul %180, %181, %cst_77 {dimension_numbers = #tpu.dot_dimension_numbers<[1], [0], [0], [1], [0, 0, 1, 1], [], []>} : vector<34x34xbf16>, vector<34x8xbf16>, vector<34x8xf32> -> vector<34x8xf32>
    %183 = arith.truncf %182 : vector<34x8xf32> to vector<34x8xbf16>
    %c456 = arith.constant 456 : index
    %c0_78 = arith.constant 0 : index
    %184 = vector.load %arg1[%c456, %c0_78] : memref<1232x128xbf16, #tpu.memory_space<vmem>>, vector<8x32xbf16>
    %cst_79 = arith.constant dense<0.000000e+00> : vector<34x32xf32>
    %185 = tpu.matmul %183, %184, %cst_79 {dimension_numbers = #tpu.dot_dimension_numbers<[1], [0], [0], [1], [0, 0, 1, 1], [], []>} : vector<34x8xbf16>, vector<8x32xbf16>, vector<34x32xf32> -> vector<34x32xf32>
    %186 = arith.addf %148, %185 : vector<34x32xf32>
    %187 = arith.addf %11, %186 : vector<34x32xf32>
    %c88 = arith.constant 88 : index
    %c0_80 = arith.constant 0 : index
    %188 = vector.load %arg2[%c88, %c0_80] : memref<120x128xf32, #tpu.memory_space<vmem>>, vector<1x32xf32>
    %189 = vector.broadcast %188 : vector<1x32xf32> to vector<34x32xf32>
    %190 = arith.addf %187, %189 : vector<34x32xf32>
    %c89 = arith.constant 89 : index
    %c0_81 = arith.constant 0 : index
    %191 = vector.load %arg2[%c89, %c0_81] : memref<120x128xf32, #tpu.memory_space<vmem>>, vector<1x32xf32>
    %c90 = arith.constant 90 : index
    %c0_82 = arith.constant 0 : index
    %192 = vector.load %arg2[%c90, %c0_82] : memref<120x128xf32, #tpu.memory_space<vmem>>, vector<1x32xf32>
    %cst_83 = arith.constant dense<0.000000e+00> : vector<34xf32>
    %193 = vector.multi_reduction <add>, %190, %cst_83 [1] : vector<34x32xf32> to vector<34xf32>
    %194 = vector.shape_cast %193 : vector<34xf32> to vector<34x1xf32>
    %cst_84 = arith.constant 3.200000e+01 : f32
    %195 = vector.broadcast %cst_84 : f32 to vector<34x1xf32>
    %196 = arith.divf %194, %195 : vector<34x1xf32>
    %197 = vector.broadcast %196 : vector<34x1xf32> to vector<34x32xf32>
    %198 = arith.subf %190, %197 : vector<34x32xf32>
    %199 = arith.mulf %198, %198 : vector<34x32xf32>
    %cst_85 = arith.constant dense<0.000000e+00> : vector<34xf32>
    %200 = vector.multi_reduction <add>, %199, %cst_85 [1] : vector<34x32xf32> to vector<34xf32>
    %201 = vector.shape_cast %200 : vector<34xf32> to vector<34x1xf32>
    %cst_86 = arith.constant 3.200000e+01 : f32
    %202 = vector.broadcast %cst_86 : f32 to vector<34x1xf32>
    %203 = arith.divf %201, %202 : vector<34x1xf32>
    %cst_87 = arith.constant 9.99999974E-6 : f32
    %204 = vector.broadcast %cst_87 : f32 to vector<34x1xf32>
    %205 = arith.addf %203, %204 : vector<34x1xf32>
    %206 = math.rsqrt %205 : vector<34x1xf32>
    %207 = vector.broadcast %206 : vector<34x1xf32> to vector<34x32xf32>
    %208 = arith.mulf %198, %207 : vector<34x32xf32>
    %209 = vector.broadcast %191 : vector<1x32xf32> to vector<34x32xf32>
    %210 = arith.mulf %208, %209 : vector<34x32xf32>
    %211 = vector.broadcast %192 : vector<1x32xf32> to vector<34x32xf32>
    %212 = arith.addf %210, %211 : vector<34x32xf32>
    %213 = arith.truncf %212 : vector<34x32xf32> to vector<34x32xbf16>
    %c464 = arith.constant 464 : index
    %c0_88 = arith.constant 0 : index
    %214 = vector.load %arg1[%c464, %c0_88] : memref<1232x128xbf16, #tpu.memory_space<vmem>>, vector<32x128xbf16>
    %cst_89 = arith.constant dense<0.000000e+00> : vector<34x128xf32>
    %215 = tpu.matmul %213, %214, %cst_89 {dimension_numbers = #tpu.dot_dimension_numbers<[1], [0], [0], [1], [0, 0, 1, 1], [], []>} : vector<34x32xbf16>, vector<32x128xbf16>, vector<34x128xf32> -> vector<34x128xf32>
    %c91 = arith.constant 91 : index
    %c0_90 = arith.constant 0 : index
    %216 = vector.load %arg2[%c91, %c0_90] : memref<120x128xf32, #tpu.memory_space<vmem>>, vector<1x128xf32>
    %217 = vector.broadcast %216 : vector<1x128xf32> to vector<34x128xf32>
    %218 = arith.addf %215, %217 : vector<34x128xf32>
    %cst_91 = arith.constant 5.000000e-01 : f32
    %219 = vector.broadcast %cst_91 : f32 to vector<34x128xf32>
    %220 = arith.mulf %219, %218 : vector<34x128xf32>
    %cst_92 = arith.constant 0.707106769 : f32
    %221 = vector.broadcast %cst_92 : f32 to vector<34x128xf32>
    %222 = arith.mulf %218, %221 : vector<34x128xf32>
    %223 = math.erf %222 : vector<34x128xf32>
    %cst_93 = arith.constant 1.000000e+00 : f32
    %224 = vector.broadcast %cst_93 : f32 to vector<34x128xf32>
    %225 = arith.addf %224, %223 : vector<34x128xf32>
    %226 = arith.mulf %220, %225 : vector<34x128xf32>
    %227 = arith.truncf %226 : vector<34x128xf32> to vector<34x128xbf16>
    %c496 = arith.constant 496 : index
    %c0_94 = arith.constant 0 : index
    %228 = vector.load %arg1[%c496, %c0_94] : memref<1232x128xbf16, #tpu.memory_space<vmem>>, vector<128x32xbf16>
    %cst_95 = arith.constant dense<0.000000e+00> : vector<34x32xf32>
    %229 = tpu.matmul %227, %228, %cst_95 {dimension_numbers = #tpu.dot_dimension_numbers<[1], [0], [0], [1], [0, 0, 1, 1], [], []>} : vector<34x128xbf16>, vector<128x32xbf16>, vector<34x32xf32> -> vector<34x32xf32>
    %c92 = arith.constant 92 : index
    %c0_96 = arith.constant 0 : index
    %230 = vector.load %arg2[%c92, %c0_96] : memref<120x128xf32, #tpu.memory_space<vmem>>, vector<1x32xf32>
    %231 = vector.broadcast %230 : vector<1x32xf32> to vector<34x32xf32>
    %232 = arith.addf %229, %231 : vector<34x32xf32>
    %233 = arith.addf %190, %232 : vector<34x32xf32>
    %c93 = arith.constant 93 : index
    %c0_97 = arith.constant 0 : index
    %234 = vector.load %arg2[%c93, %c0_97] : memref<120x128xf32, #tpu.memory_space<vmem>>, vector<1x32xf32>
    %c94 = arith.constant 94 : index
    %c0_98 = arith.constant 0 : index
    %235 = vector.load %arg2[%c94, %c0_98] : memref<120x128xf32, #tpu.memory_space<vmem>>, vector<1x32xf32>
    %cst_99 = arith.constant dense<0.000000e+00> : vector<34xf32>
    %236 = vector.multi_reduction <add>, %233, %cst_99 [1] : vector<34x32xf32> to vector<34xf32>
    %237 = vector.shape_cast %236 : vector<34xf32> to vector<34x1xf32>
    %cst_100 = arith.constant 3.200000e+01 : f32
    %238 = vector.broadcast %cst_100 : f32 to vector<34x1xf32>
    %239 = arith.divf %237, %238 : vector<34x1xf32>
    %240 = vector.broadcast %239 : vector<34x1xf32> to vector<34x32xf32>
    %241 = arith.subf %233, %240 : vector<34x32xf32>
    %242 = arith.mulf %241, %241 : vector<34x32xf32>
    %cst_101 = arith.constant dense<0.000000e+00> : vector<34xf32>
    %243 = vector.multi_reduction <add>, %242, %cst_101 [1] : vector<34x32xf32> to vector<34xf32>
    %244 = vector.shape_cast %243 : vector<34xf32> to vector<34x1xf32>
    %cst_102 = arith.constant 3.200000e+01 : f32
    %245 = vector.broadcast %cst_102 : f32 to vector<34x1xf32>
    %246 = arith.divf %244, %245 : vector<34x1xf32>
    %cst_103 = arith.constant 9.99999974E-6 : f32
    %247 = vector.broadcast %cst_103 : f32 to vector<34x1xf32>
    %248 = arith.addf %246, %247 : vector<34x1xf32>
    %249 = math.rsqrt %248 : vector<34x1xf32>
    %250 = vector.broadcast %249 : vector<34x1xf32> to vector<34x32xf32>
    %251 = arith.mulf %241, %250 : vector<34x32xf32>
    %252 = vector.broadcast %234 : vector<1x32xf32> to vector<34x32xf32>
    %253 = arith.mulf %251, %252 : vector<34x32xf32>
    %254 = vector.broadcast %235 : vector<1x32xf32> to vector<34x32xf32>
    %255 = arith.addf %253, %254 : vector<34x32xf32>
    %256 = arith.truncf %255 : vector<34x32xf32> to vector<34x32xbf16>
    %c624 = arith.constant 624 : index
    %c0_104 = arith.constant 0 : index
    %257 = vector.load %arg1[%c624, %c0_104] : memref<1232x128xbf16, #tpu.memory_space<vmem>>, vector<32x8xbf16>
    %cst_105 = arith.constant dense<0.000000e+00> : vector<34x8xf32>
    %258 = tpu.matmul %256, %257, %cst_105 {dimension_numbers = #tpu.dot_dimension_numbers<[1], [0], [0], [1], [0, 0, 1, 1], [], []>} : vector<34x32xbf16>, vector<32x8xbf16>, vector<34x8xf32> -> vector<34x8xf32>
    %c95 = arith.constant 95 : index
    %c0_106 = arith.constant 0 : index
    %259 = vector.load %arg2[%c95, %c0_106] : memref<120x128xf32, #tpu.memory_space<vmem>>, vector<1x8xf32>
    %260 = vector.broadcast %259 : vector<1x8xf32> to vector<34x8xf32>
    %261 = arith.addf %258, %260 : vector<34x8xf32>
    %c656 = arith.constant 656 : index
    %c0_107 = arith.constant 0 : index
    %262 = vector.load %arg1[%c656, %c0_107] : memref<1232x128xbf16, #tpu.memory_space<vmem>>, vector<32x8xbf16>
    %cst_108 = arith.constant dense<0.000000e+00> : vector<34x8xf32>
    %263 = tpu.matmul %256, %262, %cst_108 {dimension_numbers = #tpu.dot_dimension_numbers<[1], [0], [0], [1], [0, 0, 1, 1], [], []>} : vector<34x32xbf16>, vector<32x8xbf16>, vector<34x8xf32> -> vector<34x8xf32>
    %c96 = arith.constant 96 : index
    %c0_109 = arith.constant 0 : index
    %264 = vector.load %arg2[%c96, %c0_109] : memref<120x128xf32, #tpu.memory_space<vmem>>, vector<1x8xf32>
    %265 = vector.broadcast %264 : vector<1x8xf32> to vector<34x8xf32>
    %266 = arith.addf %263, %265 : vector<34x8xf32>
    %c688 = arith.constant 688 : index
    %c0_110 = arith.constant 0 : index
    %267 = vector.load %arg1[%c688, %c0_110] : memref<1232x128xbf16, #tpu.memory_space<vmem>>, vector<32x8xbf16>
    %cst_111 = arith.constant dense<0.000000e+00> : vector<34x8xf32>
    %268 = tpu.matmul %256, %267, %cst_111 {dimension_numbers = #tpu.dot_dimension_numbers<[1], [0], [0], [1], [0, 0, 1, 1], [], []>} : vector<34x32xbf16>, vector<32x8xbf16>, vector<34x8xf32> -> vector<34x8xf32>
    %c97 = arith.constant 97 : index
    %c0_112 = arith.constant 0 : index
    %269 = vector.load %arg2[%c97, %c0_112] : memref<120x128xf32, #tpu.memory_space<vmem>>, vector<1x8xf32>
    %270 = vector.broadcast %269 : vector<1x8xf32> to vector<34x8xf32>
    %271 = arith.addf %268, %270 : vector<34x8xf32>
    %272 = arith.truncf %261 : vector<34x8xf32> to vector<34x8xbf16>
    %273 = arith.truncf %266 : vector<34x8xf32> to vector<34x8xbf16>
    "tpu.trace_start"() <{level = 10 : i32, message = "qd,kd->qk"}> : () -> ()
    %cst_113 = arith.constant dense<0.000000e+00> : vector<34x34xf32>
    %274 = tpu.matmul %272, %273, %cst_113 {dimension_numbers = #tpu.dot_dimension_numbers<[1], [1], [0], [0], [0, 0, 1, 0], [], []>} : vector<34x8xbf16>, vector<34x8xbf16>, vector<34x34xf32> -> vector<34x34xf32>
    "tpu.trace_stop"() : () -> ()
    %cst_114 = arith.constant 0.353553385 : f32
    %275 = vector.broadcast %cst_114 : f32 to vector<34x34xf32>
    %276 = arith.mulf %274, %275 : vector<34x34xf32>
    %277 = arith.addf %276, %12 : vector<34x34xf32>
    %cst_115 = arith.constant dense<0xFF800000> : vector<34xf32>
    %278 = vector.multi_reduction <maximumf>, %277, %cst_115 [1] : vector<34x34xf32> to vector<34xf32>
    %279 = vector.shape_cast %278 : vector<34xf32> to vector<34x1xf32>
    %280 = vector.broadcast %279 : vector<34x1xf32> to vector<34x34xf32>
    %281 = arith.subf %277, %280 : vector<34x34xf32>
    %282 = math.exp %281 : vector<34x34xf32>
    %cst_116 = arith.constant dense<0.000000e+00> : vector<34xf32>
    %283 = vector.multi_reduction <add>, %282, %cst_116 [1] : vector<34x34xf32> to vector<34xf32>
    %284 = vector.shape_cast %283 : vector<34xf32> to vector<34x1xf32>
    %285 = tpu.reciprocal %284 {approx = true} : vector<34x1xf32> -> vector<34x1xf32>
    %286 = vector.broadcast %285 : vector<34x1xf32> to vector<34x34xf32>
    %287 = arith.mulf %282, %286 : vector<34x34xf32>
    %288 = arith.truncf %287 : vector<34x34xf32> to vector<34x34xbf16>
    %289 = arith.truncf %271 : vector<34x8xf32> to vector<34x8xbf16>
    %cst_117 = arith.constant dense<0.000000e+00> : vector<34x8xf32>
    %290 = tpu.matmul %288, %289, %cst_117 {dimension_numbers = #tpu.dot_dimension_numbers<[1], [0], [0], [1], [0, 0, 1, 1], [], []>} : vector<34x34xbf16>, vector<34x8xbf16>, vector<34x8xf32> -> vector<34x8xf32>
    %291 = arith.truncf %290 : vector<34x8xf32> to vector<34x8xbf16>
    %c1008 = arith.constant 1008 : index
    %c0_118 = arith.constant 0 : index
    %292 = vector.load %arg1[%c1008, %c0_118] : memref<1232x128xbf16, #tpu.memory_space<vmem>>, vector<8x32xbf16>
    %cst_119 = arith.constant dense<0.000000e+00> : vector<34x32xf32>
    %293 = tpu.matmul %291, %292, %cst_119 {dimension_numbers = #tpu.dot_dimension_numbers<[1], [0], [0], [1], [0, 0, 1, 1], [], []>} : vector<34x8xbf16>, vector<8x32xbf16>, vector<34x32xf32> -> vector<34x32xf32>
    %c720 = arith.constant 720 : index
    %c0_120 = arith.constant 0 : index
    %294 = vector.load %arg1[%c720, %c0_120] : memref<1232x128xbf16, #tpu.memory_space<vmem>>, vector<32x8xbf16>
    %cst_121 = arith.constant dense<0.000000e+00> : vector<34x8xf32>
    %295 = tpu.matmul %256, %294, %cst_121 {dimension_numbers = #tpu.dot_dimension_numbers<[1], [0], [0], [1], [0, 0, 1, 1], [], []>} : vector<34x32xbf16>, vector<32x8xbf16>, vector<34x8xf32> -> vector<34x8xf32>
    %c98 = arith.constant 98 : index
    %c0_122 = arith.constant 0 : index
    %296 = vector.load %arg2[%c98, %c0_122] : memref<120x128xf32, #tpu.memory_space<vmem>>, vector<1x8xf32>
    %297 = vector.broadcast %296 : vector<1x8xf32> to vector<34x8xf32>
    %298 = arith.addf %295, %297 : vector<34x8xf32>
    %c752 = arith.constant 752 : index
    %c0_123 = arith.constant 0 : index
    %299 = vector.load %arg1[%c752, %c0_123] : memref<1232x128xbf16, #tpu.memory_space<vmem>>, vector<32x8xbf16>
    %cst_124 = arith.constant dense<0.000000e+00> : vector<34x8xf32>
    %300 = tpu.matmul %256, %299, %cst_124 {dimension_numbers = #tpu.dot_dimension_numbers<[1], [0], [0], [1], [0, 0, 1, 1], [], []>} : vector<34x32xbf16>, vector<32x8xbf16>, vector<34x8xf32> -> vector<34x8xf32>
    %c99 = arith.constant 99 : index
    %c0_125 = arith.constant 0 : index
    %301 = vector.load %arg2[%c99, %c0_125] : memref<120x128xf32, #tpu.memory_space<vmem>>, vector<1x8xf32>
    %302 = vector.broadcast %301 : vector<1x8xf32> to vector<34x8xf32>
    %303 = arith.addf %300, %302 : vector<34x8xf32>
    %c784 = arith.constant 784 : index
    %c0_126 = arith.constant 0 : index
    %304 = vector.load %arg1[%c784, %c0_126] : memref<1232x128xbf16, #tpu.memory_space<vmem>>, vector<32x8xbf16>
    %cst_127 = arith.constant dense<0.000000e+00> : vector<34x8xf32>
    %305 = tpu.matmul %256, %304, %cst_127 {dimension_numbers = #tpu.dot_dimension_numbers<[1], [0], [0], [1], [0, 0, 1, 1], [], []>} : vector<34x32xbf16>, vector<32x8xbf16>, vector<34x8xf32> -> vector<34x8xf32>
    %c100 = arith.constant 100 : index
    %c0_128 = arith.constant 0 : index
    %306 = vector.load %arg2[%c100, %c0_128] : memref<120x128xf32, #tpu.memory_space<vmem>>, vector<1x8xf32>
    %307 = vector.broadcast %306 : vector<1x8xf32> to vector<34x8xf32>
    %308 = arith.addf %305, %307 : vector<34x8xf32>
    %309 = arith.truncf %298 : vector<34x8xf32> to vector<34x8xbf16>
    %310 = arith.truncf %303 : vector<34x8xf32> to vector<34x8xbf16>
    "tpu.trace_start"() <{level = 10 : i32, message = "qd,kd->qk"}> : () -> ()
    %cst_129 = arith.constant dense<0.000000e+00> : vector<34x34xf32>
    %311 = tpu.matmul %309, %310, %cst_129 {dimension_numbers = #tpu.dot_dimension_numbers<[1], [1], [0], [0], [0, 0, 1, 0], [], []>} : vector<34x8xbf16>, vector<34x8xbf16>, vector<34x34xf32> -> vector<34x34xf32>
    "tpu.trace_stop"() : () -> ()
    %cst_130 = arith.constant 0.353553385 : f32
    %312 = vector.broadcast %cst_130 : f32 to vector<34x34xf32>
    %313 = arith.mulf %311, %312 : vector<34x34xf32>
    %314 = arith.addf %313, %12 : vector<34x34xf32>
    %cst_131 = arith.constant dense<0xFF800000> : vector<34xf32>
    %315 = vector.multi_reduction <maximumf>, %314, %cst_131 [1] : vector<34x34xf32> to vector<34xf32>
    %316 = vector.shape_cast %315 : vector<34xf32> to vector<34x1xf32>
    %317 = vector.broadcast %316 : vector<34x1xf32> to vector<34x34xf32>
    %318 = arith.subf %314, %317 : vector<34x34xf32>
    %319 = math.exp %318 : vector<34x34xf32>
    %cst_132 = arith.constant dense<0.000000e+00> : vector<34xf32>
    %320 = vector.multi_reduction <add>, %319, %cst_132 [1] : vector<34x34xf32> to vector<34xf32>
    %321 = vector.shape_cast %320 : vector<34xf32> to vector<34x1xf32>
    %322 = tpu.reciprocal %321 {approx = true} : vector<34x1xf32> -> vector<34x1xf32>
    %323 = vector.broadcast %322 : vector<34x1xf32> to vector<34x34xf32>
    %324 = arith.mulf %319, %323 : vector<34x34xf32>
    %325 = arith.truncf %324 : vector<34x34xf32> to vector<34x34xbf16>
    %326 = arith.truncf %308 : vector<34x8xf32> to vector<34x8xbf16>
    %cst_133 = arith.constant dense<0.000000e+00> : vector<34x8xf32>
    %327 = tpu.matmul %325, %326, %cst_133 {dimension_numbers = #tpu.dot_dimension_numbers<[1], [0], [0], [1], [0, 0, 1, 1], [], []>} : vector<34x34xbf16>, vector<34x8xbf16>, vector<34x8xf32> -> vector<34x8xf32>
    %328 = arith.truncf %327 : vector<34x8xf32> to vector<34x8xbf16>
    %c1016 = arith.constant 1016 : index
    %c0_134 = arith.constant 0 : index
    %329 = vector.load %arg1[%c1016, %c0_134] : memref<1232x128xbf16, #tpu.memory_space<vmem>>, vector<8x32xbf16>
    %cst_135 = arith.constant dense<0.000000e+00> : vector<34x32xf32>
    %330 = tpu.matmul %328, %329, %cst_135 {dimension_numbers = #tpu.dot_dimension_numbers<[1], [0], [0], [1], [0, 0, 1, 1], [], []>} : vector<34x8xbf16>, vector<8x32xbf16>, vector<34x32xf32> -> vector<34x32xf32>
    %331 = arith.addf %293, %330 : vector<34x32xf32>
    %c816 = arith.constant 816 : index
    %c0_136 = arith.constant 0 : index
    %332 = vector.load %arg1[%c816, %c0_136] : memref<1232x128xbf16, #tpu.memory_space<vmem>>, vector<32x8xbf16>
    %cst_137 = arith.constant dense<0.000000e+00> : vector<34x8xf32>
    %333 = tpu.matmul %256, %332, %cst_137 {dimension_numbers = #tpu.dot_dimension_numbers<[1], [0], [0], [1], [0, 0, 1, 1], [], []>} : vector<34x32xbf16>, vector<32x8xbf16>, vector<34x8xf32> -> vector<34x8xf32>
    %c101 = arith.constant 101 : index
    %c0_138 = arith.constant 0 : index
    %334 = vector.load %arg2[%c101, %c0_138] : memref<120x128xf32, #tpu.memory_space<vmem>>, vector<1x8xf32>
    %335 = vector.broadcast %334 : vector<1x8xf32> to vector<34x8xf32>
    %336 = arith.addf %333, %335 : vector<34x8xf32>
    %c848 = arith.constant 848 : index
    %c0_139 = arith.constant 0 : index
    %337 = vector.load %arg1[%c848, %c0_139] : memref<1232x128xbf16, #tpu.memory_space<vmem>>, vector<32x8xbf16>
    %cst_140 = arith.constant dense<0.000000e+00> : vector<34x8xf32>
    %338 = tpu.matmul %256, %337, %cst_140 {dimension_numbers = #tpu.dot_dimension_numbers<[1], [0], [0], [1], [0, 0, 1, 1], [], []>} : vector<34x32xbf16>, vector<32x8xbf16>, vector<34x8xf32> -> vector<34x8xf32>
    %c102 = arith.constant 102 : index
    %c0_141 = arith.constant 0 : index
    %339 = vector.load %arg2[%c102, %c0_141] : memref<120x128xf32, #tpu.memory_space<vmem>>, vector<1x8xf32>
    %340 = vector.broadcast %339 : vector<1x8xf32> to vector<34x8xf32>
    %341 = arith.addf %338, %340 : vector<34x8xf32>
    %c880 = arith.constant 880 : index
    %c0_142 = arith.constant 0 : index
    %342 = vector.load %arg1[%c880, %c0_142] : memref<1232x128xbf16, #tpu.memory_space<vmem>>, vector<32x8xbf16>
    %cst_143 = arith.constant dense<0.000000e+00> : vector<34x8xf32>
    %343 = tpu.matmul %256, %342, %cst_143 {dimension_numbers = #tpu.dot_dimension_numbers<[1], [0], [0], [1], [0, 0, 1, 1], [], []>} : vector<34x32xbf16>, vector<32x8xbf16>, vector<34x8xf32> -> vector<34x8xf32>
    %c103 = arith.constant 103 : index
    %c0_144 = arith.constant 0 : index
    %344 = vector.load %arg2[%c103, %c0_144] : memref<120x128xf32, #tpu.memory_space<vmem>>, vector<1x8xf32>
    %345 = vector.broadcast %344 : vector<1x8xf32> to vector<34x8xf32>
    %346 = arith.addf %343, %345 : vector<34x8xf32>
    %347 = arith.truncf %336 : vector<34x8xf32> to vector<34x8xbf16>
    %348 = arith.truncf %341 : vector<34x8xf32> to vector<34x8xbf16>
    "tpu.trace_start"() <{level = 10 : i32, message = "qd,kd->qk"}> : () -> ()
    %cst_145 = arith.constant dense<0.000000e+00> : vector<34x34xf32>
    %349 = tpu.matmul %347, %348, %cst_145 {dimension_numbers = #tpu.dot_dimension_numbers<[1], [1], [0], [0], [0, 0, 1, 0], [], []>} : vector<34x8xbf16>, vector<34x8xbf16>, vector<34x34xf32> -> vector<34x34xf32>
    "tpu.trace_stop"() : () -> ()
    %cst_146 = arith.constant 0.353553385 : f32
    %350 = vector.broadcast %cst_146 : f32 to vector<34x34xf32>
    %351 = arith.mulf %349, %350 : vector<34x34xf32>
    %352 = arith.addf %351, %12 : vector<34x34xf32>
    %cst_147 = arith.constant dense<0xFF800000> : vector<34xf32>
    %353 = vector.multi_reduction <maximumf>, %352, %cst_147 [1] : vector<34x34xf32> to vector<34xf32>
    %354 = vector.shape_cast %353 : vector<34xf32> to vector<34x1xf32>
    %355 = vector.broadcast %354 : vector<34x1xf32> to vector<34x34xf32>
    %356 = arith.subf %352, %355 : vector<34x34xf32>
    %357 = math.exp %356 : vector<34x34xf32>
    %cst_148 = arith.constant dense<0.000000e+00> : vector<34xf32>
    %358 = vector.multi_reduction <add>, %357, %cst_148 [1] : vector<34x34xf32> to vector<34xf32>
    %359 = vector.shape_cast %358 : vector<34xf32> to vector<34x1xf32>
    %360 = tpu.reciprocal %359 {approx = true} : vector<34x1xf32> -> vector<34x1xf32>
    %361 = vector.broadcast %360 : vector<34x1xf32> to vector<34x34xf32>
    %362 = arith.mulf %357, %361 : vector<34x34xf32>
    %363 = arith.truncf %362 : vector<34x34xf32> to vector<34x34xbf16>
    %364 = arith.truncf %346 : vector<34x8xf32> to vector<34x8xbf16>
    %cst_149 = arith.constant dense<0.000000e+00> : vector<34x8xf32>
    %365 = tpu.matmul %363, %364, %cst_149 {dimension_numbers = #tpu.dot_dimension_numbers<[1], [0], [0], [1], [0, 0, 1, 1], [], []>} : vector<34x34xbf16>, vector<34x8xbf16>, vector<34x8xf32> -> vector<34x8xf32>
    %366 = arith.truncf %365 : vector<34x8xf32> to vector<34x8xbf16>
    %c1024 = arith.constant 1024 : index
    %c0_150 = arith.constant 0 : index
    %367 = vector.load %arg1[%c1024, %c0_150] : memref<1232x128xbf16, #tpu.memory_space<vmem>>, vector<8x32xbf16>
    %cst_151 = arith.constant dense<0.000000e+00> : vector<34x32xf32>
    %368 = tpu.matmul %366, %367, %cst_151 {dimension_numbers = #tpu.dot_dimension_numbers<[1], [0], [0], [1], [0, 0, 1, 1], [], []>} : vector<34x8xbf16>, vector<8x32xbf16>, vector<34x32xf32> -> vector<34x32xf32>
    %369 = arith.addf %331, %368 : vector<34x32xf32>
    %c912 = arith.constant 912 : index
    %c0_152 = arith.constant 0 : index
    %370 = vector.load %arg1[%c912, %c0_152] : memref<1232x128xbf16, #tpu.memory_space<vmem>>, vector<32x8xbf16>
    %cst_153 = arith.constant dense<0.000000e+00> : vector<34x8xf32>
    %371 = tpu.matmul %256, %370, %cst_153 {dimension_numbers = #tpu.dot_dimension_numbers<[1], [0], [0], [1], [0, 0, 1, 1], [], []>} : vector<34x32xbf16>, vector<32x8xbf16>, vector<34x8xf32> -> vector<34x8xf32>
    %c104 = arith.constant 104 : index
    %c0_154 = arith.constant 0 : index
    %372 = vector.load %arg2[%c104, %c0_154] : memref<120x128xf32, #tpu.memory_space<vmem>>, vector<1x8xf32>
    %373 = vector.broadcast %372 : vector<1x8xf32> to vector<34x8xf32>
    %374 = arith.addf %371, %373 : vector<34x8xf32>
    %c944 = arith.constant 944 : index
    %c0_155 = arith.constant 0 : index
    %375 = vector.load %arg1[%c944, %c0_155] : memref<1232x128xbf16, #tpu.memory_space<vmem>>, vector<32x8xbf16>
    %cst_156 = arith.constant dense<0.000000e+00> : vector<34x8xf32>
    %376 = tpu.matmul %256, %375, %cst_156 {dimension_numbers = #tpu.dot_dimension_numbers<[1], [0], [0], [1], [0, 0, 1, 1], [], []>} : vector<34x32xbf16>, vector<32x8xbf16>, vector<34x8xf32> -> vector<34x8xf32>
    %c105 = arith.constant 105 : index
    %c0_157 = arith.constant 0 : index
    %377 = vector.load %arg2[%c105, %c0_157] : memref<120x128xf32, #tpu.memory_space<vmem>>, vector<1x8xf32>
    %378 = vector.broadcast %377 : vector<1x8xf32> to vector<34x8xf32>
    %379 = arith.addf %376, %378 : vector<34x8xf32>
    %c976 = arith.constant 976 : index
    %c0_158 = arith.constant 0 : index
    %380 = vector.load %arg1[%c976, %c0_158] : memref<1232x128xbf16, #tpu.memory_space<vmem>>, vector<32x8xbf16>
    %cst_159 = arith.constant dense<0.000000e+00> : vector<34x8xf32>
    %381 = tpu.matmul %256, %380, %cst_159 {dimension_numbers = #tpu.dot_dimension_numbers<[1], [0], [0], [1], [0, 0, 1, 1], [], []>} : vector<34x32xbf16>, vector<32x8xbf16>, vector<34x8xf32> -> vector<34x8xf32>
    %c106 = arith.constant 106 : index
    %c0_160 = arith.constant 0 : index
    %382 = vector.load %arg2[%c106, %c0_160] : memref<120x128xf32, #tpu.memory_space<vmem>>, vector<1x8xf32>
    %383 = vector.broadcast %382 : vector<1x8xf32> to vector<34x8xf32>
    %384 = arith.addf %381, %383 : vector<34x8xf32>
    %385 = arith.truncf %374 : vector<34x8xf32> to vector<34x8xbf16>
    %386 = arith.truncf %379 : vector<34x8xf32> to vector<34x8xbf16>
    "tpu.trace_start"() <{level = 10 : i32, message = "qd,kd->qk"}> : () -> ()
    %cst_161 = arith.constant dense<0.000000e+00> : vector<34x34xf32>
    %387 = tpu.matmul %385, %386, %cst_161 {dimension_numbers = #tpu.dot_dimension_numbers<[1], [1], [0], [0], [0, 0, 1, 0], [], []>} : vector<34x8xbf16>, vector<34x8xbf16>, vector<34x34xf32> -> vector<34x34xf32>
    "tpu.trace_stop"() : () -> ()
    %cst_162 = arith.constant 0.353553385 : f32
    %388 = vector.broadcast %cst_162 : f32 to vector<34x34xf32>
    %389 = arith.mulf %387, %388 : vector<34x34xf32>
    %390 = arith.addf %389, %12 : vector<34x34xf32>
    %cst_163 = arith.constant dense<0xFF800000> : vector<34xf32>
    %391 = vector.multi_reduction <maximumf>, %390, %cst_163 [1] : vector<34x34xf32> to vector<34xf32>
    %392 = vector.shape_cast %391 : vector<34xf32> to vector<34x1xf32>
    %393 = vector.broadcast %392 : vector<34x1xf32> to vector<34x34xf32>
    %394 = arith.subf %390, %393 : vector<34x34xf32>
    %395 = math.exp %394 : vector<34x34xf32>
    %cst_164 = arith.constant dense<0.000000e+00> : vector<34xf32>
    %396 = vector.multi_reduction <add>, %395, %cst_164 [1] : vector<34x34xf32> to vector<34xf32>
    %397 = vector.shape_cast %396 : vector<34xf32> to vector<34x1xf32>
    %398 = tpu.reciprocal %397 {approx = true} : vector<34x1xf32> -> vector<34x1xf32>
    %399 = vector.broadcast %398 : vector<34x1xf32> to vector<34x34xf32>
    %400 = arith.mulf %395, %399 : vector<34x34xf32>
    %401 = arith.truncf %400 : vector<34x34xf32> to vector<34x34xbf16>
    %402 = arith.truncf %384 : vector<34x8xf32> to vector<34x8xbf16>
    %cst_165 = arith.constant dense<0.000000e+00> : vector<34x8xf32>
    %403 = tpu.matmul %401, %402, %cst_165 {dimension_numbers = #tpu.dot_dimension_numbers<[1], [0], [0], [1], [0, 0, 1, 1], [], []>} : vector<34x34xbf16>, vector<34x8xbf16>, vector<34x8xf32> -> vector<34x8xf32>
    %404 = arith.truncf %403 : vector<34x8xf32> to vector<34x8xbf16>
    %c1032 = arith.constant 1032 : index
    %c0_166 = arith.constant 0 : index
    %405 = vector.load %arg1[%c1032, %c0_166] : memref<1232x128xbf16, #tpu.memory_space<vmem>>, vector<8x32xbf16>
    %cst_167 = arith.constant dense<0.000000e+00> : vector<34x32xf32>
    %406 = tpu.matmul %404, %405, %cst_167 {dimension_numbers = #tpu.dot_dimension_numbers<[1], [0], [0], [1], [0, 0, 1, 1], [], []>} : vector<34x8xbf16>, vector<8x32xbf16>, vector<34x32xf32> -> vector<34x32xf32>
    %407 = arith.addf %369, %406 : vector<34x32xf32>
    %408 = arith.addf %233, %407 : vector<34x32xf32>
    %c107 = arith.constant 107 : index
    %c0_168 = arith.constant 0 : index
    %409 = vector.load %arg2[%c107, %c0_168] : memref<120x128xf32, #tpu.memory_space<vmem>>, vector<1x32xf32>
    %410 = vector.broadcast %409 : vector<1x32xf32> to vector<34x32xf32>
    %411 = arith.addf %408, %410 : vector<34x32xf32>
    %c108 = arith.constant 108 : index
    %c0_169 = arith.constant 0 : index
    %412 = vector.load %arg2[%c108, %c0_169] : memref<120x128xf32, #tpu.memory_space<vmem>>, vector<1x32xf32>
    %c109 = arith.constant 109 : index
    %c0_170 = arith.constant 0 : index
    %413 = vector.load %arg2[%c109, %c0_170] : memref<120x128xf32, #tpu.memory_space<vmem>>, vector<1x32xf32>
    %cst_171 = arith.constant dense<0.000000e+00> : vector<34xf32>
    %414 = vector.multi_reduction <add>, %411, %cst_171 [1] : vector<34x32xf32> to vector<34xf32>
    %415 = vector.shape_cast %414 : vector<34xf32> to vector<34x1xf32>
    %cst_172 = arith.constant 3.200000e+01 : f32
    %416 = vector.broadcast %cst_172 : f32 to vector<34x1xf32>
    %417 = arith.divf %415, %416 : vector<34x1xf32>
    %418 = vector.broadcast %417 : vector<34x1xf32> to vector<34x32xf32>
    %419 = arith.subf %411, %418 : vector<34x32xf32>
    %420 = arith.mulf %419, %419 : vector<34x32xf32>
    %cst_173 = arith.constant dense<0.000000e+00> : vector<34xf32>
    %421 = vector.multi_reduction <add>, %420, %cst_173 [1] : vector<34x32xf32> to vector<34xf32>
    %422 = vector.shape_cast %421 : vector<34xf32> to vector<34x1xf32>
    %cst_174 = arith.constant 3.200000e+01 : f32
    %423 = vector.broadcast %cst_174 : f32 to vector<34x1xf32>
    %424 = arith.divf %422, %423 : vector<34x1xf32>
    %cst_175 = arith.constant 9.99999974E-6 : f32
    %425 = vector.broadcast %cst_175 : f32 to vector<34x1xf32>
    %426 = arith.addf %424, %425 : vector<34x1xf32>
    %427 = math.rsqrt %426 : vector<34x1xf32>
    %428 = vector.broadcast %427 : vector<34x1xf32> to vector<34x32xf32>
    %429 = arith.mulf %419, %428 : vector<34x32xf32>
    %430 = vector.broadcast %412 : vector<1x32xf32> to vector<34x32xf32>
    %431 = arith.mulf %429, %430 : vector<34x32xf32>
    %432 = vector.broadcast %413 : vector<1x32xf32> to vector<34x32xf32>
    %433 = arith.addf %431, %432 : vector<34x32xf32>
    %434 = arith.truncf %433 : vector<34x32xf32> to vector<34x32xbf16>
    %c1040 = arith.constant 1040 : index
    %c0_176 = arith.constant 0 : index
    %435 = vector.load %arg1[%c1040, %c0_176] : memref<1232x128xbf16, #tpu.memory_space<vmem>>, vector<32x128xbf16>
    %cst_177 = arith.constant dense<0.000000e+00> : vector<34x128xf32>
    %436 = tpu.matmul %434, %435, %cst_177 {dimension_numbers = #tpu.dot_dimension_numbers<[1], [0], [0], [1], [0, 0, 1, 1], [], []>} : vector<34x32xbf16>, vector<32x128xbf16>, vector<34x128xf32> -> vector<34x128xf32>
    %c110 = arith.constant 110 : index
    %c0_178 = arith.constant 0 : index
    %437 = vector.load %arg2[%c110, %c0_178] : memref<120x128xf32, #tpu.memory_space<vmem>>, vector<1x128xf32>
    %438 = vector.broadcast %437 : vector<1x128xf32> to vector<34x128xf32>
    %439 = arith.addf %436, %438 : vector<34x128xf32>
    %cst_179 = arith.constant 5.000000e-01 : f32
    %440 = vector.broadcast %cst_179 : f32 to vector<34x128xf32>
    %441 = arith.mulf %440, %439 : vector<34x128xf32>
    %cst_180 = arith.constant 0.707106769 : f32
    %442 = vector.broadcast %cst_180 : f32 to vector<34x128xf32>
    %443 = arith.mulf %439, %442 : vector<34x128xf32>
    %444 = math.erf %443 : vector<34x128xf32>
    %cst_181 = arith.constant 1.000000e+00 : f32
    %445 = vector.broadcast %cst_181 : f32 to vector<34x128xf32>
    %446 = arith.addf %445, %444 : vector<34x128xf32>
    %447 = arith.mulf %441, %446 : vector<34x128xf32>
    %448 = arith.truncf %447 : vector<34x128xf32> to vector<34x128xbf16>
    %c1072 = arith.constant 1072 : index
    %c0_182 = arith.constant 0 : index
    %449 = vector.load %arg1[%c1072, %c0_182] : memref<1232x128xbf16, #tpu.memory_space<vmem>>, vector<128x32xbf16>
    %cst_183 = arith.constant dense<0.000000e+00> : vector<34x32xf32>
    %450 = tpu.matmul %448, %449, %cst_183 {dimension_numbers = #tpu.dot_dimension_numbers<[1], [0], [0], [1], [0, 0, 1, 1], [], []>} : vector<34x128xbf16>, vector<128x32xbf16>, vector<34x32xf32> -> vector<34x32xf32>
    %c111 = arith.constant 111 : index
    %c0_184 = arith.constant 0 : index
    %451 = vector.load %arg2[%c111, %c0_184] : memref<120x128xf32, #tpu.memory_space<vmem>>, vector<1x32xf32>
    %452 = vector.broadcast %451 : vector<1x32xf32> to vector<34x32xf32>
    %453 = arith.addf %450, %452 : vector<34x32xf32>
    %454 = arith.addf %411, %453 : vector<34x32xf32>
    %455 = vector.extract_strided_slice %454 {offsets = [0, 0], sizes = [1, 32], strides = [1, 1]} : vector<34x32xf32> to vector<1x32xf32>
    %456 = vector.extract_strided_slice %454 {offsets = [17, 0], sizes = [1, 32], strides = [1, 1]} : vector<34x32xf32> to vector<1x32xf32>
    %457 = tpu.concatenate %455, %456 in 0 : vector<1x32xf32>, vector<1x32xf32> -> vector<2x32xf32>
    %c112_185 = arith.constant 112 : index
    %c0_186 = arith.constant 0 : index
    %458 = vector.load %arg2[%c112_185, %c0_186] : memref<120x128xf32, #tpu.memory_space<vmem>>, vector<1x32xf32>
    %c113 = arith.constant 113 : index
    %c0_187 = arith.constant 0 : index
    %459 = vector.load %arg2[%c113, %c0_187] : memref<120x128xf32, #tpu.memory_space<vmem>>, vector<1x32xf32>
    %cst_188 = arith.constant dense<0.000000e+00> : vector<2xf32>
    %460 = vector.multi_reduction <add>, %457, %cst_188 [1] : vector<2x32xf32> to vector<2xf32>
    %461 = vector.shape_cast %460 : vector<2xf32> to vector<2x1xf32>
    %cst_189 = arith.constant 3.200000e+01 : f32
    %462 = vector.broadcast %cst_189 : f32 to vector<2x1xf32>
    %463 = arith.divf %461, %462 : vector<2x1xf32>
    %464 = vector.broadcast %463 : vector<2x1xf32> to vector<2x32xf32>
    %465 = arith.subf %457, %464 : vector<2x32xf32>
    %466 = arith.mulf %465, %465 : vector<2x32xf32>
    %cst_190 = arith.constant dense<0.000000e+00> : vector<2xf32>
    %467 = vector.multi_reduction <add>, %466, %cst_190 [1] : vector<2x32xf32> to vector<2xf32>
    %468 = vector.shape_cast %467 : vector<2xf32> to vector<2x1xf32>
    %cst_191 = arith.constant 3.200000e+01 : f32
    %469 = vector.broadcast %cst_191 : f32 to vector<2x1xf32>
    %470 = arith.divf %468, %469 : vector<2x1xf32>
    %cst_192 = arith.constant 9.99999974E-6 : f32
    %471 = vector.broadcast %cst_192 : f32 to vector<2x1xf32>
    %472 = arith.addf %470, %471 : vector<2x1xf32>
    %473 = math.rsqrt %472 : vector<2x1xf32>
    %474 = vector.broadcast %473 : vector<2x1xf32> to vector<2x32xf32>
    %475 = arith.mulf %465, %474 : vector<2x32xf32>
    %476 = vector.broadcast %458 : vector<1x32xf32> to vector<2x32xf32>
    %477 = arith.mulf %475, %476 : vector<2x32xf32>
    %478 = vector.broadcast %459 : vector<1x32xf32> to vector<2x32xf32>
    %479 = arith.addf %477, %478 : vector<2x32xf32>
    %480 = arith.truncf %479 : vector<2x32xf32> to vector<2x32xbf16>
    %c1200 = arith.constant 1200 : index
    %c0_193 = arith.constant 0 : index
    %481 = vector.load %arg1[%c1200, %c0_193] : memref<1232x128xbf16, #tpu.memory_space<vmem>>, vector<32x10xbf16>
    %cst_194 = arith.constant dense<0.000000e+00> : vector<2x10xf32>
    %482 = tpu.matmul %480, %481, %cst_194 {dimension_numbers = #tpu.dot_dimension_numbers<[1], [0], [0], [1], [0, 0, 1, 1], [], []>} : vector<2x32xbf16>, vector<32x10xbf16>, vector<2x10xf32> -> vector<2x10xf32>
    %c114 = arith.constant 114 : index
    %c0_195 = arith.constant 0 : index
    %483 = vector.load %arg2[%c114, %c0_195] : memref<120x128xf32, #tpu.memory_space<vmem>>, vector<1x10xf32>
    %484 = vector.broadcast %483 : vector<1x10xf32> to vector<2x10xf32>
    %485 = arith.addf %482, %484 : vector<2x10xf32>
    %c0_196 = arith.constant 0 : index
    %c0_197 = arith.constant 0 : index
    %486 = vector.load %arg3[%c0_196, %c0_197] : memref<2x10xf32, #tpu.memory_space<vmem>>, vector<2x10xf32>
    tpu.vector_store %arg3[%c0_196, %c0_197], %485 {strides = array<i32>} : memref<2x10xf32, #tpu.memory_space<vmem>>, vector<2x10xf32>,
    return
  }
}

</mosaic_0001>

<bundles_post_ra>
// kernel: vit_forward.1
= control target key start
LH: loop header
LB: loop body
LE: loop exit
PB: predicated region body
PF: predicated region fallthrough
CT: control target
= control target key end

     0   :  { %vm56_vm0 = vcmask 392192   ;;  %s6502_s0 = inlined_call_operand.vmem [shape: bf16[32,48], index: 0, kind: input, shape index: {}]   ;;  %s6503_s1 = inlined_call_operand.vmem [shape: bf16[1232,128], index: 1, kind: input, shape index: {}]   ;;  %s6504_s2 = inlined_call_operand.vmem [shape: f32[120,128], index: 2, kind: input, shape index: {}]   ;;  %s6505_s3 = inlined_call_operand.hbm [shape: f32[2,10], index: 3, kind: output, shape index: {}]  }
   0x1   :  { %v4500_v0 = vld [vmem:[%s6503_s1 + $0x10] sm:$0xff]  ;;  %v4499_v1 = vld [vmem:[%s6503_s1 + $0x8] sm:$0xff]  ;;  %v4498_v2 = vld [vmem:[%s6503_s1] sm:$0xff] }
   0x2   :  { %68 = vmatpush.bf16.msra.mxu0 %v4500_v0  ;;  %v4496_v3 = vld [vmem:[%s6502_s0] sm:$0xff] }
   0x6   :  { %69 = vmatpush.bf16.msra.mxu0 %v4499_v1 }
   0xa   :  { %70 = vmatpush.bf16.msra.mxu0 %v4498_v2 }
   0xd   :  { %4053 = vmatmul.msk.bf16.vlgmr.msra.gmra.mxu0 %vm56_vm0, %v4496_v3 }
   0xe   :  { %8 = vsyncpa [#allocation3], 0  ;;  %v4497_v4 = vld [vmem:[%s6502_s0 + $0x8] sm:$0xff]  ;;  %v4579_v5 = vld [vmem:[%s6504_s2] ss:$0 sm:$0xff]  ;;  %vm93_vm1 = vcmask 1040384  }
   0xf   :  { %v82_v7 = vld [vmem:[%s6504_s2 + $0x8] sm:$0xff]  ;;  %v90_v10 = vld [vmem:[%s6504_s2 + $0x1] sm:$0x1]  ;;  %vm122_vm2 = vcmask 261120   ;;  %v83_v14 = vld [vmem:[%s6504_s2 + $0x10] sm:$0xff]  ;;  %vm105_vm3 = vcmask 1041408  }
  0x10   :  { %v84_v21 = vld [vmem:[%s6504_s2 + $0x18] sm:$0xff]  ;;  %v101_v24 = vrot.slane %v90_v10, 7  ;;  %v85_v30 = vld [vmem:[%s6504_s2 + $0x20] sm:$0xff]  ;;  %vm135_vm4 = vcmask 254976   ;;  %v4886_v38 = vmov 32.0   ;;  %s4887_s30 = smov [#allocation2]  }
  0x11   :  { %4621 = vrcp.f32 %v4886_v38  ;;  %s4022_s4 = sshll.u32 %s4887_s30, 4  ;;  %s4024_s7 = sshll.u32 %s6505_s3, 4  ;;  %s4023_s4 = int_to_ptr.vmem [resolvable:$true] %s4022_s4  ;;  %s4025_s7 = int_to_ptr.hbm [resolvable:$true] %s4024_s7 }
  0x17   :  { %v4622_v39 = vpop.eup %4621 }
  0x18   :  { %v140_v40 = vmul.f32 32.0, %v4622_v39  ;;  %vm144_vm5 = vweird.f32 %v4622_v39 }
  0x1a   :  { %v141_v41 = vsub.f32 1.0, %v140_v40 }
  0x1c   :  { %v142_v42 = vmul.f32 %v4622_v39, %v141_v41 }
  0x1d   :  { %4054 = vmatmul.msk.bf16.gmra.mxu0 %vm56_vm0, %v4497_v4 }
  0x1e   :  { %v143_v43 = vadd.f32 %v4622_v39, %v142_v42 }
  0x20   :  { %v4965_v44 = vsel %vm144_vm5, %v4622_v39, %v143_v43 }
  0x8a   :  { %v72_v6 = vpop.f32.mrf.mxu0 }
  0x8b   :  { %v73_v8 = vadd.f32 %v4579_v5, %v72_v6  ;;  %v4502_v6 = vld [vmem:[%s6503_s1 + $0x20] sm:$0xff] }
  0x8c   :  { %289 = vmatpush.bf16.msra.mxu1 %v4502_v6 }
  0x8d   :  { %v86_v9 = vadd.f32 %v82_v7, %v73_v8  ;;  %v4504_v7 = vld [vmem:[%s6503_s1 + $0x30] sm:$0xff]  ;;  %v4506_v8 = vld [vmem:[%s6503_s1 + $0x40] sm:$0xff] }
  0x8e   :  { %330 = vmatpush.bf16.msra.mxu2 %v4504_v7  ;;  %371 = vmatpush.bf16.msra.mxu3 %v4506_v8 }
  0x8f   :  { %v94_v11 = vrot.slane %v86_v9, 7 }
  0x91   :  { %v4933_v12 = vsel %vm93_vm1, %v90_v10, %v94_v11 }
  0x92   :  { %v74_v13 = vpop.f32.mrf.mxu0  ;;  %v123_v15 = vsel %vm122_vm2, %v4933_v12, 0.0 }
  0x93   :  { %v75_v16 = vadd.f32 %v4579_v5, %v74_v13  ;;  %124 = vadd.xlane.f32.xlu0 %v123_v15  ;;  %v4501_v13 = vld [vmem:[%s6503_s1 + $0x18] sm:$0xff] }
  0x94   :  { %v4505_v15 = vld [vmem:[%s6503_s1 + $0x38] sm:$0xff]  ;;  %290 = vmatpush.bf16.msra.mxu1 %v4501_v13 }
  0x95   :  { %v87_v17 = vadd.f32 %v83_v14, %v75_v16  ;;  %v4503_v14 = vld [vmem:[%s6503_s1 + $0x28] sm:$0xff]  ;;  %372 = vmatpush.bf16.msra.mxu3 %v4505_v15 }
  0x96   :  { %331 = vmatpush.bf16.msra.mxu2 %v4503_v14 }
  0x97   :  { %v95_v18 = vrot.slane %v87_v17, 7 }
  0x99   :  { %v4941_v19 = vsel %vm93_vm1, %v94_v11, %v95_v18  ;;  %v113_v27 = vsel %vm93_vm1, %v95_v18, %v101_v24 }
  0x9a   :  { %v77_v20 = vpop.f32.mrf.mxu0  ;;  %v126_v22 = vsel %vm122_vm2, %v4941_v19, 0.0 }
  0x9b   :  { %v78_v23 = vadd.f32 %v4579_v5, %v77_v20  ;;  %127 = vadd.xlane.f32.xlu0 %v126_v22 }
  0x9d   :  { %v88_v25 = vadd.f32 %v84_v21, %v78_v23 }
  0x9f   :  { %v106_v26 = vrot.slane %v88_v25, 6 }
  0xa1   :  { %v4949_v28 = vsel %vm105_vm3, %v113_v27, %v106_v26 }
  0xa2   :  { %v79_v29 = vpop.f32.mrf.mxu0  ;;  %v129_v31 = vsel %vm122_vm2, %v4949_v28, 0.0 }
  0xa3   :  { %v80_v32 = vadd.f32 %v4579_v5, %v79_v29  ;;  %130 = vadd.xlane.f32.xlu1 %v129_v31 }
  0xa5   :  { %v89_v33 = vadd.f32 %v85_v30, %v80_v32 }
  0xa7   :  { %v4956_v34 = vrot.slane %v89_v33, 6 }
  0xa9   :  { %v136_v35 = vsel %vm135_vm4, %v4956_v34, 0.0  ;;  %v4961_v36 = vsel %vm105_vm3, %v106_v26, %v4956_v34 }
  0xaa   :  { %137 = vadd.xlane.f32.xlu2 %v136_v35  ;;  %v132_v37 = vsel %vm122_vm2, %v4961_v36, 0.0 }
  0xab   :  { %133 = vadd.xlane.f32.xlu1 %v132_v37 }
 0x106   :  { %v125_v45 = vpop.xlane.xlu0 %124 }
 0x107   :  { %v146_v46 = vmul.f32 %v4965_v44, %v125_v45  ;;  %v4580_v45 = vld [vmem:[%s6504_s2 + $0x4a] ss:$0 sm:$0xff] }
 0x109   :  { %v4969_v47 = vsub.f32 %v4933_v12, %v146_v46 }
 0x10b   :  { %v156_v48 = vmul.f32 %v4969_v47, %v4969_v47 }
 0x10d   :  { %v161_v49 = vsel %vm122_vm2, %v156_v48, 0.0 }
 0x10e   :  { %162 = vadd.xlane.f32.xlu2 %v161_v49  ;;  %v128_v50 = vpop.xlane.xlu0 %127 }
 0x10f   :  { %v147_v51 = vmul.f32 %v4965_v44, %v128_v50 }
 0x111   :  { %v4976_v52 = vsub.f32 %v4941_v19, %v147_v51 }
 0x113   :  { %v157_v53 = vmul.f32 %v4976_v52, %v4976_v52 }
 0x115   :  { %v164_v54 = vsel %vm122_vm2, %v157_v53, 0.0 }
 0x116   :  { %v131_v55 = vpop.xlane.xlu1 %130  ;;  %165 = vadd.xlane.f32.xlu0 %v164_v54  ;;  %v4581_v54 = vld [vmem:[%s6504_s2 + $0x4b] ss:$0 sm:$0xff] }
 0x117   :  { %v148_v56 = vmul.f32 %v4965_v44, %v131_v55 }
 0x119   :  { %v4983_v57 = vsub.f32 %v4949_v28, %v148_v56 }
 0x11b   :  { %v158_v58 = vmul.f32 %v4983_v57, %v4983_v57 }
 0x11d   :  { %v138_v59 = vpop.xlane.xlu2 %137  ;;  %v167_v60 = vsel %vm122_vm2, %v158_v58, 0.0 }
 0x11e   :  { %v150_v61 = vmul.f32 %v4965_v44, %v138_v59  ;;  %168 = vadd.xlane.f32.xlu1 %v167_v60  ;;  %v134_v62 = vpop.xlane.xlu1 %133 }
 0x11f   :  { %v149_v63 = vmul.f32 %v4965_v44, %v134_v62 }
 0x120   :  { %v4991_v0 = vsub.f32 %v4956_v34, %v150_v61 }
 0x121   :  { %v4994_v1 = vsub.f32 %v4961_v36, %v149_v63 }
 0x122   :  { %v160_v2 = vmul.f32 %v4991_v0, %v4991_v0 }
 0x123   :  { %v159_v3 = vmul.f32 %v4994_v1, %v4994_v1 }
 0x124   :  { %v173_v4 = vsel %vm135_vm4, %v160_v2, 0.0 }
 0x125   :  { %174 = vadd.xlane.f32.xlu0 %v173_v4  ;;  %v170_v5 = vsel %vm122_vm2, %v159_v3, 0.0 }
 0x126   :  { %171 = vadd.xlane.f32.xlu2 %v170_v5 }
 0x181   :  { %v163_v9 = vpop.xlane.xlu2 %162 }
 0x182   :  { %v176_v10 = vmul.f32 %v163_v9, %v4965_v44 }
 0x184   :  { %v181_v11 = vadd.f32 1e-05, %v176_v10 }
 0x186   :  { %4623 = vrsqrt.f32 %v181_v11  ;;  %vm192_vm7 = vweird.f32 %v181_v11 }
 0x189   :  { %v166_v16 = vpop.xlane.xlu0 %165 }
 0x18a   :  { %v177_v17 = vmul.f32 %v166_v16, %v4965_v44 }
 0x18c   :  { %v4624_v18 = vpop.eup %4623  ;;  %v182_v20 = vadd.f32 1e-05, %v177_v17 }
 0x18d   :  { %v187_v21 = vmul.f32 %v4624_v18, %v181_v11  ;;  %vm193_vm6 = vweird.f32 %v4624_v18 }
 0x18e   :  { %4625 = vrsqrt.f32 %v182_v20  ;;  %vm194_vm8 = vmor %vm192_vm7, %vm193_vm6  ;;  %vm202_vm10 = vweird.f32 %v182_v20 }
 0x18f   :  { %v188_v22 = vmul.f32 %v4624_v18, %v187_v21 }
 0x191   :  { %v189_v23 = vmul.f32 0.5, %v188_v22  ;;  %v169_v24 = vpop.xlane.xlu1 %168 }
 0x192   :  { %v178_v25 = vmul.f32 %v169_v24, %v4965_v44 }
 0x193   :  { %v190_v26 = vsub.f32 1.5, %v189_v23 }
 0x194   :  { %v4626_v27 = vpop.eup %4625  ;;  %v183_v29 = vadd.f32 1e-05, %v178_v25 }
 0x195   :  { %v191_v30 = vmul.f32 %v4624_v18, %v190_v26  ;;  %v197_v31 = vmul.f32 %v4626_v27, %v182_v20  ;;  %vm203_vm9 = vweird.f32 %v4626_v27 }
 0x196   :  { %4627 = vrsqrt.f32 %v183_v29  ;;  %vm204_vm11 = vmor %vm202_vm10, %vm203_vm9  ;;  %vm212_vm13 = vweird.f32 %v183_v29  ;;  %vm446_vm9 = vcmask 277504   ;;  %vm459_vm10 = vcmask 271360  }
 0x197   :  { %v198_v32 = vmul.f32 %v4626_v27, %v197_v31  ;;  %v195_v35 = vsel %vm194_vm8, %v4624_v18, %v191_v30  ;;  %vm394_vm8 = vcmask 64512  }
 0x198   :  { %v175_v33 = vpop.xlane.xlu0 %174  ;;  %v236_v46 = vmul.f32 %v195_v35, %v4969_v47 }
 0x199   :  { %v199_v37 = vmul.f32 0.5, %v198_v32  ;;  %v180_v38 = vmul.f32 %v175_v33, %v4965_v44  ;;  %v172_v39 = vpop.xlane.xlu2 %171 }
 0x19a   :  { %v179_v40 = vmul.f32 %v172_v39, %v4965_v44  ;;  %v242_v55 = vmul.f32 %v4580_v45, %v236_v46 }
 0x19b   :  { %v200_v41 = vsub.f32 1.5, %v199_v37  ;;  %v185_v42 = vadd.f32 1e-05, %v180_v38 }
 0x19c   :  { %v4628_v43 = vpop.eup %4627  ;;  %v184_v48 = vadd.f32 1e-05, %v179_v40  ;;  %v248_v62 = vadd.f32 %v4581_v54, %v242_v55 }
 0x19d   :  { %v201_v49 = vmul.f32 %v4626_v27, %v200_v41  ;;  %v207_v50 = vmul.f32 %v4628_v43, %v183_v29  ;;  %4629 = vrsqrt.f32 %v185_v42  ;;  %vm213_vm12 = vweird.f32 %v4628_v43 }
 0x19e   :  { %4631 = vrsqrt.f32 %v184_v48  ;;  %vm214_vm14 = vmor %vm212_vm13, %vm213_vm12  ;;  %vm222_vm0 = vweird.f32 %v184_v48  ;;  %vm232_vm6 = vweird.f32 %v185_v42 }
 0x19f   :  { %v205_v51 = vsel %vm204_vm11, %v4626_v27, %v201_v49  ;;  %v208_v53 = vmul.f32 %v4628_v43, %v207_v50  ;;  %vm837_vm11 = vcmask 1043456  }
 0x1a0   :  { %v237_v56 = vmul.f32 %v205_v51, %v4976_v52 }
 0x1a1   :  { %v209_v58 = vmul.f32 0.5, %v208_v53 }
 0x1a2   :  { %v243_v59 = vmul.f32 %v4580_v45, %v237_v56 }
 0x1a3   :  { %v4630_v60 = vpop.eup %4629  ;;  %v210_v47 = vsub.f32 1.5, %v209_v58 }
 0x1a4   :  { %v4632_v61 = vpop.eup %4631  ;;  %v249_v63 = vadd.f32 %v4581_v54, %v243_v59  ;;  %v227_v2 = vmul.f32 %v4630_v60, %v185_v42  ;;  %vm233_vm5 = vweird.f32 %v4630_v60  ;;  %v4583_v42 = vld [vmem:[%s6504_s2 + $0x4d] ss:$0 sm:$0xff] }
 0x1a5   :  { %v211_v3 = vmul.f32 %v4628_v43, %v210_v47  ;;  %v217_v4 = vmul.f32 %v4632_v61, %v184_v48  ;;  %vm223_vm15 = vweird.f32 %v4632_v61  ;;  %vm234_vm7 = vmor %vm232_vm6, %vm233_vm5 }
 0x1a6   :  { %v5033_v5 = vpack.c.bf16 %v249_v63, %v248_v62  ;;  %v228_v6 = vmul.f32 %v4630_v60, %v227_v2  ;;  %vm224_vm3 = vmor %vm222_vm0, %vm223_vm15 }
 0x1a7   :  { %v218_v7 = vmul.f32 %v4632_v61, %v217_v4  ;;  %v215_v52 = vsel %vm214_vm14, %v4628_v43, %v211_v3  ;;  %v4584_v43 = vld [vmem:[%s6504_s2 + $0x4e] ss:$0 sm:$0xff] }
 0x1a8   :  { %4063 = vmatmul.msk.bf16.vlgmr.msra.gmra.mxu1 %vm122_vm2, %v5033_v5  ;;  %4074 = vmatmul.msk.bf16.vlgmr.msra.gmra.mxu2 %vm122_vm2, %v5033_v5  ;;  %v229_v9 = vmul.f32 0.5, %v228_v6  ;;  %v238_v11 = vmul.f32 %v215_v52, %v4983_v57 }
 0x1a9   :  { %v219_v8 = vmul.f32 0.5, %v218_v7  ;;  %4085 = vmatmul.msk.bf16.vlgmr.msra.gmra.mxu3 %vm122_vm2, %v5033_v5 }
 0x1aa   :  { %v230_v14 = vsub.f32 1.5, %v229_v9  ;;  %v244_v16 = vmul.f32 %v4580_v45, %v238_v11  ;;  %v4508_v9 = vld [vmem:[%s6503_s1 + $0x50] sm:$0xff] }
 0x1ab   :  { %v220_v10 = vsub.f32 1.5, %v219_v8  ;;  %v4512_v11 = vld [vmem:[%s6503_s1 + $0x70] sm:$0xff] }
 0x1ac   :  { %v231_v20 = vmul.f32 %v4630_v60, %v230_v14  ;;  %v250_v21 = vadd.f32 %v4581_v54, %v244_v16 }
 0x1ad   :  { %v221_v13 = vmul.f32 %v4632_v61, %v220_v10  ;;  %v4510_v10 = vld [vmem:[%s6503_s1 + $0x60] sm:$0xff] }
 0x1ae   :  { %v235_v24 = vsel %vm234_vm7, %v4630_v60, %v231_v20  ;;  %v4509_v20 = vld [vmem:[%s6503_s1 + $0x58] sm:$0xff] }
 0x1af   :  { %v225_v15 = vsel %vm224_vm3, %v4632_v61, %v221_v13  ;;  %v240_v57 = vmul.f32 %v235_v24, %v4991_v0  ;;  %v4582_v13 = vld [vmem:[%s6504_s2 + $0x4c] ss:$0 sm:$0xff] }
 0x1b0   :  { %v239_v17 = vmul.f32 %v225_v15, %v4994_v1 }
 0x1b1   :  { %v246_v1 = vmul.f32 %v4580_v45, %v240_v57 }
 0x1b2   :  { %v245_v18 = vmul.f32 %v4580_v45, %v239_v17  ;;  %v4507_v17 = vld [vmem:[%s6503_s1 + $0x48] sm:$0xff] }
 0x1b3   :  { %v252_v25 = vadd.f32 %v4581_v54, %v246_v1 }
 0x1b4   :  { %v251_v22 = vadd.f32 %v4581_v54, %v245_v18 }
 0x1b5   :  { %v5052_v26 = vpack.c.bf16 %v252_v25, %v252_v25 }
 0x1b6   :  { %v5043_v23 = vpack.c.bf16 %v251_v22, %v250_v21  ;;  %v4511_v21 = vld [vmem:[%s6503_s1 + $0x68] sm:$0xff] }
 0x1b8   :  { %4064 = vmatmul.msk.bf16.gmra.mxu1 %vm122_vm2, %v5043_v23  ;;  %4075 = vmatmul.msk.bf16.gmra.mxu2 %vm122_vm2, %v5043_v23 }
 0x1b9   :  { %4086 = vmatmul.msk.bf16.gmra.mxu3 %vm122_vm2, %v5043_v23 }
 0x1c8   :  { %4065 = vmatmul.msk.bf16.gmra.mxu1 %vm122_vm2, %v5052_v26  ;;  %4076 = vmatmul.msk.bf16.gmra.mxu2 %vm122_vm2, %v5052_v26 }
 0x1c9   :  { %4087 = vmatmul.msk.bf16.gmra.mxu3 %vm122_vm2, %v5052_v26 }
 0x225   :  { %v5060_v27 = vpop.f32.mrf.mxu1 }
 0x226   :  { %v293_v22 = vadd.f32 %v4582_v13, %v5060_v27 }
 0x22b   :  { %v333_v29 = vpop.f32.mrf.mxu2 }
 0x22c   :  { %v374_v30 = vpop.f32.mrf.mxu3  ;;  %v334_v52 = vadd.f32 %v4583_v42, %v333_v29  ;;  %v5118_v29 = vld [vmem:[%s6504_s2 + $0x28] sm:$0xff] }
 0x22d   :  { %v294_v31 = vpop.f32.mrf.mxu1  ;;  %v375_v3 = vadd.f32 %v4584_v43, %v374_v30 }
 0x22e   :  { %v295_v15 = vadd.f32 %v4582_v13, %v294_v31 }
 0x230   :  { %v388_v57 = vpack.c.bf16 %v295_v15, %v293_v22  ;;  %v4587_v15 = vld [vmem:[%s6504_s2 + $0x50] ss:$0 sm:$0xff] }
 0x233   :  { %v335_v32 = vpop.f32.mrf.mxu2 }
 0x234   :  { %v376_v0 = vpop.f32.mrf.mxu3  ;;  %v336_v4 = vadd.f32 %v4583_v42, %v335_v32 }
 0x235   :  { %v297_v33 = vpop.f32.mrf.mxu1  ;;  %v377_v61 = vadd.f32 %v4584_v43, %v376_v0 }
 0x236   :  { %v391_v8 = vpack.c.bf16 %v336_v4, %v334_v52  ;;  %v298_v24 = vadd.f32 %v4582_v13, %v297_v33  ;;  %v5128_v33 = vld [vmem:[%s6504_s2 + $0x38] sm:$0xff]  ;;  %v4585_v52 = vld [vmem:[%s6504_s2 + $0x51] ss:$0 sm:$0xff] }
 0x237   :  { %v506_v7 = vpack.c.bf16 %v377_v61, %v375_v3 }
 0x238   :  { %v405_v14 = vsel %vm394_vm8, %v391_v8, 0 }
 0x23b   :  { %v338_v35 = vpop.f32.mrf.mxu2 }
 0x23c   :  { %v379_v37 = vpop.f32.mrf.mxu3  ;;  %v339_v59 = vadd.f32 %v4583_v42, %v338_v35 }
 0x23d   :  { %v299_v38 = vpop.f32.mrf.mxu1  ;;  %v380_v60 = vadd.f32 %v4584_v43, %v379_v37 }
 0x23e   :  { %v300_v16 = vadd.f32 %v4582_v13, %v299_v38 }
 0x240   :  { %v389_v1 = vpack.c.bf16 %v300_v16, %v298_v24 }
 0x243   :  { %v340_v39 = vpop.f32.mrf.mxu2 }
 0x244   :  { %v381_v40 = vpop.f32.mrf.mxu3  ;;  %v341_v54 = vadd.f32 %v4583_v42, %v340_v39  ;;  %v5133_v39 = vld [vmem:[%s6504_s2 + $0x30] sm:$0xff] }
 0x245   :  { %v302_v41 = vpop.f32.mrf.mxu1  ;;  %v382_v55 = vadd.f32 %v4584_v43, %v381_v40 }
 0x246   :  { %v392_v2 = vpack.c.bf16 %v341_v54, %v339_v59  ;;  %v303_v18 = vadd.f32 %v4582_v13, %v302_v41 }
 0x247   :  { %v507_v63 = vpack.c.bf16 %v382_v55, %v380_v60 }
 0x248   :  { %v408_v6 = vsel %vm394_vm8, %v392_v2, 0  ;;  %v390_v25 = vpack.c.bf16 %v303_v18, %v303_v18 }
 0x24b   :  { %v343_v45 = vpop.f32.mrf.mxu2 }
 0x24c   :  { %v344_v46 = vadd.f32 %v4583_v42, %v343_v45  ;;  %v384_v48 = vpop.f32.mrf.mxu3 }
 0x24d   :  { %v385_v49 = vadd.f32 %v4584_v43, %v384_v48  ;;  %v304_v50 = vpop.f32.mrf.mxu1 }
 0x24e   :  { %v393_v51 = vpack.c.bf16 %v344_v46, %v344_v46  ;;  %v5153_v50 = vld [vmem:[%s6504_s2 + $0x48] sm:$0x3] }
 0x24f   :  { %v508_v53 = vpack.c.bf16 %v385_v49, %v385_v49  ;;  %v5148_v49 = vld [vmem:[%s6504_s2 + $0x40] sm:$0xff] }
 0x250   :  { %v411_v56 = vsel %vm394_vm8, %v393_v51, 0 }
 0x251   :  { %418 = vmatpush.bf16.xpose.msrb.mxu0 %v411_v56  ;;  %4571 = vmatpush.bf16.xpose.msrb.mxu2 %v411_v56  ;;  %v519_v58 = vsel %vm93_vm1, %v508_v53, 0 }
 0x252   :  { %4572 = vmatpush.bf16.xpose.msrb.mxu3 %v411_v56  ;;  %526 = vmatpush.bf16.msrb.mxu1 %v519_v58 }
 0x253   :  { %v345_v47 = vpop.f32.mrf.mxu2 }
 0x254   :  { %v386_v62 = vpop.f32.mrf.mxu3 }
 0x256   :  { %527 = vmatpush.bf16.msrb.mxu1 %v507_v63 }
 0x259   :  { %419 = vmatpush.bf16.xpose.msrb.mxu0 %v408_v6  ;;  %4573 = vmatpush.bf16.xpose.msrb.mxu2 %v408_v6 }
 0x25a   :  { %4574 = vmatpush.bf16.xpose.msrb.mxu3 %v408_v6  ;;  %528 = vmatpush.bf16.msrb.mxu1 %v506_v7 }
 0x261   :  { %420 = vmatpush.bf16.xpose.msrb.mxu0 %v405_v14  ;;  %4575 = vmatpush.bf16.xpose.msrb.mxu2 %v405_v14 }
 0x262   :  { %4576 = vmatpush.bf16.xpose.msrb.mxu3 %v405_v14 }
 0x268   :  { %4088 = vmatmul.msk.bf16.vlgmr.msrb.gmra.mxu0 %vm394_vm8, %v388_v57  ;;  %4089 = vmatmul.msk.bf16.vlgmr.msrb.gmra.mxu2 %vm394_vm8, %v389_v1 }
 0x269   :  { %572 = vmatpush.bf16.msra.mxu2 %v4508_v9  ;;  %654 = vmatpush.bf16.msra.mxu0 %v4512_v11 }
 0x26a   :  { %613 = vmatpush.bf16.msra.mxu3 %v4510_v10 }
 0x26b   :  { %4090 = vmatmul.msk.bf16.vlgmr.msrb.gmra.mxu3 %vm394_vm8, %v390_v25 }
 0x26d   :  { %573 = vmatpush.bf16.msra.mxu2 %v4507_v17  ;;  %655 = vmatpush.bf16.msra.mxu0 %v4511_v21 }
 0x26e   :  { %614 = vmatpush.bf16.msra.mxu3 %v4509_v20 }
 0x278   :  { %4102 = vmatmul.msk.bf16.vlgmr.msra.gmra.mxu2 %vm122_vm2, %v5033_v5  ;;  %4124 = vmatmul.msk.bf16.vlgmr.msra.gmra.mxu0 %vm122_vm2, %v5033_v5 }
 0x27b   :  { %4113 = vmatmul.msk.bf16.vlgmr.msra.gmra.mxu3 %vm122_vm2, %v5033_v5 }
 0x288   :  { %4103 = vmatmul.msk.bf16.gmra.mxu2 %vm122_vm2, %v5043_v23  ;;  %4125 = vmatmul.msk.bf16.gmra.mxu0 %vm122_vm2, %v5043_v23 }
 0x28b   :  { %4114 = vmatmul.msk.bf16.gmra.mxu3 %vm122_vm2, %v5043_v23 }
 0x298   :  { %4104 = vmatmul.msk.bf16.gmra.mxu2 %vm122_vm2, %v5052_v26  ;;  %4126 = vmatmul.msk.bf16.gmra.mxu0 %vm122_vm2, %v5052_v26 }
 0x29b   :  { %4115 = vmatmul.msk.bf16.gmra.mxu3 %vm122_vm2, %v5052_v26 }
 0x2e5   :  { %v422_v27 = vpop.f32.mrf.mxu0 }
 0x2e6   :  { %v436_v30 = vmul.f32 0.35355338, %v422_v27 }
 0x2e8   :  { %v5121_v31 = vadd.f32 %v436_v30, %v5118_v29 }
 0x2ea   :  { %v447_v32 = vsel %vm446_vm9, %v5121_v31, -inf }
 0x2eb   :  { %v427_v0 = vpop.f32.mrf.mxu2  ;;  %448 = vmax.xlane.f32.xlu1 %v447_v32 }
 0x2ec   :  { %v438_v35 = vmul.f32 0.35355338, %v427_v0 }
 0x2ed   :  { %v424_v38 = vpop.f32.mrf.mxu0 }
 0x2ee   :  { %v432_v37 = vpop.f32.mrf.mxu3  ;;  %v437_v40 = vmul.f32 0.35355338, %v424_v38  ;;  %v5136_v41 = vadd.f32 %v438_v35, %v5128_v33 }
 0x2ef   :  { %v440_v45 = vmul.f32 0.35355338, %v432_v37 }
 0x2f0   :  { %v453_v42 = vsel %vm446_vm9, %v5136_v41, -inf  ;;  %v5141_v43 = vadd.f32 %v437_v40, %v5133_v39 }
 0x2f1   :  { %454 = vmax.xlane.f32.xlu0 %v453_v42  ;;  %v5159_v56 = vadd.f32 %v440_v45, %v5153_v50 }
 0x2f2   :  { %v450_v46 = vsel %vm446_vm9, %v5141_v43, -inf }
 0x2f3   :  { %v429_v48 = vpop.f32.mrf.mxu2  ;;  %451 = vmax.xlane.f32.xlu2 %v450_v46  ;;  %v460_v59 = vsel %vm459_vm10, %v5159_v56, -inf }
 0x2f4   :  { %v439_v51 = vmul.f32 0.35355338, %v429_v48 }
 0x2f5   :  { %v657_v54 = vpop.f32.mrf.mxu0 }
 0x2f6   :  { %v434_v53 = vpop.f32.mrf.mxu3  ;;  %v5156_v55 = vadd.f32 %v439_v51, %v5148_v49  ;;  %v658_v57 = vadd.f32 %v4585_v52, %v657_v54 }
 0x2f8   :  { %v456_v58 = vsel %vm446_vm9, %v5156_v55, -inf }
 0x2f9   :  { %457 = vmax.xlane.f32.xlu1 %v456_v58 }
 0x2fb   :  { %v5165_v60 = vpop.f32.mrf.mxu2  ;;  %461 = vmax.xlane.f32.xlu2 %v460_v59 }
 0x2fd   :  { %v659_v61 = vpop.f32.mrf.mxu0 }
 0x2fe   :  { %v616_v47 = vpop.f32.mrf.mxu3  ;;  %v660_v20 = vadd.f32 %v4585_v52, %v659_v61 }
 0x2ff   :  { %v617_v42 = vadd.f32 %v4587_v15, %v616_v47 }
 0x300   :  { %v786_v25 = vpack.c.bf16 %v660_v20, %v658_v57 }
 0x303   :  { %v5167_v62 = vpop.f32.mrf.mxu2 }
 0x305   :  { %v662_v2 = vpop.f32.mrf.mxu0 }
 0x306   :  { %v618_v63 = vpop.f32.mrf.mxu3  ;;  %v663_v16 = vadd.f32 %v4585_v52, %v662_v2 }
 0x307   :  { %v619_v38 = vadd.f32 %v4587_v15, %v618_v63 }
 0x309   :  { %v674_v45 = vpack.c.bf16 %v619_v38, %v617_v42 }
 0x30b   :  { %v5169_v3 = vpop.f32.mrf.mxu2  ;;  %v687_v46 = vsel %vm394_vm8, %v674_v45, 0  ;;  %v4586_v45 = vld [vmem:[%s6504_s2 + $0x4f] ss:$0 sm:$0xff] }
 0x30d   :  { %v664_v6 = vpop.f32.mrf.mxu0 }
 0x30e   :  { %v621_v4 = vpop.f32.mrf.mxu3  ;;  %v665_v13 = vadd.f32 %v4585_v52, %v664_v6 }
 0x30f   :  { %v622_v32 = vadd.f32 %v4587_v15, %v621_v4 }
 0x310   :  { %v787_v21 = vpack.c.bf16 %v665_v13, %v663_v16 }
 0x313   :  { %v5171_v7 = vpop.f32.mrf.mxu2 }
 0x315   :  { %v667_v9 = vpop.f32.mrf.mxu0 }
 0x316   :  { %v623_v8 = vpop.f32.mrf.mxu3  ;;  %v668_v10 = vadd.f32 %v4585_v52, %v667_v9 }
 0x317   :  { %v624_v27 = vadd.f32 %v4587_v15, %v623_v8 }
 0x318   :  { %v788_v11 = vpack.c.bf16 %v668_v10, %v668_v10 }
 0x319   :  { %v675_v37 = vpack.c.bf16 %v624_v27, %v622_v32 }
 0x31a   :  { %v799_v14 = vsel %vm93_vm1, %v788_v11, 0 }
 0x31b   :  { %v5180_v17 = vpop.f32.mrf.mxu2  ;;  %806 = vmatpush.bf16.msrb.mxu2 %v799_v14  ;;  %v690_v40 = vsel %vm394_vm8, %v675_v37, 0 }
 0x31d   :  { %v669_v24 = vpop.f32.mrf.mxu0 }
 0x31e   :  { %v626_v18 = vpop.f32.mrf.mxu3 }
 0x31f   :  { %v627_v22 = vadd.f32 %v4587_v15, %v626_v18  ;;  %807 = vmatpush.bf16.msrb.mxu2 %v787_v21 }
 0x321   :  { %v676_v1 = vpack.c.bf16 %v627_v22, %v627_v22 }
 0x323   :  { %v693_v30 = vsel %vm394_vm8, %v676_v1, 0  ;;  %v587_v0 = vpop.f32.mrf.mxu2  ;;  %808 = vmatpush.bf16.msrb.mxu2 %v786_v25 }
 0x324   :  { %700 = vmatpush.bf16.xpose.msra.mxu1 %v693_v30 }
 0x326   :  { %v628_v35 = vpop.f32.mrf.mxu3 }
 0x32c   :  { %701 = vmatpush.bf16.xpose.msra.mxu1 %v690_v40 }
 0x334   :  { %702 = vmatpush.bf16.xpose.msra.mxu1 %v687_v46  ;;  %v578_v46 = vadd.f32 %v4586_v45, %v5167_v62 }
 0x35e   :  { %v449_v48 = vpop.xlane.xlu1 %448 }
 0x35f   :  { %v463_v51 = vsub.f32 %v5121_v31, %v449_v48  ;;  %v576_v48 = vadd.f32 %v4586_v45, %v5165_v60  ;;  %v586_v60 = vadd.f32 %v4586_v45, %v5180_v17 }
 0x361   :  { %v468_v53 = vmul.f32 1.442695, %v463_v51  ;;  %v671_v51 = vpack.c.bf16 %v578_v46, %v576_v48 }
 0x363   :  { %4633 = vpow2.f32 %v468_v53  ;;  %v4514_v53 = vld [vmem:[%s6503_s1 + $0x80] sm:$0xff] }
 0x364   :  { %v455_v54 = vpop.xlane.xlu0 %454 }
 0x365   :  { %v465_v58 = vsub.f32 %v5136_v41, %v455_v54  ;;  %v4513_v54 = vld [vmem:[%s6503_s1 + $0x78] sm:$0xff] }
 0x366   :  { %v452_v59 = vpop.xlane.xlu2 %451 }
 0x367   :  { %v472_v61 = vmul.f32 1.442695, %v465_v58  ;;  %v464_v63 = vsub.f32 %v5141_v43, %v452_v59  ;;  %v583_v58 = vadd.f32 %v4586_v45, %v5171_v7  ;;  %v581_v59 = vadd.f32 %v4586_v45, %v5169_v3 }
 0x369   :  { %v4634_v2 = vpop.eup %4633  ;;  %4635 = vpow2.f32 %v472_v61  ;;  %v470_v4 = vmul.f32 1.442695, %v464_v63  ;;  %v672_v62 = vpack.c.bf16 %v583_v58, %v581_v59  ;;  %v673_v61 = vpack.c.bf16 %v586_v60, %v586_v60  ;;  %v547_v63 = vld [vmem:[%s6503_s1 + $0xd8] sm:$0xf] }
 0x36a   :  { %v478_v47 = vsel %vm446_vm9, %v4634_v2, 0.0  ;;  %v874_v7 = vsel %vm837_vm11, %v547_v63, 0 }
 0x36b   :  { %4637 = vpow2.f32 %v470_v4  ;;  %479 = vadd.xlane.f32.xlu0 %v478_v47  ;;  %883 = vmatpush.bf16.msrb.mxu0 %v874_v7 }
 0x36c   :  { %v458_v6 = vpop.xlane.xlu1 %457 }
 0x36d   :  { %v466_v52 = vsub.f32 %v5156_v55, %v458_v6 }
 0x36e   :  { %v462_v31 = vpop.xlane.xlu2 %461 }
 0x36f   :  { %v4636_v8 = vpop.eup %4635  ;;  %v474_v9 = vmul.f32 1.442695, %v466_v52  ;;  %v467_v10 = vsub.f32 %v5159_v56, %v462_v31 }
 0x370   :  { %v484_v41 = vsel %vm446_vm9, %v4636_v8, 0.0 }
 0x371   :  { %v4638_v11 = vpop.eup %4637  ;;  %4639 = vpow2.f32 %v474_v9  ;;  %v476_v43 = vmul.f32 1.442695, %v467_v10  ;;  %485 = vadd.xlane.f32.xlu2 %v484_v41 }
 0x372   :  { %v481_v13 = vsel %vm446_vm9, %v4638_v11, 0.0 }
 0x373   :  { %4641 = vpow2.f32 %v476_v43  ;;  %482 = vadd.xlane.f32.xlu1 %v481_v13 }
 0x377   :  { %v4640_v14 = vpop.eup %4639 }
 0x378   :  { %v487_v15 = vsel %vm446_vm9, %v4640_v14, 0.0 }
 0x379   :  { %v4642_v16 = vpop.eup %4641  ;;  %488 = vadd.xlane.f32.xlu0 %v487_v15 }
 0x37a   :  { %v490_v55 = vsel %vm459_vm10, %v4642_v16, 0.0 }
 0x37b   :  { %491 = vadd.xlane.f32.xlu1 %v490_v55 }
 0x3de   :  { %v480_v18 = vpop.xlane.xlu0 %479 }
 0x3df   :  { %4643 = vrcp.f32 %v480_v18 }
 0x3e4   :  { %v486_v25 = vpop.xlane.xlu2 %485 }
 0x3e5   :  { %v4644_v20 = vpop.eup %4643 }
 0x3e6   :  { %v483_v56 = vpop.xlane.xlu1 %482  ;;  %v498_v22 = vmul.f32 %v4644_v20, %v4634_v2 }
 0x3e7   :  { %4645 = vrcp.f32 %v483_v56 }
 0x3ec   :  { %v489_v57 = vpop.xlane.xlu0 %488 }
 0x3ed   :  { %v4646_v21 = vpop.eup %4645  ;;  %4647 = vrcp.f32 %v489_v57 }
 0x3ee   :  { %v499_v24 = vmul.f32 %v4646_v21, %v4638_v11  ;;  %4649 = vrcp.f32 %v486_v25  ;;  %v492_v35 = vpop.xlane.xlu1 %491 }
 0x3ef   :  { %4651 = vrcp.f32 %v492_v35 }
 0x3f0   :  { %v503_v1 = vpack.c.bf16 %v499_v24, %v498_v22 }
 0x3f2   :  { %4091 = vmatmul.msk.bf16.vlgmr.msrb.gmra.mxu1 %vm446_vm9, %v503_v1 }
 0x3f3   :  { %v4648_v27 = vpop.eup %4647  ;;  %923 = vmatpush.bf16.msrb.mxu1 %v4514_v53 }
 0x3f4   :  { %v4650_v30 = vpop.eup %4649  ;;  %v501_v32 = vmul.f32 %v4648_v27, %v4640_v14 }
 0x3f5   :  { %v500_v0 = vmul.f32 %v4650_v30, %v4636_v8  ;;  %v4652_v38 = vpop.eup %4651 }
 0x3f6   :  { %v502_v40 = vmul.f32 %v4652_v38, %v4642_v16 }
 0x3f7   :  { %v504_v37 = vpack.c.bf16 %v501_v32, %v500_v0  ;;  %924 = vmatpush.bf16.msrb.mxu1 %v4513_v54 }
 0x3f8   :  { %v505_v42 = vpack.c.bf16 %v502_v40, %v502_v40 }
 0x402   :  { %4092 = vmatmul.msk.bf16.gmra.mxu1 %vm446_vm9, %v504_v37 }
 0x412   :  { %4093 = vmatmul.msk.bf16.gmra.mxu1 %vm446_vm9, %v505_v42 }
 0x422   :  { %4127 = vmatmul.msk.bf16.vlgmr.msra.gmra.mxu1 %vm394_vm8, %v671_v51 }
 0x432   :  { %4128 = vmatmul.msk.bf16.gmra.mxu1 %vm394_vm8, %v672_v62 }
 0x442   :  { %4129 = vmatmul.msk.bf16.gmra.mxu1 %vm394_vm8, %v673_v61 }
 0x452   :  { %4147 = vmatmul.msk.bf16.vlgmr.msrb.gmra.mxu1 %vm122_vm2, %v5033_v5 }
 0x462   :  { %4148 = vmatmul.msk.bf16.gmra.mxu1 %vm122_vm2, %v5043_v23 }
 0x46f   :  { %v530_v3 = vpop.f32.mrf.mxu1 }
 0x472   :  { %4149 = vmatmul.msk.bf16.gmra.mxu1 %vm122_vm2, %v5052_v26 }
 0x477   :  { %v532_v17 = vpop.f32.mrf.mxu1 }
 0x478   :  { %v544_v2 = vpack.c.bf16 %v532_v17, %v530_v3 }
 0x47a   :  { %4136 = vmatmul.msk.bf16.vlgmr.msrb.gmra.mxu0 %vm394_vm8, %v544_v2 }
 0x47f   :  { %v535_v4 = vpop.f32.mrf.mxu1 }
 0x487   :  { %v537_v47 = vpop.f32.mrf.mxu1 }
 0x488   :  { %v545_v6 = vpack.c.bf16 %v537_v47, %v535_v4 }
 0x48a   :  { %4137 = vmatmul.msk.bf16.gmra.mxu0 %vm394_vm8, %v545_v6 }
 0x48f   :  { %v540_v52 = vpop.f32.mrf.mxu1 }
 0x490   :  { %v546_v8 = vpack.c.bf16 %v540_v52, %v540_v52 }
 0x497   :  { %v542_v31 = vpop.f32.mrf.mxu1 }
 0x49a   :  { %4138 = vmatmul.msk.bf16.gmra.mxu0 %vm394_vm8, %v546_v8 }
 0x49f   :  { %v704_v9 = vpop.f32.mrf.mxu1 }
 0x4a0   :  { %v718_v10 = vmul.f32 0.35355338, %v704_v9 }
 0x4a2   :  { %v723_v41 = vadd.f32 %v718_v10, %v5118_v29 }
 0x4a4   :  { %v728_v11 = vsel %vm446_vm9, %v723_v41, -inf }
 0x4a5   :  { %729 = vmax.xlane.f32.xlu2 %v728_v11 }
 0x4a7   :  { %v706_v43 = vpop.f32.mrf.mxu1 }
 0x4a8   :  { %v719_v13 = vmul.f32 0.35355338, %v706_v43 }
 0x4aa   :  { %v724_v14 = vadd.f32 %v719_v13, %v5133_v39 }
 0x4ac   :  { %v731_v15 = vsel %vm446_vm9, %v724_v14, -inf }
 0x4ad   :  { %732 = vmax.xlane.f32.xlu0 %v731_v15 }
 0x4af   :  { %v709_v16 = vpop.f32.mrf.mxu1 }
 0x4b0   :  { %v720_v55 = vmul.f32 0.35355338, %v709_v16 }
 0x4b2   :  { %v725_v18 = vadd.f32 %v720_v55, %v5128_v33  ;;  %v4516_v55 = vld [vmem:[%s6503_s1 + $0x90] sm:$0xff] }
 0x4b3   :  { %964 = vmatpush.bf16.msra.mxu2 %v4516_v55 }
 0x4b4   :  { %v734_v56 = vsel %vm446_vm9, %v725_v18, -inf }
 0x4b5   :  { %735 = vmax.xlane.f32.xlu1 %v734_v56 }
 0x4b7   :  { %v711_v20 = vpop.f32.mrf.mxu1 }
 0x4b8   :  { %v721_v21 = vmul.f32 0.35355338, %v711_v20 }
 0x4ba   :  { %v726_v22 = vadd.f32 %v721_v21, %v5148_v49 }
 0x4bc   :  { %v737_v24 = vsel %vm446_vm9, %v726_v22, -inf }
 0x4bd   :  { %738 = vmax.xlane.f32.xlu2 %v737_v24 }
 0x4bf   :  { %v714_v57 = vpop.f32.mrf.mxu1 }
 0x4c0   :  { %v722_v1 = vmul.f32 0.35355338, %v714_v57 }
 0x4c2   :  { %v727_v25 = vadd.f32 %v722_v1, %v5153_v50  ;;  %v4515_v1 = vld [vmem:[%s6503_s1 + $0x88] sm:$0xff] }
 0x4c3   :  { %965 = vmatpush.bf16.msra.mxu2 %v4515_v1 }
 0x4c4   :  { %v740_v27 = vsel %vm459_vm10, %v727_v25, -inf }
 0x4c5   :  { %741 = vmax.xlane.f32.xlu0 %v740_v27 }
 0x4c7   :  { %v716_v30 = vpop.f32.mrf.mxu1 }
 0x4cf   :  { %v5238_v32 = vpop.f32.mrf.mxu1 }
 0x4d7   :  { %v5240_v0 = vpop.f32.mrf.mxu1 }
 0x4df   :  { %v5242_v35 = vpop.f32.mrf.mxu1 }
 0x4e7   :  { %v5244_v37 = vpop.f32.mrf.mxu1 }
 0x4ef   :  { %v5246_v38 = vpop.f32.mrf.mxu1 }
 0x4f7   :  { %v5248_v40 = vpop.f32.mrf.mxu0  ;;  %v938_v42 = vpop.f32.mrf.mxu1 }
 0x4ff   :  { %v5250_v45 = vpop.f32.mrf.mxu0 }
 0x507   :  { %v5252_v46 = vpop.f32.mrf.mxu0 }
 0x50f   :  { %v5254_v48 = vpop.f32.mrf.mxu0 }
 0x517   :  { %v5256_v51 = vpop.f32.mrf.mxu0 }
 0x518   :  { %v730_v53 = vpop.xlane.xlu2 %729 }
 0x519   :  { %v743_v54 = vsub.f32 %v723_v41, %v730_v53 }
 0x51b   :  { %v748_v58 = vmul.f32 1.442695, %v743_v54 }
 0x51d   :  { %4653 = vpow2.f32 %v748_v58 }
 0x51f   :  { %v897_v59 = vpop.f32.mrf.mxu0 }
 0x520   :  { %v733_v62 = vpop.xlane.xlu0 %732 }
 0x521   :  { %v744_v60 = vsub.f32 %v724_v14, %v733_v62 }
 0x523   :  { %v4654_v61 = vpop.eup %4653  ;;  %v750_v63 = vmul.f32 1.442695, %v744_v60 }
 0x524   :  { %v758_v7 = vsel %vm446_vm9, %v4654_v61, 0.0 }
 0x525   :  { %4655 = vpow2.f32 %v750_v63  ;;  %759 = vadd.xlane.f32.xlu1 %v758_v7 }
 0x528   :  { %v736_v3 = vpop.xlane.xlu1 %735 }
 0x529   :  { %v745_v17 = vsub.f32 %v725_v18, %v736_v3 }
 0x52b   :  { %v4656_v2 = vpop.eup %4655  ;;  %v752_v4 = vmul.f32 1.442695, %v745_v17 }
 0x52c   :  { %v761_v47 = vsel %vm446_vm9, %v4656_v2, 0.0 }
 0x52d   :  { %4657 = vpow2.f32 %v752_v4  ;;  %762 = vadd.xlane.f32.xlu2 %v761_v47  ;;  %v4518_v4 = vld [vmem:[%s6503_s1 + $0xa0] sm:$0xff]  ;;  %v4517_v47 = vld [vmem:[%s6503_s1 + $0x98] sm:$0xff] }
 0x530   :  { %v739_v6 = vpop.xlane.xlu2 %738 }
 0x531   :  { %v746_v52 = vsub.f32 %v726_v22, %v739_v6 }
 0x533   :  { %v4658_v31 = vpop.eup %4657  ;;  %v754_v8 = vmul.f32 1.442695, %v746_v52 }
 0x534   :  { %v764_v9 = vsel %vm446_vm9, %v4658_v31, 0.0 }
 0x535   :  { %4659 = vpow2.f32 %v754_v8  ;;  %765 = vadd.xlane.f32.xlu0 %v764_v9 }
 0x538   :  { %v742_v10 = vpop.xlane.xlu0 %741 }
 0x539   :  { %v747_v41 = vsub.f32 %v727_v25, %v742_v10 }
 0x53b   :  { %v4660_v11 = vpop.eup %4659  ;;  %v756_v43 = vmul.f32 1.442695, %v747_v41 }
 0x53c   :  { %v767_v13 = vsel %vm446_vm9, %v4660_v11, 0.0 }
 0x53d   :  { %4661 = vpow2.f32 %v756_v43  ;;  %768 = vadd.xlane.f32.xlu1 %v767_v13  ;;  %v4519_v13 = vld [vmem:[%s6503_s1 + $0xa8] sm:$0xff] }
 0x543   :  { %v4662_v14 = vpop.eup %4661 }
 0x544   :  { %v770_v15 = vsel %vm459_vm10, %v4662_v14, 0.0 }
 0x545   :  { %771 = vadd.xlane.f32.xlu2 %v770_v15  ;;  %v4589_v15 = vld [vmem:[%s6504_s2 + $0x53] ss:$0 sm:$0xff] }
 0x598   :  { %v760_v16 = vpop.xlane.xlu1 %759 }
 0x599   :  { %4663 = vrcp.f32 %v760_v16 }
 0x59f   :  { %v4664_v56 = vpop.eup %4663 }
 0x5a0   :  { %v763_v18 = vpop.xlane.xlu2 %762  ;;  %v778_v21 = vmul.f32 %v4664_v56, %v4654_v61  ;;  %v827_v61 = vld [vmem:[%s6503_s1 + $0xdc] sm:$0xf] }
 0x5a1   :  { %4665 = vrcp.f32 %v763_v18  ;;  %v839_v63 = vsel %vm837_vm11, %v827_v61, 0 }
 0x5a2   :  { %848 = vmatpush.bf16.msrb.mxu3 %v839_v63 }
 0x5a6   :  { %1005 = vmatpush.bf16.msra.mxu3 %v4518_v4 }
 0x5a7   :  { %v4666_v20 = vpop.eup %4665 }
 0x5a8   :  { %v779_v22 = vmul.f32 %v4666_v20, %v4656_v2  ;;  %v766_v57 = vpop.xlane.xlu0 %765 }
 0x5a9   :  { %4667 = vrcp.f32 %v766_v57 }
 0x5aa   :  { %v783_v24 = vpack.c.bf16 %v779_v22, %v778_v21  ;;  %1006 = vmatpush.bf16.msra.mxu3 %v4517_v47 }
 0x5ac   :  { %4130 = vmatmul.msk.bf16.vlgmr.msrb.gmra.mxu2 %vm446_vm9, %v783_v24 }
 0x5af   :  { %v4668_v27 = vpop.eup %4667 }
 0x5b0   :  { %v769_v25 = vpop.xlane.xlu1 %768  ;;  %v780_v42 = vmul.f32 %v4668_v27, %v4658_v31 }
 0x5b1   :  { %4669 = vrcp.f32 %v769_v25 }
 0x5b7   :  { %v4670_v30 = vpop.eup %4669 }
 0x5b8   :  { %v781_v53 = vmul.f32 %v4670_v30, %v4660_v11  ;;  %v772_v54 = vpop.xlane.xlu2 %771  ;;  %v4520_v11 = vld [vmem:[%s6503_s1 + $0xb0] sm:$0xff] }
 0x5b9   :  { %4671 = vrcp.f32 %v772_v54  ;;  %v4588_v30 = vld [vmem:[%s6504_s2 + $0x52] ss:$0 sm:$0xff] }
 0x5ba   :  { %v784_v58 = vpack.c.bf16 %v781_v53, %v780_v42  ;;  %v929_v53 = vadd.f32 %v4588_v30, %v5240_v0  ;;  %v927_v54 = vadd.f32 %v4588_v30, %v5238_v32  ;;  %v932_v0 = vadd.f32 %v4588_v30, %v5242_v35 }
 0x5bb   :  { %v937_v61 = vadd.f32 %v4588_v30, %v5246_v38 }
 0x5bc   :  { %4131 = vmatmul.msk.bf16.gmra.mxu2 %vm446_vm9, %v784_v58  ;;  %v1022_v58 = vpack.c.bf16 %v929_v53, %v927_v54 }
 0x5bd   :  { %v1024_v63 = vpack.c.bf16 %v937_v61, %v937_v61 }
 0x5bf   :  { %v4672_v59 = vpop.eup %4671 }
 0x5c0   :  { %v782_v62 = vmul.f32 %v4672_v59, %v4662_v14  ;;  %v4522_v59 = vld [vmem:[%s6503_s1 + $0xc0] sm:$0xff] }
 0x5c2   :  { %v785_v60 = vpack.c.bf16 %v782_v62, %v782_v62  ;;  %v934_v62 = vadd.f32 %v4588_v30, %v5244_v37 }
 0x5c4   :  { %v1023_v32 = vpack.c.bf16 %v934_v62, %v932_v0 }
 0x5cc   :  { %4132 = vmatmul.msk.bf16.gmra.mxu2 %vm446_vm9, %v785_v60  ;;  %v4521_v60 = vld [vmem:[%s6503_s1 + $0xb8] sm:$0xff] }
 0x5dc   :  { %4158 = vmatmul.msk.bf16.vlgmr.msra.gmra.mxu2 %vm122_vm2, %v5033_v5 }
 0x5ec   :  { %4159 = vmatmul.msk.bf16.gmra.mxu2 %vm122_vm2, %v5043_v23 }
 0x5fc   :  { %4160 = vmatmul.msk.bf16.gmra.mxu2 %vm122_vm2, %v5052_v26 }
 0x62f   :  { %v810_v7 = vpop.f32.mrf.mxu2 }
 0x637   :  { %v812_v3 = vpop.f32.mrf.mxu2 }
 0x638   :  { %v824_v17 = vpack.c.bf16 %v812_v3, %v810_v7 }
 0x63a   :  { %4133 = vmatmul.msk.bf16.vlgmr.msrb.gmra.mxu3 %vm394_vm8, %v824_v17 }
 0x63b   :  { %1243 = vmatpush.bf16.msrb.mxu3 %v4520_v11 }
 0x63f   :  { %v815_v2 = vpop.f32.mrf.mxu2  ;;  %1244 = vmatpush.bf16.msrb.mxu3 %v4519_v13 }
 0x647   :  { %v817_v6 = vpop.f32.mrf.mxu2 }
 0x648   :  { %v825_v52 = vpack.c.bf16 %v817_v6, %v815_v2 }
 0x64a   :  { %4134 = vmatmul.msk.bf16.gmra.mxu3 %vm394_vm8, %v825_v52  ;;  %v4590_v52 = vld [vmem:[%s6504_s2 + $0x54] ss:$0 sm:$0xff] }
 0x64f   :  { %v820_v31 = vpop.f32.mrf.mxu2 }
 0x650   :  { %v826_v9 = vpack.c.bf16 %v820_v31, %v820_v31 }
 0x657   :  { %v822_v8 = vpop.f32.mrf.mxu2 }
 0x65a   :  { %4135 = vmatmul.msk.bf16.gmra.mxu3 %vm394_vm8, %v826_v9 }
 0x65f   :  { %v967_v10 = vpop.f32.mrf.mxu2 }
 0x660   :  { %v968_v25 = vadd.f32 %v4589_v15, %v967_v10 }
 0x667   :  { %v969_v41 = vpop.f32.mrf.mxu2 }
 0x668   :  { %v970_v57 = vadd.f32 %v4589_v15, %v969_v41 }
 0x66a   :  { %4169 = vmatmul.msk.bf16.vlgmr.msra.gmra.mxu3 %vm122_vm2, %v5033_v5  ;;  %v1025_v27 = vpack.c.bf16 %v970_v57, %v968_v25 }
 0x66c   :  { %v1038_v42 = vsel %vm394_vm8, %v1025_v27, 0 }
 0x66f   :  { %v972_v43 = vpop.f32.mrf.mxu2 }
 0x670   :  { %v973_v21 = vadd.f32 %v4589_v15, %v972_v43 }
 0x677   :  { %v974_v14 = vpop.f32.mrf.mxu2 }
 0x678   :  { %v975_v56 = vadd.f32 %v4589_v15, %v974_v14 }
 0x67a   :  { %4170 = vmatmul.msk.bf16.gmra.mxu3 %vm122_vm2, %v5043_v23  ;;  %v1026_v24 = vpack.c.bf16 %v975_v56, %v973_v21 }
 0x67c   :  { %v1041_v1 = vsel %vm394_vm8, %v1026_v24, 0 }
 0x67f   :  { %v977_v16 = vpop.f32.mrf.mxu2 }
 0x680   :  { %v978_v55 = vadd.f32 %v4589_v15, %v977_v16 }
 0x682   :  { %v1027_v18 = vpack.c.bf16 %v978_v55, %v978_v55 }
 0x684   :  { %v1044_v20 = vsel %vm394_vm8, %v1027_v18, 0 }
 0x685   :  { %1051 = vmatpush.bf16.xpose.msra.mxu0 %v1044_v20 }
 0x687   :  { %v979_v22 = vpop.f32.mrf.mxu2 }
 0x68a   :  { %4171 = vmatmul.msk.bf16.gmra.mxu3 %vm122_vm2, %v5052_v26 }
 0x68d   :  { %1052 = vmatpush.bf16.xpose.msra.mxu0 %v1041_v1 }
 0x695   :  { %1053 = vmatpush.bf16.xpose.msra.mxu0 %v1038_v42 }
 0x69a   :  { %4189 = vmatmul.msk.bf16.vlgmr.msrb.gmra.mxu3 %vm122_vm2, %v5033_v5 }
 0x69c   :  { %4172 = vmatmul.msk.bf16.vlgmr.msra.gmra.mxu0 %vm394_vm8, %v1022_v58 }
 0x69d   :  { %1284 = vmatpush.bf16.msrb.mxu0 %v4522_v59 }
 0x6a1   :  { %1285 = vmatpush.bf16.msrb.mxu0 %v4521_v60 }
 0x6aa   :  { %4190 = vmatmul.msk.bf16.gmra.mxu3 %vm122_vm2, %v5043_v23 }
 0x6ac   :  { %4173 = vmatmul.msk.bf16.gmra.mxu0 %vm394_vm8, %v1023_v32 }
 0x6ba   :  { %4191 = vmatmul.msk.bf16.gmra.mxu3 %vm122_vm2, %v5052_v26 }
 0x6bc   :  { %4174 = vmatmul.msk.bf16.gmra.mxu0 %vm394_vm8, %v1024_v63 }
 0x6bd   :  { %v5332_v37 = vpop.f32.mrf.mxu3 }
 0x6c5   :  { %v5334_v7 = vpop.f32.mrf.mxu3 }
 0x6cc   :  { %4200 = vmatmul.msk.bf16.vlgmr.msrb.gmra.mxu0 %vm122_vm2, %v5033_v5 }
 0x6cd   :  { %v5338_v35 = vpop.f32.mrf.mxu3 }
 0x6d5   :  { %v5340_v3 = vpop.f32.mrf.mxu3 }
 0x6dc   :  { %4201 = vmatmul.msk.bf16.gmra.mxu0 %vm122_vm2, %v5043_v23 }
 0x6dd   :  { %v5344_v38 = vpop.f32.mrf.mxu3 }
 0x6e5   :  { %v862_v17 = vpop.f32.mrf.mxu3 }
 0x6ec   :  { %4202 = vmatmul.msk.bf16.gmra.mxu0 %vm122_vm2, %v5052_v26 }
 0x6ed   :  { %v1008_v2 = vpop.f32.mrf.mxu3 }
 0x6ee   :  { %v1009_v15 = vadd.f32 %v4590_v52, %v1008_v2 }
 0x6f5   :  { %v1010_v4 = vpop.f32.mrf.mxu3 }
 0x6f6   :  { %v1011_v43 = vadd.f32 %v4590_v52, %v1010_v4 }
 0x6f8   :  { %v1137_v16 = vpack.c.bf16 %v1011_v43, %v1009_v15 }
 0x6fd   :  { %v1013_v47 = vpop.f32.mrf.mxu3 }
 0x6fe   :  { %v1014_v11 = vadd.f32 %v4590_v52, %v1013_v47 }
 0x705   :  { %v1015_v6 = vpop.f32.mrf.mxu3 }
 0x706   :  { %v1016_v10 = vadd.f32 %v4590_v52, %v1015_v6 }
 0x708   :  { %v1138_v13 = vpack.c.bf16 %v1016_v10, %v1014_v11 }
 0x70d   :  { %v1018_v31 = vpop.f32.mrf.mxu3 }
 0x70e   :  { %v1019_v8 = vadd.f32 %v4590_v52, %v1018_v31 }
 0x710   :  { %v1139_v9 = vpack.c.bf16 %v1019_v8, %v1019_v8 }
 0x712   :  { %v1150_v41 = vsel %vm93_vm1, %v1139_v9, 0 }
 0x713   :  { %1157 = vmatpush.bf16.msra.mxu1 %v1150_v41 }
 0x715   :  { %v1020_v14 = vpop.f32.mrf.mxu3 }
 0x717   :  { %1158 = vmatpush.bf16.msra.mxu1 %v1138_v13 }
 0x719   :  { %v1055_v55 = vpop.f32.mrf.mxu0 }
 0x71a   :  { %v1069_v18 = vmul.f32 0.35355338, %v1055_v55 }
 0x71b   :  { %1159 = vmatpush.bf16.msra.mxu1 %v1137_v16 }
 0x71c   :  { %v1074_v56 = vadd.f32 %v1069_v18, %v5118_v29 }
 0x71d   :  { %v5353_v20 = vpop.f32.mrf.mxu3 }
 0x71e   :  { %v1079_v21 = vsel %vm446_vm9, %v1074_v56, -inf }
 0x71f   :  { %1080 = vmax.xlane.f32.xlu0 %v1079_v21 }
 0x721   :  { %v1057_v22 = vpop.f32.mrf.mxu0 }
 0x722   :  { %v1070_v24 = vmul.f32 0.35355338, %v1057_v22 }
 0x724   :  { %v1075_v57 = vadd.f32 %v1070_v24, %v5133_v39 }
 0x725   :  { %v5357_v1 = vpop.f32.mrf.mxu3 }
 0x726   :  { %v1082_v25 = vsel %vm446_vm9, %v1075_v57, -inf }
 0x727   :  { %1083 = vmax.xlane.f32.xlu1 %v1082_v25 }
 0x729   :  { %v1060_v27 = vpop.f32.mrf.mxu0 }
 0x72a   :  { %v1071_v30 = vmul.f32 0.35355338, %v1060_v27 }
 0x72c   :  { %v1076_v42 = vadd.f32 %v1071_v30, %v5128_v33 }
 0x72d   :  { %v5361_v53 = vpop.f32.mrf.mxu3 }
 0x72e   :  { %v1085_v29 = vsel %vm446_vm9, %v1076_v42, -inf }
 0x72f   :  { %1086 = vmax.xlane.f32.xlu2 %v1085_v29 }
 0x731   :  { %v1062_v54 = vpop.f32.mrf.mxu0 }
 0x732   :  { %v1072_v58 = vmul.f32 0.35355338, %v1062_v54 }
 0x734   :  { %v1077_v59 = vadd.f32 %v1072_v58, %v5148_v49  ;;  %v1178_v49 = vld [vmem:[%s6503_s1 + $0xe0] sm:$0xf] }
 0x735   :  { %v5365_v62 = vpop.f32.mrf.mxu3  ;;  %v1189_v4 = vsel %vm837_vm11, %v1178_v49, 0 }
 0x736   :  { %v1088_v39 = vsel %vm446_vm9, %v1077_v59, -inf  ;;  %1198 = vmatpush.bf16.msrb.mxu2 %v1189_v4 }
 0x737   :  { %1089 = vmax.xlane.f32.xlu0 %v1088_v39 }
 0x739   :  { %v1065_v60 = vpop.f32.mrf.mxu0 }
 0x73a   :  { %v1073_v0 = vmul.f32 0.35355338, %v1065_v60 }
 0x73c   :  { %v1078_v32 = vadd.f32 %v1073_v0, %v5153_v50  ;;  %v4592_v50 = vld [vmem:[%s6504_s2 + $0x56] ss:$0 sm:$0xff] }
 0x73d   :  { %v5369_v61 = vpop.f32.mrf.mxu3 }
 0x73e   :  { %v1091_v33 = vsel %vm459_vm10, %v1078_v32, -inf }
 0x73f   :  { %1092 = vmax.xlane.f32.xlu1 %v1091_v33 }
 0x741   :  { %v1067_v63 = vpop.f32.mrf.mxu0 }
 0x745   :  { %v1258_v17 = vpop.f32.mrf.mxu3 }
 0x749   :  { %v1287_v2 = vpop.f32.mrf.mxu0 }
 0x74a   :  { %v1288_v16 = vadd.f32 %v4592_v50, %v1287_v2 }
 0x751   :  { %v1289_v47 = vpop.f32.mrf.mxu0 }
 0x752   :  { %v1290_v14 = vadd.f32 %v4592_v50, %v1289_v47 }
 0x754   :  { %v1345_v55 = vpack.c.bf16 %v1290_v14, %v1288_v16 }
 0x756   :  { %v1358_v18 = vsel %vm394_vm8, %v1345_v55, 0 }
 0x759   :  { %v1292_v6 = vpop.f32.mrf.mxu0 }
 0x75a   :  { %v1293_v11 = vadd.f32 %v4592_v50, %v1292_v6 }
 0x761   :  { %v1294_v52 = vpop.f32.mrf.mxu0 }
 0x762   :  { %v1295_v10 = vadd.f32 %v4592_v50, %v1294_v52 }
 0x764   :  { %v1346_v13 = vpack.c.bf16 %v1295_v10, %v1293_v11 }
 0x766   :  { %v1361_v15 = vsel %vm394_vm8, %v1346_v13, 0  ;;  %v4523_v13 = vld [vmem:[%s6503_s1 + $0xc8] sm:$0xff] }
 0x769   :  { %v1297_v31 = vpop.f32.mrf.mxu0 }
 0x76a   :  { %v1298_v8 = vadd.f32 %v4592_v50, %v1297_v31 }
 0x76c   :  { %v1347_v9 = vpack.c.bf16 %v1298_v8, %v1298_v8 }
 0x76e   :  { %v1364_v41 = vsel %vm394_vm8, %v1347_v9, 0 }
 0x76f   :  { %1371 = vmatpush.bf16.xpose.msra.mxu2 %v1364_v41 }
 0x771   :  { %v1299_v43 = vpop.f32.mrf.mxu0 }
 0x772   :  { %v4524_v43 = vld [vmem:[%s6503_s1 + $0xd0] sm:$0xff] }
 0x773   :  { %1325 = vmatpush.bf16.msrb.mxu1 %v4524_v43 }
 0x777   :  { %1372 = vmatpush.bf16.xpose.msra.mxu2 %v1361_v15  ;;  %1326 = vmatpush.bf16.msrb.mxu1 %v4523_v13 }
 0x77f   :  { %1373 = vmatpush.bf16.xpose.msra.mxu2 %v1358_v18 }
 0x792   :  { %v1081_v21 = vpop.xlane.xlu0 %1080 }
 0x793   :  { %v1094_v22 = vsub.f32 %v1074_v56, %v1081_v21 }
 0x795   :  { %v1099_v24 = vmul.f32 1.442695, %v1094_v22 }
 0x797   :  { %4673 = vpow2.f32 %v1099_v24 }
 0x79a   :  { %v1084_v25 = vpop.xlane.xlu1 %1083 }
 0x79b   :  { %v1095_v27 = vsub.f32 %v1075_v57, %v1084_v25 }
 0x79d   :  { %v4674_v30 = vpop.eup %4673  ;;  %v1101_v29 = vmul.f32 1.442695, %v1095_v27 }
 0x79e   :  { %v1109_v54 = vsel %vm446_vm9, %v4674_v30, 0.0 }
 0x79f   :  { %4675 = vpow2.f32 %v1101_v29  ;;  %1110 = vadd.xlane.f32.xlu2 %v1109_v54 }
 0x7a2   :  { %v1087_v58 = vpop.xlane.xlu2 %1086 }
 0x7a3   :  { %v1096_v39 = vsub.f32 %v1076_v42, %v1087_v58 }
 0x7a5   :  { %v4676_v60 = vpop.eup %4675  ;;  %v1103_v0 = vmul.f32 1.442695, %v1096_v39 }
 0x7a6   :  { %v1112_v33 = vsel %vm446_vm9, %v4676_v60, 0.0 }
 0x7a7   :  { %4677 = vpow2.f32 %v1103_v0  ;;  %1113 = vadd.xlane.f32.xlu0 %v1112_v33 }
 0x7aa   :  { %v1090_v63 = vpop.xlane.xlu0 %1089 }
 0x7ab   :  { %v1097_v56 = vsub.f32 %v1077_v59, %v1090_v63 }
 0x7ad   :  { %v4678_v17 = vpop.eup %4677  ;;  %v1105_v2 = vmul.f32 1.442695, %v1097_v56 }
 0x7ae   :  { %v1115_v57 = vsel %vm446_vm9, %v4678_v17, 0.0 }
 0x7af   :  { %4679 = vpow2.f32 %v1105_v2  ;;  %1116 = vadd.xlane.f32.xlu1 %v1115_v57 }
 0x7b2   :  { %v1093_v49 = vpop.xlane.xlu1 %1092 }
 0x7b3   :  { %v1098_v4 = vsub.f32 %v1078_v32, %v1093_v49 }
 0x7b5   :  { %v4680_v47 = vpop.eup %4679  ;;  %v1107_v6 = vmul.f32 1.442695, %v1098_v4 }
 0x7b6   :  { %v1118_v42 = vsel %vm446_vm9, %v4680_v47, 0.0 }
 0x7b7   :  { %4681 = vpow2.f32 %v1107_v6  ;;  %1119 = vadd.xlane.f32.xlu2 %v1118_v42  ;;  %v4593_v42 = vld [vmem:[%s6504_s2 + $0x57] ss:$0 sm:$0xff] }
 0x7bd   :  { %v4682_v52 = vpop.eup %4681 }
 0x7be   :  { %v1121_v50 = vsel %vm459_vm10, %v4682_v52, 0.0 }
 0x7bf   :  { %1122 = vadd.xlane.f32.xlu0 %v1121_v50 }
 0x812   :  { %v1111_v31 = vpop.xlane.xlu2 %1110 }
 0x813   :  { %4683 = vrcp.f32 %v1111_v31 }
 0x819   :  { %v4684_v8 = vpop.eup %4683 }
 0x81a   :  { %v1114_v59 = vpop.xlane.xlu0 %1113  ;;  %v1129_v10 = vmul.f32 %v4684_v8, %v4674_v30 }
 0x81b   :  { %4685 = vrcp.f32 %v1114_v59 }
 0x821   :  { %v4686_v9 = vpop.eup %4685 }
 0x822   :  { %v1130_v41 = vmul.f32 %v4686_v9, %v4676_v60  ;;  %v1117_v32 = vpop.xlane.xlu1 %1116 }
 0x823   :  { %4687 = vrcp.f32 %v1117_v32  ;;  %v886_v32 = vadd.f32 %v5248_v40, %v5332_v37 }
 0x824   :  { %v1134_v11 = vpack.c.bf16 %v1130_v41, %v1129_v10 }
 0x826   :  { %4175 = vmatmul.msk.bf16.vlgmr.msra.gmra.mxu1 %vm446_vm9, %v1134_v11 }
 0x829   :  { %v4688_v15 = vpop.eup %4687 }
 0x82a   :  { %v1120_v14 = vpop.xlane.xlu2 %1119  ;;  %v1131_v55 = vmul.f32 %v4688_v15, %v4678_v17 }
 0x82b   :  { %4689 = vrcp.f32 %v1120_v14  ;;  %v891_v14 = vadd.f32 %v5252_v46, %v5338_v35 }
 0x831   :  { %v4690_v16 = vpop.eup %4689 }
 0x832   :  { %v1132_v18 = vmul.f32 %v4690_v16, %v4680_v47  ;;  %v1123_v21 = vpop.xlane.xlu0 %1122 }
 0x833   :  { %4691 = vrcp.f32 %v1123_v21 }
 0x834   :  { %v1135_v22 = vpack.c.bf16 %v1132_v18, %v1131_v55  ;;  %v896_v18 = vadd.f32 %v5256_v51, %v5344_v38  ;;  %v4846_v51 = vld [vmem:[%s6504_s2 + $0x30] sm:$0xff] }
 0x836   :  { %4176 = vmatmul.msk.bf16.gmra.mxu1 %vm446_vm9, %v1135_v22 }
 0x839   :  { %v4692_v24 = vpop.eup %4691 }
 0x83a   :  { %v1133_v25 = vmul.f32 %v4692_v24, %v4682_v52 }
 0x83c   :  { %v1136_v27 = vpack.c.bf16 %v1133_v25, %v1133_v25  ;;  %v4845_v25 = vld [vmem:[%s6504_s2 + $0x28] sm:$0xff] }
 0x846   :  { %4177 = vmatmul.msk.bf16.gmra.mxu1 %vm446_vm9, %v1136_v27 }
 0x856   :  { %4211 = vmatmul.msk.bf16.vlgmr.msrb.gmra.mxu1 %vm122_vm2, %v5033_v5 }
 0x866   :  { %4212 = vmatmul.msk.bf16.gmra.mxu1 %vm122_vm2, %v5043_v23  ;;  %v4591_v23 = vld [vmem:[%s6504_s2 + $0x55] ss:$0 sm:$0xff] }
 0x867   :  { %v1247_v56 = vadd.f32 %v4591_v23, %v5353_v20  ;;  %v1254_v49 = vadd.f32 %v4591_v23, %v5365_v62  ;;  %v1252_v4 = vadd.f32 %v4591_v23, %v5361_v53  ;;  %v1257_v31 = vadd.f32 %v4591_v23, %v5369_v61 }
 0x869   :  { %v1343_v6 = vpack.c.bf16 %v1254_v49, %v1252_v4  ;;  %v1344_v10 = vpack.c.bf16 %v1257_v31, %v1257_v31 }
 0x876   :  { %4213 = vmatmul.msk.bf16.gmra.mxu1 %vm122_vm2, %v5052_v26  ;;  %v1249_v26 = vadd.f32 %v4591_v23, %v5357_v1 }
 0x878   :  { %v1342_v2 = vpack.c.bf16 %v1249_v26, %v1247_v56 }
 0x8a3   :  { %v1161_v30 = vpop.f32.mrf.mxu1 }
 0x8ab   :  { %v1163_v29 = vpop.f32.mrf.mxu1 }
 0x8ac   :  { %v1175_v54 = vpack.c.bf16 %v1163_v29, %v1161_v30 }
 0x8ae   :  { %4178 = vmatmul.msk.bf16.vlgmr.msrb.gmra.mxu2 %vm394_vm8, %v1175_v54 }
 0x8b3   :  { %v1166_v58 = vpop.f32.mrf.mxu1 }
 0x8bb   :  { %v1168_v39 = vpop.f32.mrf.mxu1 }
 0x8bc   :  { %v1176_v60 = vpack.c.bf16 %v1168_v39, %v1166_v58  ;;  %v4847_v39 = vld [vmem:[%s6504_s2 + $0x38] sm:$0xff] }
 0x8be   :  { %4179 = vmatmul.msk.bf16.gmra.mxu2 %vm394_vm8, %v1176_v60 }
 0x8c3   :  { %v1171_v0 = vpop.f32.mrf.mxu1 }
 0x8c4   :  { %v1177_v63 = vpack.c.bf16 %v1171_v0, %v1171_v0 }
 0x8cb   :  { %v1173_v33 = vpop.f32.mrf.mxu1 }
 0x8ce   :  { %4180 = vmatmul.msk.bf16.gmra.mxu2 %vm394_vm8, %v1177_v63 }
 0x8d3   :  { %v1328_v5 = vpop.f32.mrf.mxu1 }
 0x8d4   :  { %v1329_v41 = vadd.f32 %v4593_v42, %v1328_v5  ;;  %v4848_v5 = vld [vmem:[%s6504_s2 + $0x40] sm:$0xff] }
 0x8db   :  { %v1330_v17 = vpop.f32.mrf.mxu1 }
 0x8dc   :  { %v1331_v62 = vadd.f32 %v4593_v42, %v1330_v17 }
 0x8de   :  { %4214 = vmatmul.msk.bf16.vlgmr.msra.gmra.mxu2 %vm394_vm8, %v1342_v2  ;;  %v1457_v11 = vpack.c.bf16 %v1331_v62, %v1329_v41  ;;  %v4849_v2 = vld [vmem:[%s6504_s2 + $0x48] sm:$0x3] }
 0x8e3   :  { %v1333_v57 = vpop.f32.mrf.mxu1 }
 0x8e4   :  { %v1334_v8 = vadd.f32 %v4593_v42, %v1333_v57 }
 0x8eb   :  { %v1335_v47 = vpop.f32.mrf.mxu1 }
 0x8ec   :  { %v1336_v50 = vadd.f32 %v4593_v42, %v1335_v47 }
 0x8ee   :  { %4215 = vmatmul.msk.bf16.gmra.mxu2 %vm394_vm8, %v1343_v6  ;;  %v1458_v53 = vpack.c.bf16 %v1336_v50, %v1334_v8 }
 0x8f3   :  { %v1338_v1 = vpop.f32.mrf.mxu1 }
 0x8f4   :  { %v1339_v52 = vadd.f32 %v4593_v42, %v1338_v1 }
 0x8f6   :  { %v1459_v20 = vpack.c.bf16 %v1339_v52, %v1339_v52 }
 0x8f8   :  { %v1470_v59 = vsel %vm93_vm1, %v1459_v20, 0 }
 0x8f9   :  { %1477 = vmatpush.bf16.msra.mxu3 %v1470_v59 }
 0x8fb   :  { %v1340_v9 = vpop.f32.mrf.mxu1 }
 0x8fd   :  { %1478 = vmatpush.bf16.msra.mxu3 %v1458_v53 }
 0x8fe   :  { %4216 = vmatmul.msk.bf16.gmra.mxu2 %vm394_vm8, %v1344_v10 }
 0x901   :  { %1479 = vmatpush.bf16.msra.mxu3 %v1457_v11 }
 0x931   :  { %v1200_v43 = vpop.f32.mrf.mxu2 }
 0x932   :  { %v5422_v13 = vadd.f32 %v1200_v43, %v886_v32 }
 0x939   :  { %v5424_v61 = vpop.f32.mrf.mxu2 }
 0x941   :  { %v1205_v15 = vpop.f32.mrf.mxu2 }
 0x942   :  { %v5428_v16 = vadd.f32 %v1205_v15, %v891_v14 }
 0x949   :  { %v5430_v55 = vpop.f32.mrf.mxu2 }
 0x951   :  { %v1210_v21 = vpop.f32.mrf.mxu2 }
 0x952   :  { %v5434_v22 = vadd.f32 %v1210_v21, %v896_v18 }
 0x959   :  { %v1212_v40 = vpop.f32.mrf.mxu2 }
 0x961   :  { %v1375_v37 = vpop.f32.mrf.mxu2 }
 0x962   :  { %v1389_v24 = vmul.f32 0.35355338, %v1375_v37 }
 0x964   :  { %v1394_v27 = vadd.f32 %v4845_v25, %v1389_v24 }
 0x966   :  { %v1399_v46 = vsel %vm446_vm9, %v1394_v27, -inf }
 0x967   :  { %1400 = vmax.xlane.f32.xlu1 %v1399_v46 }
 0x969   :  { %v1377_v35 = vpop.f32.mrf.mxu2 }
 0x96a   :  { %v1390_v30 = vmul.f32 0.35355338, %v1377_v35 }
 0x96c   :  { %v1395_v38 = vadd.f32 %v4846_v51, %v1390_v30 }
 0x96e   :  { %v1402_v29 = vsel %vm446_vm9, %v1395_v38, -inf }
 0x96f   :  { %1403 = vmax.xlane.f32.xlu2 %v1402_v29 }
 0x971   :  { %v1380_v54 = vpop.f32.mrf.mxu2 }
 0x972   :  { %v1391_v58 = vmul.f32 0.35355338, %v1380_v54  ;;  %v1498_v54 = vld [vmem:[%s6503_s1 + $0xe4] sm:$0xf] }
 0x974   :  { %v1396_v60 = vadd.f32 %v4847_v39, %v1391_v58  ;;  %v1509_v58 = vsel %vm837_vm11, %v1498_v54, 0 }
 0x975   :  { %1518 = vmatpush.bf16.msra.mxu0 %v1509_v58 }
 0x976   :  { %v1405_v0 = vsel %vm446_vm9, %v1396_v60, -inf }
 0x977   :  { %1406 = vmax.xlane.f32.xlu0 %v1405_v0 }
 0x979   :  { %v1382_v33 = vpop.f32.mrf.mxu2 }
 0x97a   :  { %v1392_v63 = vmul.f32 0.35355338, %v1382_v33 }
 0x97c   :  { %v1397_v23 = vadd.f32 %v4848_v5, %v1392_v63 }
 0x97e   :  { %v1408_v26 = vsel %vm446_vm9, %v1397_v23, -inf }
 0x97f   :  { %1409 = vmax.xlane.f32.xlu1 %v1408_v26 }
 0x981   :  { %v1385_v56 = vpop.f32.mrf.mxu2 }
 0x982   :  { %v1393_v17 = vmul.f32 0.35355338, %v1385_v56 }
 0x984   :  { %v1398_v57 = vadd.f32 %v4849_v2, %v1393_v17 }
 0x986   :  { %v1411_v49 = vsel %vm459_vm10, %v1398_v57, -inf }
 0x987   :  { %1412 = vmax.xlane.f32.xlu1 %v1411_v49 }
 0x989   :  { %v1387_v4 = vpop.f32.mrf.mxu2 }
 0x9da   :  { %v1401_v47 = vpop.xlane.xlu1 %1400 }
 0x9db   :  { %v1414_v6 = vsub.f32 %v1394_v27, %v1401_v47 }
 0x9dd   :  { %v1419_v42 = vmul.f32 1.442695, %v1414_v6 }
 0x9df   :  { %4693 = vpow2.f32 %v1419_v42 }
 0x9e2   :  { %v1404_v1 = vpop.xlane.xlu2 %1403 }
 0x9e3   :  { %v1415_v52 = vsub.f32 %v1395_v38, %v1404_v1 }
 0x9e5   :  { %v4694_v20 = vpop.eup %4693  ;;  %v1421_v50 = vmul.f32 1.442695, %v1415_v52 }
 0x9e6   :  { %v1429_v31 = vsel %vm446_vm9, %v4694_v20, 0.0 }
 0x9e7   :  { %4695 = vpow2.f32 %v1421_v50  ;;  %1430 = vadd.xlane.f32.xlu2 %v1429_v31  ;;  %v4594_v31 = vld [vmem:[%s6504_s2 + $0x58] ss:$0 sm:$0xff] }
 0x9ea   :  { %v1407_v59 = vpop.xlane.xlu0 %1406 }
 0x9eb   :  { %v1416_v8 = vsub.f32 %v1396_v60, %v1407_v59 }
 0x9ed   :  { %v4696_v62 = vpop.eup %4695  ;;  %v1423_v53 = vmul.f32 1.442695, %v1416_v8  ;;  %v888_v8 = vadd.f32 %v5250_v45, %v5334_v7 }
 0x9ee   :  { %v1432_v9 = vsel %vm446_vm9, %v4696_v62, 0.0 }
 0x9ef   :  { %4697 = vpow2.f32 %v1423_v53  ;;  %1433 = vadd.xlane.f32.xlu0 %v1432_v9  ;;  %v1215_v53 = vadd.f32 %v5424_v61, %v888_v8  ;;  %v893_v61 = vadd.f32 %v5254_v48, %v5340_v3 }
 0x9f2   :  { %v1410_v10 = vpop.xlane.xlu1 %1409 }
 0x9f3   :  { %v1417_v41 = vsub.f32 %v1397_v23, %v1410_v10 }
 0x9f5   :  { %v4698_v11 = vpop.eup %4697  ;;  %v1425_v32 = vmul.f32 1.442695, %v1417_v41 }
 0x9f6   :  { %v1435_v43 = vsel %vm446_vm9, %v4698_v11, 0.0 }
 0x9f7   :  { %4699 = vpow2.f32 %v1425_v32  ;;  %1436 = vadd.xlane.f32.xlu2 %v1435_v43 }
 0x9fa   :  { %v1413_v14 = vpop.xlane.xlu1 %1412 }
 0x9fb   :  { %v1418_v15 = vsub.f32 %v1398_v57, %v1413_v14  ;;  %v1217_v14 = vadd.f32 %v5430_v55, %v893_v61 }
 0x9fd   :  { %v4700_v18 = vpop.eup %4699  ;;  %v1427_v21 = vmul.f32 1.442695, %v1418_v15 }
 0x9fe   :  { %v1438_v40 = vsel %vm446_vm9, %v4700_v18, 0.0 }
 0x9ff   :  { %4701 = vpow2.f32 %v1427_v21  ;;  %1439 = vadd.xlane.f32.xlu0 %v1438_v40 }
 0xa05   :  { %v4702_v37 = vpop.eup %4701 }
 0xa06   :  { %v1441_v24 = vsel %vm459_vm10, %v4702_v37, 0.0 }
 0xa07   :  { %1442 = vadd.xlane.f32.xlu1 %v1441_v24 }
 0xa5a   :  { %v1431_v25 = vpop.xlane.xlu2 %1430 }
 0xa5b   :  { %4703 = vrcp.f32 %v1431_v25 }
 0xa61   :  { %v4704_v46 = vpop.eup %4703 }
 0xa62   :  { %v1434_v27 = vpop.xlane.xlu0 %1433  ;;  %v1449_v30 = vmul.f32 %v4704_v46, %v4694_v20 }
 0xa63   :  { %4705 = vrcp.f32 %v1434_v27 }
 0xa69   :  { %v4706_v35 = vpop.eup %4705 }
 0xa6a   :  { %v1450_v51 = vmul.f32 %v4706_v35, %v4696_v62  ;;  %v1437_v29 = vpop.xlane.xlu2 %1436 }
 0xa6b   :  { %4707 = vrcp.f32 %v1437_v29 }
 0xa6c   :  { %v1454_v38 = vpack.c.bf16 %v1450_v51, %v1449_v30 }
 0xa6e   :  { %4217 = vmatmul.msk.bf16.vlgmr.msra.gmra.mxu3 %vm446_vm9, %v1454_v38 }
 0xa71   :  { %v4708_v60 = vpop.eup %4707 }
 0xa72   :  { %v1440_v39 = vpop.xlane.xlu0 %1439  ;;  %v1451_v33 = vmul.f32 %v4708_v60, %v4698_v11 }
 0xa73   :  { %4709 = vrcp.f32 %v1440_v39 }
 0xa79   :  { %v4710_v0 = vpop.eup %4709 }
 0xa7a   :  { %v1452_v63 = vmul.f32 %v4710_v0, %v4700_v18  ;;  %v1443_v5 = vpop.xlane.xlu1 %1442 }
 0xa7b   :  { %4711 = vrcp.f32 %v1443_v5 }
 0xa7c   :  { %v1455_v23 = vpack.c.bf16 %v1452_v63, %v1451_v33 }
 0xa7e   :  { %4218 = vmatmul.msk.bf16.gmra.mxu3 %vm446_vm9, %v1455_v23 }
 0xa81   :  { %v4712_v26 = vpop.eup %4711 }
 0xa82   :  { %v1453_v56 = vmul.f32 %v4712_v26, %v4702_v37 }
 0xa84   :  { %v1456_v17 = vpack.c.bf16 %v1453_v56, %v1453_v56 }
 0xa8e   :  { %4219 = vmatmul.msk.bf16.gmra.mxu3 %vm446_vm9, %v1456_v17 }
 0xaf1   :  { %v1481_v2 = vpop.f32.mrf.mxu3 }
 0xaf9   :  { %v1483_v57 = vpop.f32.mrf.mxu3 }
 0xafa   :  { %v1495_v49 = vpack.c.bf16 %v1483_v57, %v1481_v2 }
 0xafc   :  { %4220 = vmatmul.msk.bf16.vlgmr.msra.gmra.mxu0 %vm394_vm8, %v1495_v49  ;;  %v4526_v49 = vld [vmem:[%s6503_s1 + $0xf0] sm:$0xff] }
 0xafd   :  { %1711 = vmatpush.bf16.msra.mxu1 %v4526_v49 }
 0xb01   :  { %v1486_v4 = vpop.f32.mrf.mxu3 }
 0xb09   :  { %v1488_v47 = vpop.f32.mrf.mxu3 }
 0xb0a   :  { %v1496_v6 = vpack.c.bf16 %v1488_v47, %v1486_v4 }
 0xb0c   :  { %4221 = vmatmul.msk.bf16.gmra.mxu0 %vm394_vm8, %v1496_v6 }
 0xb11   :  { %v1491_v42 = vpop.f32.mrf.mxu3 }
 0xb12   :  { %v1497_v52 = vpack.c.bf16 %v1491_v42, %v1491_v42  ;;  %v4525_v42 = vld [vmem:[%s6503_s1 + $0xe8] sm:$0xff] }
 0xb13   :  { %1712 = vmatpush.bf16.msra.mxu1 %v4525_v42 }
 0xb19   :  { %v1493_v1 = vpop.f32.mrf.mxu3 }
 0xb1c   :  { %4222 = vmatmul.msk.bf16.gmra.mxu0 %vm394_vm8, %v1497_v52 }
 0xb79   :  { %v1520_v20 = vpop.f32.mrf.mxu0 }
 0xb7a   :  { %v1534_v50 = vadd.f32 %v1520_v20, %v5422_v13 }
 0xb7c   :  { %v1539_v59 = vadd.f32 %v1534_v50, %v4933_v12 }
 0xb7e   :  { %v5478_v62 = vadd.f32 %v4594_v31, %v1539_v59 }
 0xb80   :  { %v1553_v9 = vsel %vm122_vm2, %v5478_v62, 0.0 }
 0xb81   :  { %1554 = vadd.xlane.f32.xlu2 %v1553_v9  ;;  %v1522_v10 = vpop.f32.mrf.mxu0 }
 0xb82   :  { %v1535_v41 = vadd.f32 %v1522_v10, %v1215_v53 }
 0xb84   :  { %v1540_v13 = vadd.f32 %v1535_v41, %v4941_v19 }
 0xb86   :  { %v5484_v11 = vadd.f32 %v4594_v31, %v1540_v13 }
 0xb88   :  { %v1556_v12 = vsel %vm122_vm2, %v5484_v11, 0.0 }
 0xb89   :  { %1557 = vadd.xlane.f32.xlu0 %v1556_v12  ;;  %v1525_v32 = vpop.f32.mrf.mxu0 }
 0xb8a   :  { %v1536_v45 = vadd.f32 %v1525_v32, %v5428_v16 }
 0xb8c   :  { %v1541_v7 = vadd.f32 %v1536_v45, %v4949_v28 }
 0xb8e   :  { %v5492_v43 = vadd.f32 %v4594_v31, %v1541_v7 }
 0xb90   :  { %v1559_v19 = vsel %vm122_vm2, %v5492_v43, 0.0 }
 0xb91   :  { %v1527_v15 = vpop.f32.mrf.mxu0  ;;  %1560 = vadd.xlane.f32.xlu1 %v1559_v19 }
 0xb92   :  { %v1537_v18 = vadd.f32 %v1527_v15, %v1217_v14 }
 0xb94   :  { %v1542_v21 = vadd.f32 %v1537_v18, %v4961_v36 }
 0xb96   :  { %v5498_v40 = vadd.f32 %v4594_v31, %v1542_v21  ;;  %v4595_v21 = vld [vmem:[%s6504_s2 + $0x59] ss:$0 sm:$0xff] }
 0xb98   :  { %v1562_v28 = vsel %vm122_vm2, %v5498_v40, 0.0 }
 0xb99   :  { %1563 = vadd.xlane.f32.xlu2 %v1562_v28  ;;  %v1530_v16 = vpop.f32.mrf.mxu0 }
 0xb9a   :  { %v1538_v48 = vadd.f32 %v1530_v16, %v5434_v22 }
 0xb9c   :  { %v1543_v3 = vadd.f32 %v1538_v48, %v4956_v34 }
 0xb9e   :  { %v5504_v55 = vadd.f32 %v4594_v31, %v1543_v3 }
 0xba0   :  { %v1565_v37 = vsel %vm135_vm4, %v5504_v55, 0.0 }
 0xba1   :  { %1566 = vadd.xlane.f32.xlu2 %v1565_v37  ;;  %v1532_v24 = vpop.f32.mrf.mxu0 }
 0xbf4   :  { %v1555_v25 = vpop.xlane.xlu2 %1554 }
 0xbf5   :  { %v1568_v36 = vmul.f32 %v1555_v25, %v4965_v44  ;;  %v4596_v25 = vld [vmem:[%s6504_s2 + $0x5a] ss:$0 sm:$0xff] }
 0xbf7   :  { %v5510_v27 = vsub.f32 %v5478_v62, %v1568_v36 }
 0xbf9   :  { %v1578_v46 = vmul.f32 %v5510_v27, %v5510_v27 }
 0xbfb   :  { %v1583_v22 = vsel %vm122_vm2, %v1578_v46, 0.0 }
 0xbfc   :  { %1584 = vadd.xlane.f32.xlu0 %v1583_v22  ;;  %v1558_v34 = vpop.xlane.xlu0 %1557 }
 0xbfd   :  { %v1569_v35 = vmul.f32 %v1558_v34, %v4965_v44 }
 0xbff   :  { %v5517_v30 = vsub.f32 %v5484_v11, %v1569_v35 }
 0xc01   :  { %v1579_v51 = vmul.f32 %v5517_v30, %v5517_v30 }
 0xc03   :  { %v1586_v38 = vsel %vm122_vm2, %v1579_v51, 0.0 }
 0xc04   :  { %1587 = vadd.xlane.f32.xlu1 %v1586_v38  ;;  %v1561_v29 = vpop.xlane.xlu1 %1560 }
 0xc05   :  { %v1570_v54 = vmul.f32 %v1561_v29, %v4965_v44 }
 0xc07   :  { %v5524_v58 = vsub.f32 %v5492_v43, %v1570_v54 }
 0xc09   :  { %v1580_v39 = vmul.f32 %v5524_v58, %v5524_v58 }
 0xc0b   :  { %v1589_v60 = vsel %vm122_vm2, %v1580_v39, 0.0 }
 0xc0c   :  { %v1564_v0 = vpop.xlane.xlu2 %1563  ;;  %1590 = vadd.xlane.f32.xlu0 %v1589_v60 }
 0xc0d   :  { %v1571_v33 = vmul.f32 %v1564_v0, %v4965_v44 }
 0xc0f   :  { %v5531_v63 = vsub.f32 %v5498_v40, %v1571_v33 }
 0xc11   :  { %v1581_v5 = vmul.f32 %v5531_v63, %v5531_v63 }
 0xc13   :  { %v1592_v23 = vsel %vm122_vm2, %v1581_v5, 0.0 }
 0xc14   :  { %1593 = vadd.xlane.f32.xlu1 %v1592_v23  ;;  %v1567_v26 = vpop.xlane.xlu2 %1566 }
 0xc15   :  { %v1572_v56 = vmul.f32 %v1567_v26, %v4965_v44 }
 0xc17   :  { %v5538_v17 = vsub.f32 %v5504_v55, %v1572_v56 }
 0xc19   :  { %v1582_v2 = vmul.f32 %v5538_v17, %v5538_v17 }
 0xc1b   :  { %v1595_v57 = vsel %vm135_vm4, %v1582_v2, 0.0 }
 0xc1c   :  { %1596 = vadd.xlane.f32.xlu2 %v1595_v57 }
 0xc6f   :  { %v1585_v4 = vpop.xlane.xlu0 %1584 }
 0xc70   :  { %v1598_v47 = vmul.f32 %v1585_v4, %v4965_v44 }
 0xc72   :  { %v1603_v6 = vadd.f32 1e-05, %v1598_v47 }
 0xc74   :  { %4713 = vrsqrt.f32 %v1603_v6  ;;  %vm1614_vm13 = vweird.f32 %v1603_v6 }
 0xc77   :  { %v1588_v1 = vpop.xlane.xlu1 %1587 }
 0xc78   :  { %v1599_v52 = vmul.f32 %v1588_v1, %v4965_v44 }
 0xc7a   :  { %v4714_v20 = vpop.eup %4713  ;;  %v1604_v50 = vadd.f32 1e-05, %v1599_v52 }
 0xc7b   :  { %v1609_v31 = vmul.f32 %v4714_v20, %v1603_v6  ;;  %vm1615_vm12 = vweird.f32 %v4714_v20 }
 0xc7c   :  { %4715 = vrsqrt.f32 %v1604_v50  ;;  %vm1616_vm14 = vmor %vm1614_vm13, %vm1615_vm12  ;;  %vm1624_vm0 = vweird.f32 %v1604_v50 }
 0xc7d   :  { %v1610_v59 = vmul.f32 %v4714_v20, %v1609_v31 }
 0xc7f   :  { %v1611_v8 = vmul.f32 0.5, %v1610_v59  ;;  %v1591_v53 = vpop.xlane.xlu0 %1590 }
 0xc80   :  { %v1600_v9 = vmul.f32 %v1591_v53, %v4965_v44 }
 0xc81   :  { %v1612_v10 = vsub.f32 1.5, %v1611_v8 }
 0xc82   :  { %v4716_v41 = vpop.eup %4715  ;;  %v1605_v13 = vadd.f32 1e-05, %v1600_v9 }
 0xc83   :  { %v1613_v12 = vmul.f32 %v4714_v20, %v1612_v10  ;;  %v1619_v32 = vmul.f32 %v4716_v41, %v1604_v50  ;;  %vm1625_vm15 = vweird.f32 %v4716_v41 }
 0xc84   :  { %4717 = vrsqrt.f32 %v1605_v13  ;;  %vm1626_vm3 = vmor %vm1624_vm0, %vm1625_vm15  ;;  %vm1634_vm6 = vweird.f32 %v1605_v13 }
 0xc85   :  { %v1620_v45 = vmul.f32 %v4716_v41, %v1619_v32  ;;  %v1617_v7 = vsel %vm1616_vm14, %v4714_v20, %v1613_v12 }
 0xc86   :  { %v1658_v28 = vmul.f32 %v1617_v7, %v5510_v27 }
 0xc87   :  { %v1621_v61 = vmul.f32 0.5, %v1620_v45  ;;  %v1594_v14 = vpop.xlane.xlu1 %1593 }
 0xc88   :  { %v1601_v19 = vmul.f32 %v1594_v14, %v4965_v44  ;;  %v1664_v36 = vmul.f32 %v4595_v21, %v1658_v28 }
 0xc89   :  { %v1622_v15 = vsub.f32 1.5, %v1621_v61 }
 0xc8a   :  { %v4718_v18 = vpop.eup %4717  ;;  %v1606_v16 = vadd.f32 1e-05, %v1601_v19  ;;  %v1670_v29 = vadd.f32 %v4596_v25, %v1664_v36 }
 0xc8b   :  { %v1623_v48 = vmul.f32 %v4716_v41, %v1622_v15  ;;  %v1629_v3 = vmul.f32 %v4718_v18, %v1605_v13  ;;  %vm1635_vm5 = vweird.f32 %v4718_v18  ;;  %v4534_v15 = vld [vmem:[%s6503_s1 + $0x130] sm:$0xff] }
 0xc8c   :  { %4719 = vrsqrt.f32 %v1606_v16  ;;  %vm1636_vm7 = vmor %vm1634_vm6, %vm1635_vm5  ;;  %vm1644_vm13 = vweird.f32 %v1606_v16  ;;  %2017 = vmatpush.bf16.msrb.mxu2 %v4534_v15 }
 0xc8d   :  { %v1627_v37 = vsel %vm1626_vm3, %v4716_v41, %v1623_v48  ;;  %v1630_v24 = vmul.f32 %v4718_v18, %v1629_v3 }
 0xc8e   :  { %v1659_v46 = vmul.f32 %v1627_v37, %v5517_v30  ;;  %v4533_v37 = vld [vmem:[%s6503_s1 + $0x128] sm:$0xff] }
 0xc8f   :  { %v1631_v22 = vmul.f32 0.5, %v1630_v24  ;;  %v1597_v34 = vpop.xlane.xlu2 %1596 }
 0xc90   :  { %v1665_v35 = vmul.f32 %v4595_v21, %v1659_v46  ;;  %v1602_v27 = vmul.f32 %v1597_v34, %v4965_v44  ;;  %2018 = vmatpush.bf16.msrb.mxu2 %v4533_v37 }
 0xc91   :  { %v1632_v51 = vsub.f32 1.5, %v1631_v22 }
 0xc92   :  { %v4720_v38 = vpop.eup %4719  ;;  %v1671_v54 = vadd.f32 %v4596_v25, %v1665_v35  ;;  %v1607_v39 = vadd.f32 1e-05, %v1602_v27 }
 0xc93   :  { %v1633_v60 = vmul.f32 %v4718_v18, %v1632_v51  ;;  %v1639_v0 = vmul.f32 %v4720_v38, %v1606_v16  ;;  %vm1645_vm12 = vweird.f32 %v4720_v38  ;;  %v4532_v51 = vld [vmem:[%s6503_s1 + $0x120] sm:$0xff] }
 0xc94   :  { %v1675_v33 = vpack.c.bf16 %v1671_v54, %v1670_v29  ;;  %4721 = vrsqrt.f32 %v1607_v39  ;;  %vm1646_vm14 = vmor %vm1644_vm13, %vm1645_vm12  ;;  %vm1654_vm0 = vweird.f32 %v1607_v39  ;;  %2019 = vmatpush.bf16.msrb.mxu2 %v4532_v51 }
 0xc95   :  { %v1640_v5 = vmul.f32 %v4720_v38, %v1639_v0  ;;  %v1637_v30 = vsel %vm1636_vm7, %v4718_v18, %v1633_v60 }
 0xc96   :  { %4231 = vmatmul.msk.bf16.vlgmr.msra.gmra.mxu1 %vm122_vm2, %v1675_v33  ;;  %v1660_v2 = vmul.f32 %v1637_v30, %v5524_v58 }
 0xc97   :  { %v1641_v23 = vmul.f32 0.5, %v1640_v5 }
 0xc98   :  { %v1666_v42 = vmul.f32 %v4595_v21, %v1660_v2 }
 0xc99   :  { %v1642_v26 = vsub.f32 1.5, %v1641_v23  ;;  %v4531_v23 = vld [vmem:[%s6503_s1 + $0x118] sm:$0xff] }
 0xc9a   :  { %v4722_v56 = vpop.eup %4721  ;;  %v1672_v50 = vadd.f32 %v4596_v25, %v1666_v42  ;;  %2020 = vmatpush.bf16.msrb.mxu2 %v4531_v23 }
 0xc9b   :  { %v1643_v57 = vmul.f32 %v4720_v38, %v1642_v26  ;;  %v1649_v49 = vmul.f32 %v4722_v56, %v1607_v39  ;;  %vm1655_vm15 = vweird.f32 %v4722_v56 }
 0xc9c   :  { %vm1656_vm3 = vmor %vm1654_vm0, %vm1655_vm15 }
 0xc9d   :  { %v1647_v4 = vsel %vm1646_vm14, %v4720_v38, %v1643_v57  ;;  %v1650_v47 = vmul.f32 %v4722_v56, %v1649_v49 }
 0xc9e   :  { %v1661_v6 = vmul.f32 %v1647_v4, %v5531_v63  ;;  %v5571_v63 = vld [vmem:[%s6504_s2 + $0x5b] ss:$0 sm:$0xff] }
 0xc9f   :  { %v1651_v1 = vmul.f32 0.5, %v1650_v47 }
 0xca0   :  { %v1667_v52 = vmul.f32 %v4595_v21, %v1661_v6 }
 0xca1   :  { %v1652_v20 = vsub.f32 1.5, %v1651_v1 }
 0xca2   :  { %v1673_v31 = vadd.f32 %v4596_v25, %v1667_v52 }
 0xca3   :  { %v1653_v59 = vmul.f32 %v4722_v56, %v1652_v20  ;;  %v4530_v20 = vld [vmem:[%s6503_s1 + $0x110] sm:$0xff] }
 0xca4   :  { %v1676_v8 = vpack.c.bf16 %v1673_v31, %v1672_v50  ;;  %2021 = vmatpush.bf16.msrb.mxu2 %v4530_v20 }
 0xca5   :  { %v1657_v58 = vsel %vm1656_vm3, %v4722_v56, %v1653_v59 }
 0xca6   :  { %4232 = vmatmul.msk.bf16.gmra.mxu1 %vm122_vm2, %v1676_v8  ;;  %v1662_v53 = vmul.f32 %v1657_v58, %v5538_v17 }
 0xca8   :  { %v1668_v9 = vmul.f32 %v4595_v21, %v1662_v53 }
 0xcaa   :  { %v1674_v10 = vadd.f32 %v4596_v25, %v1668_v9 }
 0xcac   :  { %v1677_v41 = vpack.c.bf16 %v1674_v10, %v1674_v10 }
 0xcb6   :  { %4233 = vmatmul.msk.bf16.gmra.mxu1 %vm122_vm2, %v1677_v41  ;;  %v4529_v41 = vld [vmem:[%s6503_s1 + $0x108] sm:$0xff] }
 0xcb7   :  { %2022 = vmatpush.bf16.msrb.mxu2 %v4529_v41 }
 0xd13   :  { %v1714_v13 = vpop.f32.mrf.mxu1 }
 0xd14   :  { %v5574_v12 = vadd.f32 %v5571_v63, %v1714_v13 }
 0xd16   :  { %v5577_v32 = vmul.f32 0.70710677, %v5574_v12 }
 0xd18   :  { %v1738_v17 = vmul.f32 %v5577_v32, %v5577_v32 }
 0xd1a   :  { %v5581_v45 = vmin.f32 %v1738_v17, 16.0 }
 0xd1b   :  { %v1716_v7 = vpop.f32.mrf.mxu1 }
 0xd1c   :  { %v1740_v61 = vmul.f32 2.1237322e-06, %v5581_v45  ;;  %v1751_v14 = vmul.f32 3.8918573e-05, %v5581_v45  ;;  %v5586_v19 = vadd.f32 %v5571_v63, %v1716_v7 }
 0xd1e   :  { %v1741_v18 = vadd.f32 0.00028619796, %v1740_v61  ;;  %v1752_v21 = vadd.f32 0.001143296, %v1751_v14  ;;  %v5592_v28 = vmul.f32 0.70710677, %v5586_v19 }
 0xd20   :  { %v1742_v16 = vmul.f32 %v1741_v18, %v5581_v45  ;;  %v1753_v48 = vmul.f32 %v1752_v21, %v5581_v45  ;;  %v1778_v3 = vmul.f32 %v5592_v28, %v5592_v28 }
 0xd22   :  { %v1743_v24 = vadd.f32 0.0036580483, %v1742_v16  ;;  %v1754_v25 = vadd.f32 0.014752088, %v1753_v48  ;;  %v5601_v36 = vmin.f32 %v1778_v3, 16.0  ;;  %v4528_v3 = vld [vmem:[%s6503_s1 + $0x100] sm:$0xff] }
 0xd23   :  { %v1719_v46 = vpop.f32.mrf.mxu1  ;;  %2023 = vmatpush.bf16.msrb.mxu2 %v4528_v3 }
 0xd24   :  { %v1755_v22 = vmul.f32 %v1754_v25, %v5581_v45  ;;  %v5605_v34 = vadd.f32 %v5571_v63, %v1719_v46  ;;  %v1780_v35 = vmul.f32 2.1237322e-06, %v5601_v36  ;;  %v1791_v27 = vmul.f32 3.8918573e-05, %v5601_v36 }
 0xd25   :  { %v1744_v38 = vmul.f32 %v1743_v24, %v5581_v45 }
 0xd26   :  { %v1756_v29 = vadd.f32 0.112945676, %v1755_v22  ;;  %v1781_v54 = vadd.f32 0.00028619796, %v1780_v35  ;;  %v1792_v39 = vadd.f32 0.001143296, %v1791_v27 }
 0xd27   :  { %v5614_v60 = vmul.f32 0.70710677, %v5605_v34  ;;  %v1745_v26 = vadd.f32 0.05243302, %v1744_v38 }
 0xd28   :  { %v1757_v0 = vmul.f32 %v1756_v29, %v5581_v45  ;;  %v1782_v33 = vmul.f32 %v1781_v54, %v5601_v36  ;;  %v1793_v5 = vmul.f32 %v1792_v39, %v5601_v36 }
 0xd29   :  { %v1818_v30 = vmul.f32 %v5614_v60, %v5614_v60  ;;  %v1746_v8 = vmul.f32 %v1745_v26, %v5581_v45 }
 0xd2a   :  { %v1758_v56 = vadd.f32 0.4994258, %v1757_v0  ;;  %v1783_v2 = vadd.f32 0.0036580483, %v1782_v33  ;;  %v1794_v57 = vadd.f32 0.014752088, %v1793_v5 }
 0xd2b   :  { %v5624_v49 = vmin.f32 %v1818_v30, 16.0  ;;  %v1721_v4 = vpop.f32.mrf.mxu1  ;;  %v1747_v7 = vadd.f32 0.18741608, %v1746_v8 }
 0xd2c   :  { %v1759_v47 = vmul.f32 %v1758_v56, %v5581_v45  ;;  %v5628_v6 = vadd.f32 %v5571_v63, %v1721_v4  ;;  %v1784_v42 = vmul.f32 %v1783_v2, %v5601_v36  ;;  %v1795_v1 = vmul.f32 %v1794_v57, %v5601_v36 }
 0xd2d   :  { %v1820_v52 = vmul.f32 2.1237322e-06, %v5624_v49  ;;  %v1831_v31 = vmul.f32 3.8918573e-05, %v5624_v49  ;;  %v1748_v22 = vmul.f32 %v1747_v7, %v5581_v45  ;;  %v4527_v45 = vld [vmem:[%s6503_s1 + $0xf8] sm:$0xff] }
 0xd2e   :  { %v5636_v50 = vadd.f32 1.0, %v1759_v47  ;;  %v5640_v59 = vmul.f32 0.70710677, %v5628_v6  ;;  %v1796_v58 = vadd.f32 0.112945676, %v1795_v1  ;;  %2024 = vmatpush.bf16.msrb.mxu2 %v4527_v45 }
 0xd2f   :  { %v1785_v53 = vadd.f32 0.05243302, %v1784_v42  ;;  %v1821_v10 = vadd.f32 0.00028619796, %v1820_v52  ;;  %v1832_v13 = vadd.f32 0.001143296, %v1831_v31 }
 0xd30   :  { %4723 = vrcp.f32 %v5636_v50  ;;  %v1797_v9 = vmul.f32 %v1796_v58, %v5601_v36  ;;  %v1858_v17 = vmul.f32 %v5640_v59, %v5640_v59  ;;  %v1770_v5 = vand.u32 2147483647, %v5636_v50 }
 0xd31   :  { %v1786_v15 = vmul.f32 %v1785_v53, %v5601_v36  ;;  %v1833_v18 = vmul.f32 %v1832_v13, %v5624_v49  ;;  %v1822_v48 = vmul.f32 %v1821_v10, %v5624_v49  ;;  %v1772_v30 = vand.u32 2147483648, %v5636_v50 }
 0xd32   :  { %v1798_v61 = vadd.f32 0.4994258, %v1797_v9  ;;  %v5652_v21 = vmin.f32 %v1858_v17, 16.0  ;;  %v1749_v4 = vadd.f32 1.1283791, %v1748_v22  ;;  %vm1766_vm6 = vweird.f32 %v5636_v50 }
 0xd33   :  { %v1724_v14 = vpop.f32.mrf.mxu1  ;;  %v1834_v24 = vadd.f32 0.014752088, %v1833_v18  ;;  %v1787_v51 = vadd.f32 0.18741608, %v1786_v15  ;;  %v1823_v0 = vadd.f32 0.0036580483, %v1822_v48 }
 0xd34   :  { %v1799_v16 = vmul.f32 %v1798_v61, %v5601_v36  ;;  %v1860_v25 = vmul.f32 2.1237322e-06, %v5652_v21  ;;  %v1871_v46 = vmul.f32 3.8918573e-05, %v5652_v21  ;;  %v5668_v33 = vadd.f32 %v5571_v63, %v1724_v14 }
 0xd35   :  { %v1835_v38 = vmul.f32 %v1834_v24, %v5624_v49  ;;  %v1788_v63 = vmul.f32 %v1787_v51, %v5601_v36  ;;  %v1824_v1 = vmul.f32 %v1823_v0, %v5624_v49  ;;  %v1773_v31 = vor.u32 1.1754944e-38, %v1772_v30 }
 0xd36   :  { %v4724_v37 = vpop.eup %4723  ;;  %v5663_v27 = vadd.f32 1.0, %v1799_v16  ;;  %v1861_v29 = vadd.f32 0.00028619796, %v1860_v25  ;;  %v1872_v54 = vadd.f32 0.001143296, %v1871_v46  ;;  %vm1771_vm12 = vcmp.eq.f32.partialorder %v1770_v5, 8.507059e+37 }
 0xd37   :  { %v1762_v35 = vmul.f32 %v4724_v37, %v5636_v50  ;;  %v1836_v23 = vadd.f32 0.112945676, %v1835_v38  ;;  %vm1767_vm5 = vweird.f32 %v4724_v37  ;;  %v5682_v20 = vmul.f32 0.70710677, %v5668_v33 }
 0xd38   :  { %4725 = vrcp.f32 %v5663_v27  ;;  %v1862_v56 = vmul.f32 %v1861_v29, %v5652_v21  ;;  %v1873_v2 = vmul.f32 %v1872_v54, %v5652_v21  ;;  %vm1768_vm7 = vmor %vm1766_vm6, %vm1767_vm5  ;;  %v1750_v10 = vmul.f32 %v1749_v4, %v5577_v32 }
 0xd39   :  { %v1763_v39 = vsub.f32 1.0, %v1762_v35  ;;  %v1837_v47 = vmul.f32 %v1836_v23, %v5624_v49  ;;  %v1898_v36 = vmul.f32 %v5682_v20, %v5682_v20  ;;  %v1789_v17 = vadd.f32 1.1283791, %v1788_v63 }
 0xd3a   :  { %v1874_v52 = vadd.f32 0.014752088, %v1873_v2  ;;  %v1863_v58 = vadd.f32 0.0036580483, %v1862_v56  ;;  %v1825_v7 = vadd.f32 0.05243302, %v1824_v1  ;;  %vm1806_vm14 = vweird.f32 %v5663_v27 }
 0xd3b   :  { %v1764_v26 = vmul.f32 %v4724_v37, %v1763_v39  ;;  %v1726_v57 = vpop.f32.mrf.mxu1  ;;  %v1838_v8 = vadd.f32 0.4994258, %v1837_v47  ;;  %v1810_v18 = vand.u32 2147483647, %v5663_v27  ;;  %v5692_v48 = vmin.f32 %v1898_v36, 16.0 }
 0xd3c   :  { %v1875_v50 = vmul.f32 %v1874_v52, %v5652_v21  ;;  %v1864_v16 = vmul.f32 %v1863_v58, %v5652_v21  ;;  %v1826_v35 = vmul.f32 %v1825_v7, %v5624_v49  ;;  %v1790_v5 = vmul.f32 %v1789_v17, %v5592_v28 }
 0xd3d   :  { %v1765_v42 = vadd.f32 %v4724_v37, %v1764_v26  ;;  %v1839_v61 = vmul.f32 %v1838_v8, %v5624_v49  ;;  %v1900_v46 = vmul.f32 2.1237322e-06, %v5692_v48  ;;  %v1911_v22 = vmul.f32 3.8918573e-05, %v5692_v48 }
 0xd3e   :  { %v4726_v53 = vpop.eup %4725  ;;  %v1876_v14 = vadd.f32 0.112945676, %v1875_v50  ;;  %v1865_v38 = vadd.f32 0.05243302, %v1864_v16  ;;  %vm1811_vm0 = vcmp.eq.f32.partialorder %v1810_v18, 8.507059e+37  ;;  %v1728_v28 = vmul.f32 0.5, %v5574_v12 }
 0xd3f   :  { %v1769_v9 = vsel %vm1768_vm7, %v4724_v37, %v1765_v42  ;;  %v1802_v13 = vmul.f32 %v4726_v53, %v5663_v27  ;;  %v1812_v37 = vand.u32 2147483648, %v5663_v27  ;;  %v1840_v24 = vadd.f32 1.0, %v1839_v61 }
 0xd40   :  { %v1774_v41 = vsel %vm1771_vm12, %v1773_v31, %v1769_v9  ;;  %v1877_v32 = vmul.f32 %v1876_v14, %v5652_v21  ;;  %vm1807_vm13 = vweird.f32 %v4726_v53  ;;  %v1901_v0 = vadd.f32 0.00028619796, %v1900_v46 }
 0xd41   :  { %v1803_v15 = vsub.f32 1.0, %v1802_v13  ;;  %v1775_v3 = vmul.f32 %v1774_v41, %v1750_v10  ;;  %4727 = vrcp.f32 %v1840_v24  ;;  %vm1808_vm15 = vmor %vm1806_vm14, %vm1807_vm13  ;;  %v1813_v39 = vor.u32 1.1754944e-38, %v1812_v37 }
 0xd42   :  { %v1878_v29 = vadd.f32 0.4994258, %v1877_v32  ;;  %v1912_v45 = vadd.f32 0.001143296, %v1911_v22  ;;  %v1827_v56 = vadd.f32 0.18741608, %v1826_v35  ;;  %v1902_v2 = vmul.f32 %v1901_v0, %v5692_v48 }
 0xd43   :  { %v1804_v25 = vmul.f32 %v4726_v53, %v1803_v15  ;;  %v4234_v54 = vclamps-f32 %v1775_v3, 1.0  ;;  %v1866_v42 = vmul.f32 %v1865_v38, %v5652_v21  ;;  %v1850_v41 = vand.u32 2147483647, %v1840_v24 }
 0xd44   :  { %v1879_v23 = vmul.f32 %v1878_v29, %v5652_v21  ;;  %v1913_v57 = vmul.f32 %v1912_v45, %v5692_v48  ;;  %v1828_v8 = vmul.f32 %v1827_v56, %v5624_v49  ;;  %v1903_v58 = vadd.f32 0.0036580483, %v1902_v2 }
 0xd45   :  { %v1805_v51 = vadd.f32 %v4726_v53, %v1804_v25  ;;  %v1938_v47 = vadd.f32 1.0, %v4234_v54  ;;  %v1852_v13 = vand.u32 2147483648, %v1840_v24  ;;  %v1867_v17 = vadd.f32 0.18741608, %v1866_v42 }
 0xd46   :  { %v1880_v4 = vadd.f32 1.0, %v1879_v23  ;;  %v1914_v1 = vadd.f32 0.014752088, %v1913_v57  ;;  %v1829_v15 = vadd.f32 1.1283791, %v1828_v8  ;;  %v1904_v12 = vmul.f32 %v1903_v58, %v5692_v48 }
 0xd47   :  { %v1809_v30 = vsel %vm1808_vm15, %v4726_v53, %v1805_v51  ;;  %v4728_v63 = vpop.eup %4727  ;;  %v1729_v53 = vmul.f32 0.5, %v5586_v19  ;;  %v1943_v10 = vmul.f32 %v1938_v47, %v1728_v28  ;;  %vm1846_vm5 = vweird.f32 %v1840_v24 }
 0xd48   :  { %v1814_v26 = vsel %vm1811_vm0, %v1813_v39, %v1809_v30  ;;  %v1842_v31 = vmul.f32 %v4728_v63, %v1840_v24  ;;  %4729 = vrcp.f32 %v1880_v4  ;;  %v1915_v36 = vmul.f32 %v1914_v1, %v5692_v48 }
 0xd49   :  { %v1815_v27 = vmul.f32 %v1814_v26, %v1790_v5  ;;  %vm1847_vm3 = vweird.f32 %v4728_v63  ;;  %v1853_v3 = vor.u32 1.1754944e-38, %v1852_v13  ;;  %v1868_v37 = vmul.f32 %v1867_v17, %v5652_v21 }
 0xd4a   :  { %v1843_v50 = vsub.f32 1.0, %v1842_v31  ;;  %v1916_v14 = vadd.f32 0.112945676, %v1915_v36  ;;  %vm1848_vm6 = vmor %vm1846_vm5, %vm1847_vm3  ;;  %vm1851_vm7 = vcmp.eq.f32.partialorder %v1850_v41, 8.507059e+37  ;;  %v1905_v22 = vadd.f32 0.05243302, %v1904_v12 }
 0xd4b   :  { %v4235_v52 = vclamps-f32 %v1815_v27, 1.0  ;;  %v1830_v51 = vmul.f32 %v1829_v15, %v5614_v60  ;;  %v1869_v29 = vadd.f32 1.1283791, %v1868_v37  ;;  %v1892_v54 = vand.u32 2147483648, %v1880_v4 }
 0xd4c   :  { %v1844_v61 = vmul.f32 %v4728_v63, %v1843_v50  ;;  %v1917_v19 = vmul.f32 %v1916_v14, %v5692_v48  ;;  %v1890_v45 = vand.u32 2147483647, %v1880_v4  ;;  %v1906_v21 = vmul.f32 %v1905_v22, %v5692_v48 }
 0xd4d   :  { %v1939_v9 = vadd.f32 1.0, %v4235_v52  ;;  %vm1886_vm13 = vweird.f32 %v1880_v4  ;;  %v1893_v23 = vor.u32 1.1754944e-38, %v1892_v54  ;;  %v1870_v60 = vmul.f32 %v1869_v29, %v5640_v59 }
 0xd4e   :  { %v1845_v18 = vadd.f32 %v4728_v63, %v1844_v61  ;;  %v4730_v16 = vpop.eup %4729  ;;  %v1918_v35 = vadd.f32 0.4994258, %v1917_v19  ;;  %vm1891_vm15 = vcmp.eq.f32.partialorder %v1890_v45, 8.507059e+37  ;;  %v1907_v57 = vadd.f32 0.18741608, %v1906_v21 }
 0xd4f   :  { %v1944_v7 = vmul.f32 %v1939_v9, %v1729_v53  ;;  %v1882_v25 = vmul.f32 %v4730_v16, %v1880_v4  ;;  %vm1887_vm12 = vweird.f32 %v4730_v16  ;;  %v1730_v52 = vmul.f32 0.5, %v5605_v34 }
 0xd50   :  { %v1849_v32 = vsel %vm1848_vm6, %v4728_v63, %v1845_v18  ;;  %v1919_v24 = vmul.f32 %v1918_v35, %v5692_v48  ;;  %vm1888_vm14 = vmor %vm1886_vm13, %vm1887_vm12  ;;  %v1908_v1 = vmul.f32 %v1907_v57, %v5692_v48  ;;  %v1731_v4 = vmul.f32 0.5, %v5628_v6 }
 0xd51   :  { %v1948_v49 = vpack.c.bf16 %v1944_v7, %v1943_v10  ;;  %v1854_v46 = vsel %vm1851_vm7, %v1853_v3, %v1849_v32  ;;  %v1883_v38 = vsub.f32 1.0, %v1882_v25  ;;  %v1732_v61 = vmul.f32 0.5, %v5668_v33 }
 0xd52   :  { %v1855_v39 = vmul.f32 %v1854_v46, %v1830_v51  ;;  %v1920_v5 = vadd.f32 1.0, %v1919_v24  ;;  %v1909_v59 = vadd.f32 1.1283791, %v1908_v1 }
 0xd53   :  { %2025 = vmatmul.bf16.vlgmr.msrb.gmra.mxu2 %v1948_v49  ;;  %v1884_v0 = vmul.f32 %v4730_v16, %v1883_v38  ;;  %v4598_v49 = vld [vmem:[%s6504_s2 + $0x5c] ss:$0 sm:$0xff] }
 0xd54   :  { %4731 = vrcp.f32 %v1920_v5  ;;  %v4236_v26 = vclamps-f32 %v1855_v39, 1.0  ;;  %v1932_v9 = vand.u32 2147483648, %v1920_v5  ;;  %v1930_v36 = vand.u32 2147483647, %v1920_v5 }
 0xd55   :  { %v1885_v30 = vadd.f32 %v4730_v16, %v1884_v0  ;;  %vm1926_vm3 = vweird.f32 %v1920_v5  ;;  %v1910_v34 = vmul.f32 %v1909_v59, %v5682_v20 }
 0xd56   :  { %v1940_v63 = vadd.f32 1.0, %v4236_v26  ;;  %v1933_v48 = vor.u32 1.1754944e-38, %v1932_v9  ;;  %vm1931_vm6 = vcmp.eq.f32.partialorder %v1930_v36, 8.507059e+37  ;;  %v4538_v36 = vld [vmem:[%s6503_s1 + $0x150] sm:$0xff] }
 0xd57   :  { %v1889_v56 = vsel %vm1888_vm14, %v4730_v16, %v1885_v30  ;;  %2246 = vmatpush.bf16.msrb.mxu0 %v4538_v36  ;;  %v4541_v36 = vld [vmem:[%s6503_s1 + $0x168] sm:$0xff] }
 0xd58   :  { %v1894_v2 = vsel %vm1891_vm15, %v1893_v23, %v1889_v56  ;;  %v1945_v8 = vmul.f32 %v1940_v63, %v1730_v52 }
 0xd59   :  { %v1895_v27 = vmul.f32 %v1894_v2, %v1870_v60 }
 0xd5a   :  { %v4732_v42 = vpop.eup %4731 }
 0xd5b   :  { %v4237_v47 = vclamps-f32 %v1895_v27, 1.0  ;;  %v1922_v28 = vmul.f32 %v4732_v42, %v1920_v5  ;;  %vm1927_vm0 = vweird.f32 %v4732_v42 }
 0xd5c   :  { %vm1928_vm5 = vmor %vm1926_vm3, %vm1927_vm0 }
 0xd5d   :  { %v1941_v31 = vadd.f32 1.0, %v4237_v47  ;;  %v1923_v53 = vsub.f32 1.0, %v1922_v28 }
 0xd5f   :  { %v1946_v58 = vmul.f32 %v1941_v31, %v1731_v4  ;;  %v1924_v50 = vmul.f32 %v4732_v42, %v1923_v53 }
 0xd61   :  { %v1949_v10 = vpack.c.bf16 %v1946_v58, %v1945_v8  ;;  %v1925_v41 = vadd.f32 %v4732_v42, %v1924_v50 }
 0xd63   :  { %2030 = vmatmul.bf16.gmra.mxu2 %v1949_v10  ;;  %v1929_v13 = vsel %vm1928_vm5, %v4732_v42, %v1925_v41  ;;  %v4536_v41 = vld [vmem:[%s6503_s1 + $0x140] sm:$0xff] }
 0xd64   :  { %v1934_v6 = vsel %vm1931_vm6, %v1933_v48, %v1929_v13  ;;  %v4540_v48 = vld [vmem:[%s6503_s1 + $0x160] sm:$0xff]  ;;  %2205 = vmatpush.bf16.msrb.mxu3 %v4536_v41 }
 0xd65   :  { %v1935_v17 = vmul.f32 %v1934_v6, %v1910_v34  ;;  %2287 = vmatpush.bf16.msrb.mxu1 %v4540_v48 }
 0xd67   :  { %v4238_v7 = vclamps-f32 %v1935_v17, 1.0 }
 0xd69   :  { %v1942_v14 = vadd.f32 1.0, %v4238_v7  ;;  %v4535_v7 = vld [vmem:[%s6503_s1 + $0x138] sm:$0xff] }
 0xd6a   :  { %2206 = vmatpush.bf16.msrb.mxu3 %v4535_v7 }
 0xd6b   :  { %v1947_v15 = vmul.f32 %v1942_v14, %v1732_v61  ;;  %v4537_v61 = vld [vmem:[%s6503_s1 + $0x148] sm:$0xff]  ;;  %v4539_v14 = vld [vmem:[%s6503_s1 + $0x158] sm:$0xff] }
 0xd6c   :  { %2247 = vmatpush.bf16.msrb.mxu0 %v4537_v61  ;;  %2288 = vmatpush.bf16.msrb.mxu1 %v4539_v14 }
 0xd6d   :  { %v1950_v12 = vpack.c.bf16 %v1947_v15, %v1947_v15 }
 0xd73   :  { %2035 = vmatmul.bf16.gmra.mxu2 %v1950_v12 }
 0xdd6   :  { %v2026_v18 = vpop.f32.mrf.mxu2 }
 0xdd7   :  { %v2027_v19 = vadd.f32 %v4598_v49, %v2026_v18 }
 0xdd9   :  { %v5725_v16 = vadd.f32 %v2027_v19, %v5478_v62 }
 0xddb   :  { %v2047_v20 = vsel %vm122_vm2, %v5725_v16, 0.0 }
 0xddc   :  { %2048 = vadd.xlane.f32.xlu0 %v2047_v20 }
 0xdde   :  { %v2028_v3 = vpop.f32.mrf.mxu2 }
 0xddf   :  { %v2029_v37 = vadd.f32 %v4598_v49, %v2028_v3 }
 0xde1   :  { %v5730_v33 = vadd.f32 %v2029_v37, %v5484_v11 }
 0xde3   :  { %v2050_v32 = vsel %vm122_vm2, %v5730_v33, 0.0 }
 0xde4   :  { %2051 = vadd.xlane.f32.xlu1 %v2050_v32 }
 0xde6   :  { %v2031_v25 = vpop.f32.mrf.mxu2 }
 0xde7   :  { %v2032_v46 = vadd.f32 %v4598_v49, %v2031_v25 }
 0xde9   :  { %v5735_v22 = vadd.f32 %v2032_v46, %v5492_v43 }
 0xdeb   :  { %v2053_v62 = vsel %vm122_vm2, %v5735_v22, 0.0 }
 0xdec   :  { %2054 = vadd.xlane.f32.xlu2 %v2053_v62 }
 0xdee   :  { %v2033_v35 = vpop.f32.mrf.mxu2 }
 0xdef   :  { %v2034_v51 = vadd.f32 %v4598_v49, %v2033_v35 }
 0xdf1   :  { %v5740_v38 = vadd.f32 %v2034_v51, %v5498_v40  ;;  %v5808_v51 = vld [vmem:[%s6504_s2 + $0x5d] ss:$0 sm:$0xff] }
 0xdf3   :  { %v2056_v11 = vsel %vm122_vm2, %v5740_v38, 0.0 }
 0xdf4   :  { %2057 = vadd.xlane.f32.xlu0 %v2056_v11 }
 0xdf6   :  { %v2036_v29 = vpop.f32.mrf.mxu2 }
 0xdf7   :  { %v2037_v54 = vadd.f32 %v4598_v49, %v2036_v29 }
 0xdf9   :  { %v5745_v24 = vadd.f32 %v2037_v54, %v5504_v55 }
 0xdfb   :  { %v2059_v43 = vsel %vm135_vm4, %v5745_v24, 0.0 }
 0xdfc   :  { %2060 = vadd.xlane.f32.xlu1 %v2059_v43 }
 0xdfe   :  { %v2038_v39 = vpop.f32.mrf.mxu2 }
 0xe4f   :  { %v2049_v0 = vpop.xlane.xlu0 %2048 }
 0xe50   :  { %v2062_v45 = vmul.f32 %v2049_v0, %v4965_v44 }
 0xe52   :  { %v5751_v40 = vsub.f32 %v5725_v16, %v2062_v45  ;;  %v5815_v45 = vld [vmem:[%s6504_s2 + $0x5e] ss:$0 sm:$0xff] }
 0xe54   :  { %v2072_v21 = vmul.f32 %v5751_v40, %v5751_v40 }
 0xe56   :  { %v2077_v5 = vsel %vm122_vm2, %v2072_v21, 0.0 }
 0xe57   :  { %v2052_v30 = vpop.xlane.xlu1 %2051  ;;  %2078 = vadd.xlane.f32.xlu2 %v2077_v5 }
 0xe58   :  { %v2063_v55 = vmul.f32 %v2052_v30, %v4965_v44 }
 0xe5a   :  { %v5758_v23 = vsub.f32 %v5730_v33, %v2063_v55 }
 0xe5c   :  { %v2073_v26 = vmul.f32 %v5758_v23, %v5758_v23 }
 0xe5e   :  { %v2080_v60 = vsel %vm122_vm2, %v2073_v26, 0.0 }
 0xe5f   :  { %2081 = vadd.xlane.f32.xlu0 %v2080_v60  ;;  %v2055_v56 = vpop.xlane.xlu2 %2054 }
 0xe60   :  { %v2064_v2 = vmul.f32 %v2055_v56, %v4965_v44 }
 0xe62   :  { %v5765_v57 = vsub.f32 %v5735_v22, %v2064_v2 }
 0xe64   :  { %v2074_v27 = vmul.f32 %v5765_v57, %v5765_v57 }
 0xe66   :  { %v2083_v63 = vsel %vm122_vm2, %v2074_v27, 0.0 }
 0xe67   :  { %2084 = vadd.xlane.f32.xlu1 %v2083_v63  ;;  %v2058_v47 = vpop.xlane.xlu0 %2057 }
 0xe68   :  { %v2065_v42 = vmul.f32 %v2058_v47, %v4965_v44 }
 0xe6a   :  { %v5772_v1 = vsub.f32 %v5740_v38, %v2065_v42 }
 0xe6c   :  { %v2075_v52 = vmul.f32 %v5772_v1, %v5772_v1 }
 0xe6e   :  { %v2086_v4 = vsel %vm122_vm2, %v2075_v52, 0.0 }
 0xe6f   :  { %v2061_v31 = vpop.xlane.xlu1 %2060  ;;  %2087 = vadd.xlane.f32.xlu2 %v2086_v4 }
 0xe70   :  { %v2066_v28 = vmul.f32 %v2061_v31, %v4965_v44 }
 0xe72   :  { %v5779_v8 = vsub.f32 %v5745_v24, %v2066_v28 }
 0xe74   :  { %v2076_v58 = vmul.f32 %v5779_v8, %v5779_v8 }
 0xe76   :  { %v2089_v53 = vsel %vm135_vm4, %v2076_v58, 0.0 }
 0xe77   :  { %2090 = vadd.xlane.f32.xlu0 %v2089_v53 }
 0xeca   :  { %v2079_v59 = vpop.xlane.xlu2 %2078 }
 0xecb   :  { %v2092_v9 = vmul.f32 %v2079_v59, %v4965_v44  ;;  %v4542_v59 = vld [vmem:[%s6503_s1 + $0x170] sm:$0xff] }
 0xecc   :  { %2485 = vmatpush.bf16.msra.mxu0 %v4542_v59 }
 0xecd   :  { %v2097_v50 = vadd.f32 1e-05, %v2092_v9  ;;  %v4544_v9 = vld [vmem:[%s6503_s1 + $0x180] sm:$0xff] }
 0xece   :  { %2526 = vmatpush.bf16.msra.mxu1 %v4544_v9 }
 0xecf   :  { %4733 = vrsqrt.f32 %v2097_v50  ;;  %vm2108_vm12 = vweird.f32 %v2097_v50 }
 0xed0   :  { %2486 = vmatpush.bf16.msra.mxu0 %v4541_v36 }
 0xed2   :  { %v2082_v10 = vpop.xlane.xlu0 %2081 }
 0xed3   :  { %v2093_v34 = vmul.f32 %v2082_v10, %v4965_v44  ;;  %v4543_v10 = vld [vmem:[%s6503_s1 + $0x178] sm:$0xff] }
 0xed4   :  { %2527 = vmatpush.bf16.msra.mxu1 %v4543_v10 }
 0xed5   :  { %v4734_v13 = vpop.eup %4733  ;;  %v2098_v6 = vadd.f32 1e-05, %v2093_v34 }
 0xed6   :  { %v2103_v17 = vmul.f32 %v4734_v13, %v2097_v50  ;;  %vm2109_vm7 = vweird.f32 %v4734_v13 }
 0xed7   :  { %4735 = vrsqrt.f32 %v2098_v6  ;;  %vm2110_vm13 = vmor %vm2108_vm12, %vm2109_vm7  ;;  %vm2118_vm15 = vweird.f32 %v2098_v6 }
 0xed8   :  { %v2104_v15 = vmul.f32 %v4734_v13, %v2103_v17 }
 0xeda   :  { %v2105_v12 = vmul.f32 0.5, %v2104_v15  ;;  %v2085_v3 = vpop.xlane.xlu1 %2084 }
 0xedb   :  { %v2094_v37 = vmul.f32 %v2085_v3, %v4965_v44 }
 0xedc   :  { %v2106_v49 = vsub.f32 1.5, %v2105_v12 }
 0xedd   :  { %v4736_v18 = vpop.eup %4735  ;;  %v2099_v25 = vadd.f32 1e-05, %v2094_v37 }
 0xede   :  { %v2107_v19 = vmul.f32 %v4734_v13, %v2106_v49  ;;  %v2113_v20 = vmul.f32 %v4736_v18, %v2098_v6  ;;  %vm2119_vm14 = vweird.f32 %v4736_v18 }
 0xedf   :  { %4737 = vrsqrt.f32 %v2099_v25  ;;  %vm2120_vm0 = vmor %vm2118_vm15, %vm2119_vm14  ;;  %vm2128_vm5 = vweird.f32 %v2099_v25 }
 0xee0   :  { %v2114_v32 = vmul.f32 %v4736_v18, %v2113_v20  ;;  %v2111_v46 = vsel %vm2110_vm13, %v4734_v13, %v2107_v19 }
 0xee1   :  { %v2152_v11 = vmul.f32 %v2111_v46, %v5751_v40 }
 0xee2   :  { %v2115_v62 = vmul.f32 0.5, %v2114_v32  ;;  %v2088_v54 = vpop.xlane.xlu2 %2087 }
 0xee3   :  { %v2095_v43 = vmul.f32 %v2088_v54, %v4965_v44  ;;  %v2158_v21 = vmul.f32 %v5808_v51, %v2152_v11 }
 0xee4   :  { %v2116_v35 = vsub.f32 1.5, %v2115_v62 }
 0xee5   :  { %v4738_v0 = vpop.eup %4737  ;;  %v2100_v30 = vadd.f32 1e-05, %v2095_v43  ;;  %v2164_v60 = vadd.f32 %v5815_v45, %v2158_v21  ;;  %v4602_v21 = vld [vmem:[%s6504_s2 + $0x61] ss:$0 sm:$0xff] }
 0xee6   :  { %v2117_v29 = vmul.f32 %v4736_v18, %v2116_v35  ;;  %v2123_v55 = vmul.f32 %v4738_v0, %v2099_v25  ;;  %vm2129_vm3 = vweird.f32 %v4738_v0 }
 0xee7   :  { %4739 = vrsqrt.f32 %v2100_v30  ;;  %vm2130_vm6 = vmor %vm2128_vm5, %vm2129_vm3  ;;  %vm2138_vm12 = vweird.f32 %v2100_v30 }
 0xee8   :  { %v2121_v39 = vsel %vm2120_vm0, %v4736_v18, %v2117_v29  ;;  %v2124_v26 = vmul.f32 %v4738_v0, %v2123_v55 }
 0xee9   :  { %v2153_v5 = vmul.f32 %v2121_v39, %v5758_v23 }
 0xeea   :  { %v2125_v2 = vmul.f32 0.5, %v2124_v26  ;;  %v2091_v27 = vpop.xlane.xlu0 %2090 }
 0xeeb   :  { %v2159_v40 = vmul.f32 %v5808_v51, %v2153_v5  ;;  %v2096_v47 = vmul.f32 %v2091_v27, %v4965_v44 }
 0xeec   :  { %v2126_v42 = vsub.f32 1.5, %v2125_v2 }
 0xeed   :  { %v2165_v56 = vadd.f32 %v5815_v45, %v2159_v40  ;;  %v4740_v52 = vpop.eup %4739  ;;  %v2101_v4 = vadd.f32 1e-05, %v2096_v47 }
 0xeee   :  { %v2127_v23 = vmul.f32 %v4738_v0, %v2126_v42  ;;  %v2133_v31 = vmul.f32 %v4740_v52, %v2100_v30  ;;  %vm2139_vm7 = vweird.f32 %v4740_v52 }
 0xeef   :  { %v5822_v63 = vpack.c.bf16 %v2165_v56, %v2164_v60  ;;  %4741 = vrsqrt.f32 %v2101_v4  ;;  %vm2140_vm13 = vmor %vm2138_vm12, %vm2139_vm7  ;;  %vm2148_vm15 = vweird.f32 %v2101_v4 }
 0xef0   :  { %v2134_v28 = vmul.f32 %v4740_v52, %v2133_v31  ;;  %v2131_v58 = vsel %vm2130_vm6, %v4738_v0, %v2127_v23 }
 0xef1   :  { %4279 = vmatmul.msk.bf16.vlgmr.msrb.gmra.mxu3 %vm122_vm2, %v5822_v63  ;;  %4290 = vmatmul.msk.bf16.vlgmr.msrb.gmra.mxu0 %vm122_vm2, %v5822_v63  ;;  %v2154_v48 = vmul.f32 %v2131_v58, %v5765_v57 }
 0xef2   :  { %4301 = vmatmul.msk.bf16.vlgmr.msrb.gmra.mxu1 %vm122_vm2, %v5822_v63  ;;  %v2135_v53 = vmul.f32 0.5, %v2134_v28 }
 0xef3   :  { %v2160_v7 = vmul.f32 %v5808_v51, %v2154_v48 }
 0xef4   :  { %v2136_v50 = vsub.f32 1.5, %v2135_v53 }
 0xef5   :  { %v4742_v41 = vpop.eup %4741  ;;  %v2166_v49 = vadd.f32 %v5815_v45, %v2160_v7 }
 0xef6   :  { %v2137_v34 = vmul.f32 %v4740_v52, %v2136_v50  ;;  %v2143_v13 = vmul.f32 %v4742_v41, %v2101_v4  ;;  %vm2149_vm14 = vweird.f32 %v4742_v41 }
 0xef7   :  { %vm2150_vm0 = vmor %vm2148_vm15, %vm2149_vm14 }
 0xef8   :  { %v2141_v6 = vsel %vm2140_vm13, %v4740_v52, %v2137_v34  ;;  %v2144_v17 = vmul.f32 %v4742_v41, %v2143_v13 }
 0xef9   :  { %v2155_v61 = vmul.f32 %v2141_v6, %v5772_v1  ;;  %v4603_v6 = vld [vmem:[%s6504_s2 + $0x5f] ss:$0 sm:$0xff] }
 0xefa   :  { %v2145_v14 = vmul.f32 0.5, %v2144_v17 }
 0xefb   :  { %v2161_v15 = vmul.f32 %v5808_v51, %v2155_v61 }
 0xefc   :  { %v2146_v12 = vsub.f32 1.5, %v2145_v14 }
 0xefd   :  { %v2167_v57 = vadd.f32 %v5815_v45, %v2161_v15 }
 0xefe   :  { %v2147_v18 = vmul.f32 %v4742_v41, %v2146_v12 }
 0xeff   :  { %v5849_v19 = vpack.c.bf16 %v2167_v57, %v2166_v49  ;;  %v4546_v49 = vld [vmem:[%s6503_s1 + $0x190] sm:$0xff] }
 0xf00   :  { %v2151_v20 = vsel %vm2150_vm0, %v4742_v41, %v2147_v18 }
 0xf01   :  { %4280 = vmatmul.msk.bf16.gmra.mxu3 %vm122_vm2, %v5849_v19  ;;  %4291 = vmatmul.msk.bf16.gmra.mxu0 %vm122_vm2, %v5849_v19  ;;  %v2156_v1 = vmul.f32 %v2151_v20, %v5779_v8 }
 0xf02   :  { %4302 = vmatmul.msk.bf16.gmra.mxu1 %vm122_vm2, %v5849_v19 }
 0xf03   :  { %v2162_v3 = vmul.f32 %v5808_v51, %v2156_v1  ;;  %v4545_v1 = vld [vmem:[%s6503_s1 + $0x188] sm:$0xff] }
 0xf05   :  { %v2168_v37 = vadd.f32 %v5815_v45, %v2162_v3  ;;  %v4601_v45 = vld [vmem:[%s6504_s2 + $0x60] ss:$0 sm:$0xff] }
 0xf07   :  { %v5860_v32 = vpack.c.bf16 %v2168_v37, %v2168_v37 }
 0xf11   :  { %4281 = vmatmul.msk.bf16.gmra.mxu3 %vm122_vm2, %v5860_v32  ;;  %4292 = vmatmul.msk.bf16.gmra.mxu0 %vm122_vm2, %v5860_v32 }
 0xf12   :  { %4303 = vmatmul.msk.bf16.gmra.mxu1 %vm122_vm2, %v5860_v32 }
 0xf21   :  { %4318 = vmatmul.msk.bf16.vlgmr.msra.gmra.mxu0 %vm122_vm2, %v5822_v63 }
 0xf22   :  { %4329 = vmatmul.msk.bf16.vlgmr.msra.gmra.mxu1 %vm122_vm2, %v5822_v63 }
 0xf31   :  { %4319 = vmatmul.msk.bf16.gmra.mxu0 %vm122_vm2, %v5849_v19 }
 0xf32   :  { %4330 = vmatmul.msk.bf16.gmra.mxu1 %vm122_vm2, %v5849_v19 }
 0xf41   :  { %4320 = vmatmul.msk.bf16.gmra.mxu0 %vm122_vm2, %v5860_v32 }
 0xf42   :  { %4331 = vmatmul.msk.bf16.gmra.mxu1 %vm122_vm2, %v5860_v32 }
 0xf6e   :  { %v2249_v8 = vpop.f32.mrf.mxu0 }
 0xf6f   :  { %v2290_v25 = vpop.f32.mrf.mxu1  ;;  %v2250_v41 = vadd.f32 %v4601_v45, %v2249_v8 }
 0xf70   :  { %v2291_v59 = vadd.f32 %v4602_v21, %v2290_v25 }
 0xf74   :  { %v2208_v46 = vpop.f32.mrf.mxu3 }
 0xf75   :  { %v2209_v14 = vadd.f32 %v4603_v6, %v2208_v46  ;;  %v4605_v46 = vld [vmem:[%s6504_s2 + $0x63] ss:$0 sm:$0xff] }
 0xf76   :  { %v2251_v62 = vpop.f32.mrf.mxu0 }
 0xf77   :  { %v2292_v35 = vpop.f32.mrf.mxu1  ;;  %v2252_v9 = vadd.f32 %v4601_v45, %v2251_v62 }
 0xf78   :  { %v2293_v31 = vadd.f32 %v4602_v21, %v2292_v35 }
 0xf79   :  { %v2307_v13 = vpack.c.bf16 %v2252_v9, %v2250_v41  ;;  %v5948_v41 = vld [vmem:[%s6504_s2 + $0x40] sm:$0xff] }
 0xf7a   :  { %v2419_v50 = vpack.c.bf16 %v2293_v31, %v2291_v59  ;;  %v5941_v59 = vld [vmem:[%s6504_s2 + $0x38] sm:$0xff] }
 0xf7b   :  { %v2320_v17 = vsel %vm394_vm8, %v2307_v13, 0 }
 0xf7c   :  { %v2210_v51 = vpop.f32.mrf.mxu3 }
 0xf7d   :  { %v2211_v7 = vadd.f32 %v4603_v6, %v2210_v51 }
 0xf7e   :  { %v2254_v11 = vpop.f32.mrf.mxu0 }
 0xf7f   :  { %v2295_v29 = vpop.f32.mrf.mxu1  ;;  %v2255_v52 = vadd.f32 %v4601_v45, %v2254_v11  ;;  %v2304_v12 = vpack.c.bf16 %v2211_v7, %v2209_v14  ;;  %v5955_v7 = vld [vmem:[%s6504_s2 + $0x48] sm:$0x3] }
 0xf80   :  { %v2296_v4 = vadd.f32 %v4602_v21, %v2295_v29 }
 0xf84   :  { %v2213_v54 = vpop.f32.mrf.mxu3 }
 0xf85   :  { %v2214_v37 = vadd.f32 %v4603_v6, %v2213_v54 }
 0xf86   :  { %v2256_v43 = vpop.f32.mrf.mxu0 }
 0xf87   :  { %v2297_v39 = vpop.f32.mrf.mxu1  ;;  %v2257_v56 = vadd.f32 %v4601_v45, %v2256_v43 }
 0xf88   :  { %v2298_v2 = vadd.f32 %v4602_v21, %v2297_v39 }
 0xf89   :  { %v2308_v53 = vpack.c.bf16 %v2257_v56, %v2255_v52 }
 0xf8a   :  { %v2420_v28 = vpack.c.bf16 %v2298_v2, %v2296_v4 }
 0xf8b   :  { %v2323_v36 = vsel %vm394_vm8, %v2308_v53, 0 }
 0xf8c   :  { %v2215_v0 = vpop.f32.mrf.mxu3 }
 0xf8d   :  { %v2216_v20 = vadd.f32 %v4603_v6, %v2215_v0 }
 0xf8e   :  { %v2259_v5 = vpop.f32.mrf.mxu0 }
 0xf8f   :  { %v2260_v30 = vadd.f32 %v4601_v45, %v2259_v5  ;;  %v2300_v55 = vpop.f32.mrf.mxu1  ;;  %v2305_v25 = vpack.c.bf16 %v2216_v20, %v2214_v37  ;;  %v4606_v37 = vld [vmem:[%s6504_s2 + $0x64] ss:$0 sm:$0xff] }
 0xf90   :  { %v2301_v40 = vadd.f32 %v4602_v21, %v2300_v55 }
 0xf91   :  { %v2309_v26 = vpack.c.bf16 %v2260_v30, %v2260_v30 }
 0xf92   :  { %v2421_v60 = vpack.c.bf16 %v2301_v40, %v2301_v40 }
 0xf93   :  { %v2326_v27 = vsel %vm394_vm8, %v2309_v26, 0 }
 0xf94   :  { %v2432_v47 = vsel %vm93_vm1, %v2421_v60, 0  ;;  %v2218_v42 = vpop.f32.mrf.mxu3  ;;  %2333 = vmatpush.bf16.xpose.msra.mxu2 %v2326_v27  ;;  %v5927_v27 = vld [vmem:[%s6504_s2 + $0x28] sm:$0xff] }
 0xf95   :  { %2439 = vmatpush.bf16.msra.mxu3 %v2432_v47  ;;  %v2219_v39 = vadd.f32 %v4603_v6, %v2218_v42 }
 0xf96   :  { %v2261_v23 = vpop.f32.mrf.mxu0 }
 0xf97   :  { %v2302_v58 = vpop.f32.mrf.mxu1  ;;  %v2306_v5 = vpack.c.bf16 %v2219_v39, %v2219_v39  ;;  %v5934_v23 = vld [vmem:[%s6504_s2 + $0x30] sm:$0xff] }
 0xf99   :  { %2440 = vmatpush.bf16.msra.mxu3 %v2420_v28 }
 0xf9c   :  { %v2220_v10 = vpop.f32.mrf.mxu3  ;;  %2334 = vmatpush.bf16.xpose.msra.mxu2 %v2323_v36 }
 0xf9d   :  { %2441 = vmatpush.bf16.msra.mxu3 %v2419_v50 }
 0xf9e   :  { %v5889_v48 = vpop.f32.mrf.mxu0 }
 0xf9f   :  { %v2529_v34 = vpop.f32.mrf.mxu1 }
 0xfa0   :  { %v2530_v40 = vadd.f32 %v4605_v46, %v2529_v34 }
 0xfa4   :  { %2335 = vmatpush.bf16.xpose.msra.mxu2 %v2320_v17 }
 0xfa6   :  { %v5895_v61 = vpop.f32.mrf.mxu0 }
 0xfa7   :  { %v2531_v15 = vpop.f32.mrf.mxu1 }
 0xfa8   :  { %v2532_v30 = vadd.f32 %v4605_v46, %v2531_v15 }
 0xfaa   :  { %v2587_v26 = vpack.c.bf16 %v2532_v30, %v2530_v40 }
 0xfab   :  { %4304 = vmatmul.msk.bf16.vlgmr.msra.gmra.mxu2 %vm394_vm8, %v2304_v12 }
 0xfac   :  { %2567 = vmatpush.bf16.msrb.mxu2 %v4546_v49  ;;  %v2600_v60 = vsel %vm394_vm8, %v2587_v26, 0 }
 0xfae   :  { %v5901_v57 = vpop.f32.mrf.mxu0 }
 0xfaf   :  { %v2534_v18 = vpop.f32.mrf.mxu1 }
 0xfb0   :  { %2568 = vmatpush.bf16.msrb.mxu2 %v4545_v1  ;;  %v2535_v54 = vadd.f32 %v4605_v46, %v2534_v18 }
 0xfb6   :  { %v5906_v3 = vpop.f32.mrf.mxu0 }
 0xfb7   :  { %v2536_v8 = vpop.f32.mrf.mxu1 }
 0xfb8   :  { %v2537_v29 = vadd.f32 %v4605_v46, %v2536_v8 }
 0xfba   :  { %v2588_v21 = vpack.c.bf16 %v2537_v29, %v2535_v54 }
 0xfbb   :  { %4305 = vmatmul.msk.bf16.gmra.mxu2 %vm394_vm8, %v2305_v25 }
 0xfbc   :  { %v2603_v55 = vsel %vm394_vm8, %v2588_v21, 0 }
 0xfbe   :  { %v5912_v62 = vpop.f32.mrf.mxu0 }
 0xfbf   :  { %v2539_v35 = vpop.f32.mrf.mxu1 }
 0xfc0   :  { %v2540_v51 = vadd.f32 %v4605_v46, %v2539_v35 }
 0xfc2   :  { %v2589_v11 = vpack.c.bf16 %v2540_v51, %v2540_v51 }
 0xfc4   :  { %v2606_v43 = vsel %vm394_vm8, %v2589_v11, 0 }
 0xfc5   :  { %2613 = vmatpush.bf16.xpose.msrb.mxu3 %v2606_v43 }
 0xfc6   :  { %v2500_v0 = vpop.f32.mrf.mxu0 }
 0xfc7   :  { %v2541_v45 = vpop.f32.mrf.mxu1 }
 0xfcb   :  { %4306 = vmatmul.msk.bf16.gmra.mxu2 %vm394_vm8, %v2306_v5 }
 0xfcd   :  { %2614 = vmatpush.bf16.xpose.msrb.mxu3 %v2603_v55 }
 0xfd5   :  { %2615 = vmatpush.bf16.xpose.msrb.mxu3 %v2600_v60 }
 0xfdb   :  { %4340 = vmatmul.msk.bf16.vlgmr.msrb.gmra.mxu2 %vm122_vm2, %v5822_v63 }
 0xfeb   :  { %4341 = vmatmul.msk.bf16.gmra.mxu2 %vm122_vm2, %v5849_v19 }
 0xffb   :  { %4342 = vmatmul.msk.bf16.gmra.mxu2 %vm122_vm2, %v5860_v32 }
0x102e   :  { %v2337_v56 = vpop.f32.mrf.mxu2 }
0x102f   :  { %v2351_v2 = vmul.f32 0.35355338, %v2337_v56 }
0x1031   :  { %v2356_v47 = vadd.f32 %v5927_v27, %v2351_v2 }
0x1033   :  { %v2361_v42 = vsel %vm446_vm9, %v2356_v47, -inf }
0x1034   :  { %2362 = vmax.xlane.f32.xlu1 %v2361_v42 }
0x1036   :  { %v2339_v52 = vpop.f32.mrf.mxu2 }
0x1037   :  { %v2352_v4 = vmul.f32 0.35355338, %v2339_v52 }
0x1039   :  { %v2357_v31 = vadd.f32 %v5934_v23, %v2352_v4 }
0x103b   :  { %v2364_v28 = vsel %vm446_vm9, %v2357_v31, -inf }
0x103c   :  { %2365 = vmax.xlane.f32.xlu2 %v2364_v28 }
0x103e   :  { %v2342_v58 = vpop.f32.mrf.mxu2 }
0x103f   :  { %v2353_v53 = vmul.f32 0.35355338, %v2342_v58 }
0x1041   :  { %v2358_v9 = vadd.f32 %v5941_v59, %v2353_v53 }
0x1043   :  { %v2367_v50 = vsel %vm446_vm9, %v2358_v9, -inf }
0x1044   :  { %2368 = vmax.xlane.f32.xlu0 %v2367_v50 }
0x1046   :  { %v2344_v36 = vpop.f32.mrf.mxu2 }
0x1047   :  { %v2354_v10 = vmul.f32 0.35355338, %v2344_v36 }
0x1049   :  { %v2359_v34 = vadd.f32 %v5948_v41, %v2354_v10 }
0x104b   :  { %v2370_v13 = vsel %vm446_vm9, %v2359_v34, -inf }
0x104c   :  { %2371 = vmax.xlane.f32.xlu1 %v2370_v13 }
0x104e   :  { %v2347_v6 = vpop.f32.mrf.mxu2 }
0x104f   :  { %v2355_v17 = vmul.f32 0.35355338, %v2347_v6 }
0x1051   :  { %v2360_v14 = vadd.f32 %v5955_v7, %v2355_v17 }
0x1053   :  { %v2373_v15 = vsel %vm459_vm10, %v2360_v14, -inf }
0x1054   :  { %2374 = vmax.xlane.f32.xlu2 %v2373_v15 }
0x1056   :  { %v2349_v12 = vpop.f32.mrf.mxu2 }
0x105e   :  { %v2570_v49 = vpop.f32.mrf.mxu2 }
0x105f   :  { %v2571_v54 = vadd.f32 %v4606_v37, %v2570_v49 }
0x1066   :  { %v2572_v18 = vpop.f32.mrf.mxu2 }
0x1067   :  { %v2573_v29 = vadd.f32 %v4606_v37, %v2572_v18 }
0x1069   :  { %v2699_v0 = vpack.c.bf16 %v2573_v29, %v2571_v54  ;;  %v4604_v54 = vld [vmem:[%s6504_s2 + $0x62] ss:$0 sm:$0xff] }
0x106e   :  { %v2575_v20 = vpop.f32.mrf.mxu2 }
0x106f   :  { %v2576_v11 = vadd.f32 %v4606_v37, %v2575_v20 }
0x1076   :  { %v2577_v1 = vpop.f32.mrf.mxu2 }
0x1077   :  { %v2578_v35 = vadd.f32 %v4606_v37, %v2577_v1 }
0x1079   :  { %v2700_v43 = vpack.c.bf16 %v2578_v35, %v2576_v11 }
0x107e   :  { %v2580_v8 = vpop.f32.mrf.mxu2 }
0x107f   :  { %v2581_v25 = vadd.f32 %v4606_v37, %v2580_v8 }
0x1081   :  { %v2701_v46 = vpack.c.bf16 %v2581_v25, %v2581_v25 }
0x1083   :  { %v2712_v51 = vsel %vm93_vm1, %v2701_v46, 0 }
0x1084   :  { %2719 = vmatpush.bf16.msrb.mxu0 %v2712_v51 }
0x1086   :  { %v2582_v39 = vpop.f32.mrf.mxu2 }
0x1088   :  { %2720 = vmatpush.bf16.msrb.mxu0 %v2700_v43 }
0x108c   :  { %2721 = vmatpush.bf16.msrb.mxu0 %v2699_v0  ;;  %v2491_v0 = vadd.f32 %v4604_v54, %v5895_v61 }
0x10a7   :  { %v2363_v45 = vpop.xlane.xlu1 %2362 }
0x10a8   :  { %v2376_v21 = vsub.f32 %v2356_v47, %v2363_v45  ;;  %v2489_v45 = vadd.f32 %v4604_v54, %v5889_v48  ;;  %v2499_v48 = vadd.f32 %v4604_v54, %v5912_v62 }
0x10aa   :  { %v2381_v5 = vmul.f32 1.442695, %v2376_v21  ;;  %v2584_v21 = vpack.c.bf16 %v2491_v0, %v2489_v45 }
0x10ac   :  { %4743 = vpow2.f32 %v2381_v5  ;;  %v4548_v5 = vld [vmem:[%s6503_s1 + $0x1a0] sm:$0xff] }
0x10af   :  { %v2366_v30 = vpop.xlane.xlu2 %2365 }
0x10b0   :  { %v2377_v55 = vsub.f32 %v2357_v31, %v2366_v30  ;;  %v4547_v30 = vld [vmem:[%s6503_s1 + $0x198] sm:$0xff] }
0x10b2   :  { %v4744_v40 = vpop.eup %4743  ;;  %v2383_v26 = vmul.f32 1.442695, %v2377_v55  ;;  %v2496_v55 = vadd.f32 %v4604_v54, %v5906_v3 }
0x10b3   :  { %v2391_v60 = vsel %vm446_vm9, %v4744_v40, 0.0 }
0x10b4   :  { %4745 = vpow2.f32 %v2383_v26  ;;  %2392 = vadd.xlane.f32.xlu0 %v2391_v60  ;;  %v2586_v26 = vpack.c.bf16 %v2499_v48, %v2499_v48  ;;  %v2460_v60 = vld [vmem:[%s6503_s1 + $0x1f8] sm:$0xf] }
0x10b7   :  { %v2369_v56 = vpop.xlane.xlu0 %2368 }
0x10b8   :  { %v2378_v2 = vsub.f32 %v2358_v9, %v2369_v56  ;;  %v2786_v56 = vsel %vm837_vm11, %v2460_v60, 0 }
0x10b9   :  { %2795 = vmatpush.bf16.msra.mxu2 %v2786_v56 }
0x10ba   :  { %v4746_v42 = vpop.eup %4745  ;;  %v2385_v52 = vmul.f32 1.442695, %v2378_v2 }
0x10bb   :  { %v2394_v4 = vsel %vm446_vm9, %v4746_v42, 0.0 }
0x10bc   :  { %4747 = vpow2.f32 %v2385_v52  ;;  %2395 = vadd.xlane.f32.xlu1 %v2394_v4 }
0x10bf   :  { %v2372_v28 = vpop.xlane.xlu1 %2371 }
0x10c0   :  { %v2379_v47 = vsub.f32 %v2359_v34, %v2372_v28 }
0x10c2   :  { %v4748_v58 = vpop.eup %4747  ;;  %v2387_v53 = vmul.f32 1.442695, %v2379_v47 }
0x10c3   :  { %v2397_v31 = vsel %vm446_vm9, %v4748_v58, 0.0 }
0x10c4   :  { %4749 = vpow2.f32 %v2387_v53  ;;  %2398 = vadd.xlane.f32.xlu2 %v2397_v31 }
0x10c7   :  { %v2375_v50 = vpop.xlane.xlu2 %2374 }
0x10c8   :  { %v2380_v36 = vsub.f32 %v2360_v14, %v2375_v50 }
0x10ca   :  { %v4750_v10 = vpop.eup %4749  ;;  %v2389_v13 = vmul.f32 1.442695, %v2380_v36 }
0x10cb   :  { %v2400_v9 = vsel %vm446_vm9, %v4750_v10, 0.0 }
0x10cc   :  { %4751 = vpow2.f32 %v2389_v13  ;;  %2401 = vadd.xlane.f32.xlu0 %v2400_v9 }
0x10d2   :  { %v4752_v6 = vpop.eup %4751 }
0x10d3   :  { %v2403_v17 = vsel %vm459_vm10, %v4752_v6, 0.0 }
0x10d4   :  { %2404 = vadd.xlane.f32.xlu1 %v2403_v17 }
0x1127   :  { %v2393_v15 = vpop.xlane.xlu0 %2392 }
0x1128   :  { %4753 = vrcp.f32 %v2393_v15 }
0x112e   :  { %v4754_v12 = vpop.eup %4753 }
0x112f   :  { %v2396_v34 = vpop.xlane.xlu1 %2395  ;;  %v2411_v18 = vmul.f32 %v4754_v12, %v4744_v40  ;;  %v2494_v40 = vadd.f32 %v4604_v54, %v5901_v57 }
0x1130   :  { %4755 = vrcp.f32 %v2396_v34 }
0x1131   :  { %v2585_v61 = vpack.c.bf16 %v2496_v55, %v2494_v40 }
0x1136   :  { %v4756_v49 = vpop.eup %4755 }
0x1137   :  { %v2412_v20 = vmul.f32 %v4756_v49, %v4746_v42  ;;  %v2399_v14 = vpop.xlane.xlu2 %2398 }
0x1138   :  { %4757 = vrcp.f32 %v2399_v14 }
0x1139   :  { %v2416_v1 = vpack.c.bf16 %v2412_v20, %v2411_v18 }
0x113b   :  { %4307 = vmatmul.msk.bf16.vlgmr.msra.gmra.mxu3 %vm446_vm9, %v2416_v1 }
0x113c   :  { %2835 = vmatpush.bf16.msra.mxu3 %v4548_v5 }
0x113e   :  { %v4758_v8 = vpop.eup %4757 }
0x113f   :  { %v2402_v37 = vpop.xlane.xlu0 %2401  ;;  %v2413_v46 = vmul.f32 %v4758_v8, %v4748_v58 }
0x1140   :  { %4759 = vrcp.f32 %v2402_v37  ;;  %2836 = vmatpush.bf16.msra.mxu3 %v4547_v30 }
0x1146   :  { %v4760_v25 = vpop.eup %4759 }
0x1147   :  { %v2414_v35 = vmul.f32 %v4760_v25, %v4750_v10  ;;  %v2405_v51 = vpop.xlane.xlu1 %2404 }
0x1148   :  { %4761 = vrcp.f32 %v2405_v51 }
0x1149   :  { %v2417_v11 = vpack.c.bf16 %v2414_v35, %v2413_v46  ;;  %v6014_v35 = vld [vmem:[%s6504_s2 + $0x65] ss:$0 sm:$0xff] }
0x114b   :  { %4308 = vmatmul.msk.bf16.gmra.mxu3 %vm446_vm9, %v2417_v11 }
0x114e   :  { %v4762_v29 = vpop.eup %4761 }
0x114f   :  { %v2415_v43 = vmul.f32 %v4762_v29, %v4752_v6 }
0x1151   :  { %v2418_v39 = vpack.c.bf16 %v2415_v43, %v2415_v43 }
0x115b   :  { %4309 = vmatmul.msk.bf16.gmra.mxu3 %vm446_vm9, %v2418_v39 }
0x116b   :  { %4343 = vmatmul.msk.bf16.vlgmr.msrb.gmra.mxu3 %vm394_vm8, %v2584_v21 }
0x117b   :  { %4344 = vmatmul.msk.bf16.gmra.mxu3 %vm394_vm8, %v2585_v61 }
0x118b   :  { %4345 = vmatmul.msk.bf16.gmra.mxu3 %vm394_vm8, %v2586_v26 }
0x119b   :  { %4363 = vmatmul.msk.bf16.vlgmr.msra.gmra.mxu3 %vm122_vm2, %v5822_v63 }
0x11ab   :  { %4364 = vmatmul.msk.bf16.gmra.mxu3 %vm122_vm2, %v5849_v19 }
0x11bb   :  { %4365 = vmatmul.msk.bf16.gmra.mxu3 %vm122_vm2, %v5860_v32 }
0x11be   :  { %v2443_v57 = vpop.f32.mrf.mxu3 }
0x11c6   :  { %v2445_v3 = vpop.f32.mrf.mxu3 }
0x11c7   :  { %v2457_v62 = vpack.c.bf16 %v2445_v3, %v2443_v57 }
0x11c9   :  { %4352 = vmatmul.msk.bf16.vlgmr.msra.gmra.mxu2 %vm394_vm8, %v2457_v62 }
0x11ce   :  { %v2448_v2 = vpop.f32.mrf.mxu3 }
0x11d6   :  { %v2450_v42 = vpop.f32.mrf.mxu3 }
0x11d7   :  { %v2458_v52 = vpack.c.bf16 %v2450_v42, %v2448_v2 }
0x11d9   :  { %4353 = vmatmul.msk.bf16.gmra.mxu2 %vm394_vm8, %v2458_v52 }
0x11de   :  { %v2453_v4 = vpop.f32.mrf.mxu3 }
0x11df   :  { %v2459_v47 = vpack.c.bf16 %v2453_v4, %v2453_v4 }
0x11e6   :  { %v2455_v28 = vpop.f32.mrf.mxu3 }
0x11e9   :  { %4354 = vmatmul.msk.bf16.gmra.mxu2 %vm394_vm8, %v2459_v47 }
0x11ee   :  { %v2617_v58 = vpop.f32.mrf.mxu3 }
0x11ef   :  { %v2631_v53 = vmul.f32 0.35355338, %v2617_v58 }
0x11f1   :  { %v2636_v31 = vadd.f32 %v5927_v27, %v2631_v53 }
0x11f3   :  { %v2641_v50 = vsel %vm446_vm9, %v2636_v31, -inf }
0x11f4   :  { %2642 = vmax.xlane.f32.xlu2 %v2641_v50 }
0x11f6   :  { %v2619_v36 = vpop.f32.mrf.mxu3 }
0x11f7   :  { %v2632_v10 = vmul.f32 0.35355338, %v2619_v36 }
0x11f9   :  { %v2637_v13 = vadd.f32 %v5934_v23, %v2632_v10 }
0x11fb   :  { %v2644_v9 = vsel %vm446_vm9, %v2637_v13, -inf }
0x11fc   :  { %2645 = vmax.xlane.f32.xlu0 %v2644_v9 }
0x11fe   :  { %v2622_v6 = vpop.f32.mrf.mxu3 }
0x11ff   :  { %v2633_v17 = vmul.f32 0.35355338, %v2622_v6 }
0x1201   :  { %v2638_v15 = vadd.f32 %v5941_v59, %v2633_v17 }
0x1203   :  { %v2647_v34 = vsel %vm446_vm9, %v2638_v15, -inf }
0x1204   :  { %2648 = vmax.xlane.f32.xlu1 %v2647_v34 }
0x1206   :  { %v2624_v12 = vpop.f32.mrf.mxu3 }
0x1207   :  { %v2634_v49 = vmul.f32 0.35355338, %v2624_v12 }
0x1209   :  { %v2639_v18 = vadd.f32 %v5948_v41, %v2634_v49 }
0x120b   :  { %v2650_v20 = vsel %vm446_vm9, %v2639_v18, -inf }
0x120c   :  { %2651 = vmax.xlane.f32.xlu2 %v2650_v20 }
0x120e   :  { %v2627_v1 = vpop.f32.mrf.mxu3 }
0x120f   :  { %v2635_v14 = vmul.f32 0.35355338, %v2627_v1 }
0x1211   :  { %v2640_v37 = vadd.f32 %v5955_v7, %v2635_v14  ;;  %v4550_v14 = vld [vmem:[%s6503_s1 + $0x1b0] sm:$0xff] }
0x1212   :  { %2876 = vmatpush.bf16.msra.mxu0 %v4550_v14  ;;  %v4608_v14 = vld [vmem:[%s6504_s2 + $0x66] ss:$0 sm:$0xff] }
0x1213   :  { %v2653_v8 = vsel %vm459_vm10, %v2640_v37, -inf }
0x1214   :  { %2654 = vmax.xlane.f32.xlu0 %v2653_v8 }
0x1216   :  { %v2629_v25 = vpop.f32.mrf.mxu3 }
0x121e   :  { %v2838_v46 = vpop.f32.mrf.mxu3 }
0x121f   :  { %v6017_v11 = vadd.f32 %v6014_v35, %v2838_v46 }
0x1226   :  { %v2840_v51 = vpop.f32.mrf.mxu3 }
0x1227   :  { %v6020_v29 = vadd.f32 %v6014_v35, %v2840_v51 }
0x1229   :  { %v2934_v43 = vpack.c.bf16 %v6020_v29, %v6017_v11 }
0x122e   :  { %v2843_v39 = vpop.f32.mrf.mxu3 }
0x122f   :  { %v6025_v0 = vadd.f32 %v6014_v35, %v2843_v39 }
0x1236   :  { %v2845_v54 = vpop.f32.mrf.mxu3 }
0x1237   :  { %v6028_v45 = vadd.f32 %v6014_v35, %v2845_v54  ;;  %v4549_v54 = vld [vmem:[%s6503_s1 + $0x1a8] sm:$0xff] }
0x1238   :  { %2877 = vmatpush.bf16.msra.mxu0 %v4549_v54 }
0x1239   :  { %v2935_v21 = vpack.c.bf16 %v6028_v45, %v6025_v0 }
0x123e   :  { %v6032_v5 = vpop.f32.mrf.mxu3 }
0x123f   :  { %v2849_v11 = vadd.f32 %v6014_v35, %v6032_v5 }
0x1246   :  { %v2850_v30 = vpop.f32.mrf.mxu3 }
0x124c   :  { %v6034_v55 = vpop.f32.mrf.mxu2 }
0x1254   :  { %v6036_v40 = vpop.f32.mrf.mxu2 }
0x125c   :  { %v6038_v61 = vpop.f32.mrf.mxu2 }
0x1264   :  { %v6040_v48 = vpop.f32.mrf.mxu2 }
0x1267   :  { %v2643_v26 = vpop.xlane.xlu2 %2642 }
0x1268   :  { %v2656_v60 = vsub.f32 %v2636_v31, %v2643_v26 }
0x126a   :  { %v2661_v56 = vmul.f32 1.442695, %v2656_v60 }
0x126c   :  { %4763 = vpow2.f32 %v2661_v56  ;;  %v6042_v57 = vpop.f32.mrf.mxu2 }
0x126f   :  { %v2646_v3 = vpop.xlane.xlu0 %2645 }
0x1270   :  { %v2657_v62 = vsub.f32 %v2637_v13, %v2646_v3 }
0x1272   :  { %v4764_v2 = vpop.eup %4763  ;;  %v2663_v42 = vmul.f32 1.442695, %v2657_v62 }
0x1273   :  { %v2671_v52 = vsel %vm446_vm9, %v4764_v2, 0.0 }
0x1274   :  { %4765 = vpow2.f32 %v2663_v42  ;;  %2672 = vadd.xlane.f32.xlu1 %v2671_v52  ;;  %v2809_v4 = vpop.f32.mrf.mxu2 }
0x1277   :  { %v2649_v28 = vpop.xlane.xlu1 %2648 }
0x1278   :  { %v2658_v47 = vsub.f32 %v2638_v15, %v2649_v28  ;;  %v2740_v28 = vld [vmem:[%s6503_s1 + $0x1fc] sm:$0xf] }
0x127a   :  { %v4766_v58 = vpop.eup %4765  ;;  %v2665_v53 = vmul.f32 1.442695, %v2658_v47  ;;  %v2751_v47 = vsel %vm837_vm11, %v2740_v28, 0 }
0x127b   :  { %v2674_v50 = vsel %vm446_vm9, %v4766_v58, 0.0  ;;  %2760 = vmatpush.bf16.msrb.mxu1 %v2751_v47 }
0x127c   :  { %4767 = vpow2.f32 %v2665_v53  ;;  %2675 = vadd.xlane.f32.xlu2 %v2674_v50 }
0x127f   :  { %v2652_v31 = vpop.xlane.xlu2 %2651 }
0x1280   :  { %v2659_v36 = vsub.f32 %v2639_v18, %v2652_v31 }
0x1282   :  { %v4768_v10 = vpop.eup %4767  ;;  %v2667_v9 = vmul.f32 1.442695, %v2659_v36  ;;  %v4552_v36 = vld [vmem:[%s6503_s1 + $0x1c0] sm:$0xff] }
0x1283   :  { %v2677_v13 = vsel %vm446_vm9, %v4768_v10, 0.0  ;;  %2917 = vmatpush.bf16.msra.mxu1 %v4552_v36 }
0x1284   :  { %4769 = vpow2.f32 %v2667_v9  ;;  %2678 = vadd.xlane.f32.xlu0 %v2677_v13  ;;  %v4551_v13 = vld [vmem:[%s6503_s1 + $0x1b8] sm:$0xff] }
0x1287   :  { %v2655_v6 = vpop.xlane.xlu0 %2654  ;;  %2918 = vmatpush.bf16.msra.mxu1 %v4551_v13 }
0x1288   :  { %v2660_v17 = vsub.f32 %v2640_v37, %v2655_v6 }
0x128a   :  { %v4770_v34 = vpop.eup %4769  ;;  %v2669_v12 = vmul.f32 1.442695, %v2660_v17 }
0x128b   :  { %v2680_v15 = vsel %vm446_vm9, %v4770_v34, 0.0 }
0x128c   :  { %4771 = vpow2.f32 %v2669_v12  ;;  %2681 = vadd.xlane.f32.xlu1 %v2680_v15 }
0x1292   :  { %v4772_v49 = vpop.eup %4771 }
0x1293   :  { %v2683_v20 = vsel %vm459_vm10, %v4772_v49, 0.0 }
0x1294   :  { %2684 = vadd.xlane.f32.xlu2 %v2683_v20 }
0x12e7   :  { %v2673_v1 = vpop.xlane.xlu1 %2672 }
0x12e8   :  { %4773 = vrcp.f32 %v2673_v1  ;;  %v4553_v1 = vld [vmem:[%s6503_s1 + $0x1c8] sm:$0xff] }
0x12ee   :  { %v4774_v37 = vpop.eup %4773 }
0x12ef   :  { %v2676_v18 = vpop.xlane.xlu2 %2675  ;;  %v2691_v25 = vmul.f32 %v4774_v37, %v4764_v2 }
0x12f0   :  { %4775 = vrcp.f32 %v2676_v18 }
0x12f6   :  { %v4776_v8 = vpop.eup %4775 }
0x12f7   :  { %v2692_v46 = vmul.f32 %v4776_v8, %v4766_v58  ;;  %v2679_v39 = vpop.xlane.xlu0 %2678 }
0x12f8   :  { %4777 = vrcp.f32 %v2679_v39 }
0x12f9   :  { %v2696_v51 = vpack.c.bf16 %v2692_v46, %v2691_v25 }
0x12fb   :  { %4346 = vmatmul.msk.bf16.vlgmr.msrb.gmra.mxu0 %vm446_vm9, %v2696_v51 }
0x12fe   :  { %v4778_v26 = vpop.eup %4777 }
0x12ff   :  { %v2682_v30 = vpop.xlane.xlu1 %2681  ;;  %v2693_v56 = vmul.f32 %v4778_v26, %v4768_v10 }
0x1300   :  { %4779 = vrcp.f32 %v2682_v30 }
0x1306   :  { %v4780_v60 = vpop.eup %4779 }
0x1307   :  { %v2694_v3 = vmul.f32 %v4780_v60, %v4770_v34  ;;  %v2685_v62 = vpop.xlane.xlu2 %2684 }
0x1308   :  { %4781 = vrcp.f32 %v2685_v62 }
0x1309   :  { %v2697_v42 = vpack.c.bf16 %v2694_v3, %v2693_v56 }
0x130b   :  { %4347 = vmatmul.msk.bf16.gmra.mxu0 %vm446_vm9, %v2697_v42  ;;  %v4556_v42 = vld [vmem:[%s6503_s1 + $0x1e0] sm:$0xff] }
0x130e   :  { %v4782_v2 = vpop.eup %4781 }
0x130f   :  { %v2695_v52 = vmul.f32 %v4782_v2, %v4772_v49  ;;  %v4554_v49 = vld [vmem:[%s6503_s1 + $0x1d0] sm:$0xff]  ;;  %v4555_v2 = vld [vmem:[%s6503_s1 + $0x1d8] sm:$0xff] }
0x1311   :  { %v2698_v4 = vpack.c.bf16 %v2695_v52, %v2695_v52 }
0x131b   :  { %4348 = vmatmul.msk.bf16.gmra.mxu0 %vm446_vm9, %v2698_v4 }
0x132b   :  { %4374 = vmatmul.msk.bf16.vlgmr.msra.gmra.mxu0 %vm122_vm2, %v5822_v63 }
0x133b   :  { %4375 = vmatmul.msk.bf16.gmra.mxu0 %vm122_vm2, %v5849_v19 }
0x134b   :  { %4376 = vmatmul.msk.bf16.gmra.mxu0 %vm122_vm2, %v5860_v32 }
0x1378   :  { %v2723_v58 = vpop.f32.mrf.mxu0 }
0x1380   :  { %v2725_v53 = vpop.f32.mrf.mxu0 }
0x1381   :  { %v2737_v50 = vpack.c.bf16 %v2725_v53, %v2723_v58  ;;  %v4609_v58 = vld [vmem:[%s6504_s2 + $0x67] ss:$0 sm:$0xff] }
0x1383   :  { %4349 = vmatmul.msk.bf16.vlgmr.msrb.gmra.mxu1 %vm394_vm8, %v2737_v50 }
0x1384   :  { %3155 = vmatpush.bf16.msrb.mxu1 %v4554_v49  ;;  %v6141_v49 = vld [vmem:[%s6504_s2 + $0x68] ss:$0 sm:$0xff] }
0x1388   :  { %v2728_v31 = vpop.f32.mrf.mxu0  ;;  %3156 = vmatpush.bf16.msrb.mxu1 %v4553_v1 }
0x1390   :  { %v2730_v10 = vpop.f32.mrf.mxu0 }
0x1391   :  { %v2738_v9 = vpack.c.bf16 %v2730_v10, %v2728_v31 }
0x1393   :  { %4350 = vmatmul.msk.bf16.gmra.mxu1 %vm394_vm8, %v2738_v9 }
0x1398   :  { %v2733_v6 = vpop.f32.mrf.mxu0 }
0x1399   :  { %v2739_v34 = vpack.c.bf16 %v2733_v6, %v2733_v6 }
0x13a0   :  { %v2735_v17 = vpop.f32.mrf.mxu0 }
0x13a3   :  { %4351 = vmatmul.msk.bf16.gmra.mxu1 %vm394_vm8, %v2739_v34 }
0x13a8   :  { %v2879_v12 = vpop.f32.mrf.mxu0 }
0x13a9   :  { %v2880_v56 = vadd.f32 %v4608_v14, %v2879_v12 }
0x13b0   :  { %v2881_v15 = vpop.f32.mrf.mxu0 }
0x13b1   :  { %v2882_v26 = vadd.f32 %v4608_v14, %v2881_v15 }
0x13b3   :  { %4385 = vmatmul.msk.bf16.vlgmr.msra.gmra.mxu1 %vm122_vm2, %v5822_v63  ;;  %v2937_v3 = vpack.c.bf16 %v2882_v26, %v2880_v56 }
0x13b5   :  { %v2950_v62 = vsel %vm394_vm8, %v2937_v3, 0 }
0x13b8   :  { %v2884_v20 = vpop.f32.mrf.mxu0 }
0x13b9   :  { %v2885_v39 = vadd.f32 %v4608_v14, %v2884_v20 }
0x13c0   :  { %v2886_v18 = vpop.f32.mrf.mxu0 }
0x13c1   :  { %v2887_v46 = vadd.f32 %v4608_v14, %v2886_v18 }
0x13c3   :  { %4386 = vmatmul.msk.bf16.gmra.mxu1 %vm122_vm2, %v5849_v19  ;;  %v2938_v30 = vpack.c.bf16 %v2887_v46, %v2885_v39 }
0x13c5   :  { %v2953_v60 = vsel %vm394_vm8, %v2938_v30, 0 }
0x13c8   :  { %v2889_v37 = vpop.f32.mrf.mxu0 }
0x13c9   :  { %v2890_v8 = vadd.f32 %v4608_v14, %v2889_v37 }
0x13cb   :  { %v2939_v25 = vpack.c.bf16 %v2890_v8, %v2890_v8 }
0x13cd   :  { %v2956_v51 = vsel %vm394_vm8, %v2939_v25, 0 }
0x13ce   :  { %2963 = vmatpush.bf16.xpose.msrb.mxu2 %v2956_v51 }
0x13d0   :  { %v2891_v54 = vpop.f32.mrf.mxu0 }
0x13d3   :  { %4387 = vmatmul.msk.bf16.gmra.mxu1 %vm122_vm2, %v5860_v32 }
0x13d6   :  { %2964 = vmatpush.bf16.xpose.msrb.mxu2 %v2953_v60 }
0x13de   :  { %2965 = vmatpush.bf16.xpose.msrb.mxu2 %v2950_v62 }
0x13e3   :  { %4405 = vmatmul.msk.bf16.vlgmr.msrb.gmra.mxu1 %vm122_vm2, %v5822_v63 }
0x13e5   :  { %4388 = vmatmul.msk.bf16.vlgmr.msrb.gmra.mxu2 %vm394_vm8, %v2934_v43  ;;  %v2936_v43 = vpack.c.bf16 %v2849_v11, %v2849_v11 }
0x13e6   :  { %3196 = vmatpush.bf16.msra.mxu2 %v4556_v42 }
0x13ea   :  { %3197 = vmatpush.bf16.msra.mxu2 %v4555_v2 }
0x13f3   :  { %4406 = vmatmul.msk.bf16.gmra.mxu1 %vm122_vm2, %v5849_v19 }
0x13f5   :  { %4389 = vmatmul.msk.bf16.gmra.mxu2 %vm394_vm8, %v2935_v21 }
0x1400   :  { %v6115_v29 = vpop.f32.mrf.mxu1 }
0x1403   :  { %4407 = vmatmul.msk.bf16.gmra.mxu1 %vm122_vm2, %v5860_v32 }
0x1405   :  { %4390 = vmatmul.msk.bf16.gmra.mxu2 %vm394_vm8, %v2936_v43 }
0x1408   :  { %v6120_v52 = vpop.f32.mrf.mxu1 }
0x1410   :  { %v6122_v4 = vpop.f32.mrf.mxu1 }
0x1415   :  { %4416 = vmatmul.msk.bf16.vlgmr.msra.gmra.mxu2 %vm122_vm2, %v5822_v63 }
0x1418   :  { %v6126_v0 = vpop.f32.mrf.mxu1 }
0x1420   :  { %v6128_v45 = vpop.f32.mrf.mxu1 }
0x1425   :  { %4417 = vmatmul.msk.bf16.gmra.mxu2 %vm122_vm2, %v5849_v19 }
0x1428   :  { %v2774_v35 = vpop.f32.mrf.mxu1 }
0x1430   :  { %v2920_v21 = vpop.f32.mrf.mxu1 }
0x1431   :  { %v2921_v34 = vadd.f32 %v4609_v58, %v2920_v21 }
0x1435   :  { %4418 = vmatmul.msk.bf16.gmra.mxu2 %vm122_vm2, %v5860_v32 }
0x1438   :  { %v2922_v5 = vpop.f32.mrf.mxu1 }
0x1439   :  { %v2923_v13 = vadd.f32 %v4609_v58, %v2922_v5 }
0x143b   :  { %v3049_v12 = vpack.c.bf16 %v2923_v13, %v2921_v34 }
0x1440   :  { %v2925_v28 = vpop.f32.mrf.mxu1 }
0x1441   :  { %v2926_v9 = vadd.f32 %v4609_v58, %v2925_v28 }
0x1448   :  { %v2927_v47 = vpop.f32.mrf.mxu1 }
0x1449   :  { %v2928_v36 = vadd.f32 %v4609_v58, %v2927_v47 }
0x144b   :  { %v3050_v6 = vpack.c.bf16 %v2928_v36, %v2926_v9  ;;  %v3090_v36 = vld [vmem:[%s6503_s1 + $0x200] sm:$0xf] }
0x1450   :  { %v2930_v53 = vpop.f32.mrf.mxu1 }
0x1451   :  { %v2931_v50 = vadd.f32 %v4609_v58, %v2930_v53 }
0x1453   :  { %v3051_v31 = vpack.c.bf16 %v2931_v50, %v2931_v50 }
0x1455   :  { %v3062_v10 = vsel %vm93_vm1, %v3051_v31, 0 }
0x1456   :  { %3069 = vmatpush.bf16.msrb.mxu3 %v3062_v10  ;;  %v3101_v10 = vsel %vm837_vm11, %v3090_v36, 0 }
0x1457   :  { %3110 = vmatpush.bf16.msrb.mxu0 %v3101_v10 }
0x1458   :  { %v2932_v17 = vpop.f32.mrf.mxu1 }
0x145a   :  { %3070 = vmatpush.bf16.msrb.mxu3 %v3050_v6  ;;  %v4611_v6 = vld [vmem:[%s6504_s2 + $0x69] ss:$0 sm:$0xff] }
0x145e   :  { %3071 = vmatpush.bf16.msrb.mxu3 %v3049_v12 }
0x1460   :  { %v3158_v15 = vpop.f32.mrf.mxu1 }
0x1461   :  { %v6144_v18 = vadd.f32 %v6141_v49, %v3158_v15 }
0x1468   :  { %v2967_v20 = vpop.f32.mrf.mxu2  ;;  %v3160_v1 = vpop.f32.mrf.mxu1 }
0x1469   :  { %v2981_v14 = vmul.f32 0.35355338, %v2967_v20  ;;  %v6147_v37 = vadd.f32 %v6141_v49, %v3160_v1 }
0x146b   :  { %v3254_v8 = vpack.c.bf16 %v6147_v37, %v6144_v18  ;;  %v2986_v25 = vadd.f32 %v5927_v27, %v2981_v14 }
0x146d   :  { %v2991_v46 = vsel %vm446_vm9, %v2986_v25, -inf }
0x146e   :  { %2992 = vmax.xlane.f32.xlu0 %v2991_v46 }
0x1470   :  { %v2969_v51 = vpop.f32.mrf.mxu2  ;;  %v3163_v39 = vpop.f32.mrf.mxu1 }
0x1471   :  { %v2982_v54 = vmul.f32 0.35355338, %v2969_v51  ;;  %v6156_v3 = vadd.f32 %v6141_v49, %v3163_v39 }
0x1473   :  { %v2987_v30 = vadd.f32 %v5934_v23, %v2982_v54 }
0x1475   :  { %v2994_v26 = vsel %vm446_vm9, %v2987_v30, -inf }
0x1476   :  { %2995 = vmax.xlane.f32.xlu1 %v2994_v26 }
0x1478   :  { %v2972_v60 = vpop.f32.mrf.mxu2  ;;  %v3165_v56 = vpop.f32.mrf.mxu1 }
0x1479   :  { %v2983_v62 = vmul.f32 0.35355338, %v2972_v60  ;;  %v6159_v42 = vadd.f32 %v6141_v49, %v3165_v56 }
0x147b   :  { %v3255_v27 = vpack.c.bf16 %v6159_v42, %v6156_v3  ;;  %v2988_v2 = vadd.f32 %v5941_v59, %v2983_v62 }
0x147d   :  { %v2997_v11 = vsel %vm446_vm9, %v2988_v2, -inf }
0x147e   :  { %2998 = vmax.xlane.f32.xlu2 %v2997_v11 }
0x1480   :  { %v2974_v23 = vpop.f32.mrf.mxu2  ;;  %v6165_v43 = vpop.f32.mrf.mxu1 }
0x1481   :  { %v2984_v35 = vmul.f32 0.35355338, %v2974_v23  ;;  %v3169_v18 = vadd.f32 %v6141_v49, %v6165_v43  ;;  %v2803_v43 = vadd.f32 %v6038_v61, %v6122_v4  ;;  %v4855_v61 = vld [vmem:[%s6504_s2 + $0x28] sm:$0xff] }
0x1483   :  { %v2989_v21 = vadd.f32 %v5948_v41, %v2984_v35  ;;  %v3256_v42 = vpack.c.bf16 %v3169_v18, %v3169_v18 }
0x1485   :  { %v3000_v5 = vsel %vm446_vm9, %v2989_v21, -inf }
0x1486   :  { %3001 = vmax.xlane.f32.xlu0 %v3000_v5 }
0x1488   :  { %v2977_v28 = vpop.f32.mrf.mxu2  ;;  %v3170_v47 = vpop.f32.mrf.mxu1 }
0x1489   :  { %v2985_v58 = vmul.f32 0.35355338, %v2977_v28 }
0x148b   :  { %v2990_v53 = vadd.f32 %v5955_v7, %v2985_v58 }
0x148d   :  { %v3003_v50 = vsel %vm459_vm10, %v2990_v53, -inf }
0x148e   :  { %3004 = vmax.xlane.f32.xlu1 %v3003_v50 }
0x1490   :  { %v2979_v59 = vpop.f32.mrf.mxu2 }
0x1498   :  { %v3199_v31 = vpop.f32.mrf.mxu2 }
0x1499   :  { %v3200_v39 = vadd.f32 %v4611_v6, %v3199_v31 }
0x14a0   :  { %v3201_v41 = vpop.f32.mrf.mxu2 }
0x14a1   :  { %v3202_v46 = vadd.f32 %v4611_v6, %v3201_v41 }
0x14a3   :  { %v3257_v54 = vpack.c.bf16 %v3202_v46, %v3200_v39  ;;  %v4557_v39 = vld [vmem:[%s6503_s1 + $0x1e8] sm:$0xff] }
0x14a5   :  { %v3270_v26 = vsel %vm394_vm8, %v3257_v54, 0 }
0x14a8   :  { %v3204_v9 = vpop.f32.mrf.mxu2 }
0x14a9   :  { %v3205_v20 = vadd.f32 %v4611_v6, %v3204_v9 }
0x14b0   :  { %v3206_v13 = vpop.f32.mrf.mxu2 }
0x14b1   :  { %v3207_v12 = vadd.f32 %v4611_v6, %v3206_v13 }
0x14b3   :  { %v3258_v14 = vpack.c.bf16 %v3207_v12, %v3205_v20 }
0x14b5   :  { %v3273_v51 = vsel %vm394_vm8, %v3258_v14, 0 }
0x14b8   :  { %v3209_v7 = vpop.f32.mrf.mxu2 }
0x14b9   :  { %v3210_v17 = vadd.f32 %v4611_v6, %v3209_v7 }
0x14bb   :  { %v3259_v34 = vpack.c.bf16 %v3210_v17, %v3210_v17 }
0x14bd   :  { %v3276_v15 = vsel %vm394_vm8, %v3259_v34, 0 }
0x14be   :  { %3283 = vmatpush.bf16.xpose.msra.mxu0 %v3276_v15 }
0x14c0   :  { %v3211_v1 = vpop.f32.mrf.mxu2 }
0x14c6   :  { %3284 = vmatpush.bf16.xpose.msra.mxu0 %v3273_v51  ;;  %v4558_v51 = vld [vmem:[%s6503_s1 + $0x1f0] sm:$0xff] }
0x14c7   :  { %3237 = vmatpush.bf16.msra.mxu3 %v4558_v51 }
0x14cb   :  { %3238 = vmatpush.bf16.msra.mxu3 %v4557_v39 }
0x14ce   :  { %3285 = vmatpush.bf16.xpose.msra.mxu0 %v3270_v26 }
0x14e1   :  { %v2993_v60 = vpop.xlane.xlu0 %2992 }
0x14e2   :  { %v3006_v56 = vsub.f32 %v2986_v25, %v2993_v60 }
0x14e4   :  { %v3011_v62 = vmul.f32 1.442695, %v3006_v56 }
0x14e6   :  { %4783 = vpow2.f32 %v3011_v62 }
0x14e9   :  { %v2996_v11 = vpop.xlane.xlu1 %2995 }
0x14ea   :  { %v3007_v23 = vsub.f32 %v2987_v30, %v2996_v11 }
0x14ec   :  { %v4784_v35 = vpop.eup %4783  ;;  %v3013_v5 = vmul.f32 1.442695, %v3007_v23 }
0x14ed   :  { %v3021_v28 = vsel %vm446_vm9, %v4784_v35, 0.0 }
0x14ee   :  { %4785 = vpow2.f32 %v3013_v5  ;;  %3022 = vadd.xlane.f32.xlu2 %v3021_v28 }
0x14f1   :  { %v2999_v47 = vpop.xlane.xlu2 %2998 }
0x14f2   :  { %v3008_v58 = vsub.f32 %v2988_v2, %v2999_v47 }
0x14f4   :  { %v4786_v50 = vpop.eup %4785  ;;  %v3015_v59 = vmul.f32 1.442695, %v3008_v58 }
0x14f5   :  { %v3024_v31 = vsel %vm446_vm9, %v4786_v50, 0.0 }
0x14f6   :  { %4787 = vpow2.f32 %v3015_v59  ;;  %3025 = vadd.xlane.f32.xlu0 %v3024_v31 }
0x14f9   :  { %v3002_v36 = vpop.xlane.xlu0 %3001 }
0x14fa   :  { %v3009_v25 = vsub.f32 %v2989_v21, %v3002_v36 }
0x14fc   :  { %v4788_v10 = vpop.eup %4787  ;;  %v3017_v41 = vmul.f32 1.442695, %v3009_v25 }
0x14fd   :  { %v3027_v30 = vsel %vm446_vm9, %v4788_v10, 0.0 }
0x14fe   :  { %4789 = vpow2.f32 %v3017_v41  ;;  %3028 = vadd.xlane.f32.xlu1 %v3027_v30 }
0x1501   :  { %v3005_v9 = vpop.xlane.xlu1 %3004 }
0x1502   :  { %v3010_v13 = vsub.f32 %v2990_v53, %v3005_v9  ;;  %v4612_v9 = vld [vmem:[%s6504_s2 + $0x6a] ss:$0 sm:$0xff] }
0x1504   :  { %v4790_v6 = vpop.eup %4789  ;;  %v3019_v7 = vmul.f32 1.442695, %v3010_v13 }
0x1505   :  { %v3030_v2 = vsel %vm446_vm9, %v4790_v6, 0.0 }
0x1506   :  { %4791 = vpow2.f32 %v3019_v7  ;;  %3031 = vadd.xlane.f32.xlu2 %v3030_v2 }
0x150c   :  { %v4792_v17 = vpop.eup %4791 }
0x150d   :  { %v3033_v34 = vsel %vm459_vm10, %v4792_v17, 0.0 }
0x150e   :  { %3034 = vadd.xlane.f32.xlu0 %v3033_v34 }
0x1561   :  { %v3023_v12 = vpop.xlane.xlu2 %3022 }
0x1562   :  { %4793 = vrcp.f32 %v3023_v12 }
0x1568   :  { %v4794_v15 = vpop.eup %4793 }
0x1569   :  { %v3026_v21 = vpop.xlane.xlu0 %3025  ;;  %v3041_v1 = vmul.f32 %v4794_v15, %v4784_v35 }
0x156a   :  { %4795 = vrcp.f32 %v3026_v21  ;;  %v2798_v21 = vadd.f32 %v6034_v55, %v6115_v29  ;;  %v2808_v55 = vadd.f32 %v6042_v57, %v6128_v45  ;;  %v4856_v57 = vld [vmem:[%s6504_s2 + $0x30] sm:$0xff] }
0x1570   :  { %v4796_v20 = vpop.eup %4795 }
0x1571   :  { %v3042_v14 = vmul.f32 %v4796_v20, %v4786_v50  ;;  %v3029_v53 = vpop.xlane.xlu1 %3028 }
0x1572   :  { %4797 = vrcp.f32 %v3029_v53 }
0x1573   :  { %v3046_v46 = vpack.c.bf16 %v3042_v14, %v3041_v1 }
0x1575   :  { %4391 = vmatmul.msk.bf16.vlgmr.msrb.gmra.mxu3 %vm446_vm9, %v3046_v46  ;;  %v2805_v46 = vadd.f32 %v6040_v48, %v6126_v0 }
0x1578   :  { %v4798_v26 = vpop.eup %4797 }
0x1579   :  { %v3032_v54 = vpop.xlane.xlu2 %3031  ;;  %v3043_v56 = vmul.f32 %v4798_v26, %v4788_v10 }
0x157a   :  { %4799 = vrcp.f32 %v3032_v54 }
0x1580   :  { %v4800_v60 = vpop.eup %4799 }
0x1581   :  { %v3044_v62 = vmul.f32 %v4800_v60, %v4790_v6  ;;  %v3035_v11 = vpop.xlane.xlu0 %3034 }
0x1582   :  { %4801 = vrcp.f32 %v3035_v11 }
0x1583   :  { %v3047_v23 = vpack.c.bf16 %v3044_v62, %v3043_v56 }
0x1585   :  { %4392 = vmatmul.msk.bf16.gmra.mxu3 %vm446_vm9, %v3047_v23 }
0x1588   :  { %v4802_v35 = vpop.eup %4801 }
0x1589   :  { %v3045_v5 = vmul.f32 %v4802_v35, %v4792_v17  ;;  %v4857_v35 = vld [vmem:[%s6504_s2 + $0x38] sm:$0xff] }
0x158b   :  { %v3048_v28 = vpack.c.bf16 %v3045_v5, %v3045_v5 }
0x1595   :  { %4393 = vmatmul.msk.bf16.gmra.mxu3 %vm446_vm9, %v3048_v28 }
0x15a5   :  { %4427 = vmatmul.msk.bf16.vlgmr.msra.gmra.mxu3 %vm122_vm2, %v5822_v63 }
0x15b5   :  { %4428 = vmatmul.msk.bf16.gmra.mxu3 %vm122_vm2, %v5849_v19 }
0x15c5   :  { %4429 = vmatmul.msk.bf16.gmra.mxu3 %vm122_vm2, %v5860_v32 }
0x15f8   :  { %v3073_v47 = vpop.f32.mrf.mxu3 }
0x1600   :  { %v3075_v58 = vpop.f32.mrf.mxu3 }
0x1601   :  { %v3087_v50 = vpack.c.bf16 %v3075_v58, %v3073_v47 }
0x1603   :  { %4394 = vmatmul.msk.bf16.vlgmr.msrb.gmra.mxu0 %vm394_vm8, %v3087_v50  ;;  %v4858_v50 = vld [vmem:[%s6504_s2 + $0x40] sm:$0xff] }
0x1608   :  { %v3078_v59 = vpop.f32.mrf.mxu3 }
0x1610   :  { %v3080_v31 = vpop.f32.mrf.mxu3 }
0x1611   :  { %v3088_v36 = vpack.c.bf16 %v3080_v31, %v3078_v59 }
0x1613   :  { %4395 = vmatmul.msk.bf16.gmra.mxu0 %vm394_vm8, %v3088_v36 }
0x1618   :  { %v3083_v25 = vpop.f32.mrf.mxu3 }
0x1619   :  { %v3089_v41 = vpack.c.bf16 %v3083_v25, %v3083_v25 }
0x1620   :  { %v3085_v10 = vpop.f32.mrf.mxu3 }
0x1623   :  { %4396 = vmatmul.msk.bf16.gmra.mxu0 %vm394_vm8, %v3089_v41 }
0x1628   :  { %v3240_v63 = vpop.f32.mrf.mxu3 }
0x1630   :  { %v3242_v19 = vpop.f32.mrf.mxu3 }
0x1631   :  { %v3243_v17 = vadd.f32 %v4612_v9, %v3242_v19 }
0x1633   :  { %4430 = vmatmul.msk.bf16.vlgmr.msra.gmra.mxu0 %vm394_vm8, %v3254_v8 }
0x1638   :  { %v3245_v32 = vpop.f32.mrf.mxu3 }
0x1639   :  { %v3246_v8 = vadd.f32 %v4612_v9, %v3245_v32 }
0x1640   :  { %v3247_v30 = vpop.f32.mrf.mxu3 }
0x1641   :  { %v3248_v2 = vadd.f32 %v4612_v9, %v3247_v30 }
0x1643   :  { %4431 = vmatmul.msk.bf16.gmra.mxu0 %vm394_vm8, %v3255_v27  ;;  %v3370_v34 = vpack.c.bf16 %v3248_v2, %v3246_v8  ;;  %v3241_v27 = vadd.f32 %v4612_v9, %v3240_v63 }
0x1645   :  { %v3369_v12 = vpack.c.bf16 %v3243_v17, %v3241_v27 }
0x1648   :  { %v3250_v13 = vpop.f32.mrf.mxu3 }
0x1649   :  { %v3251_v6 = vadd.f32 %v4612_v9, %v3250_v13 }
0x164b   :  { %v3371_v7 = vpack.c.bf16 %v3251_v6, %v3251_v6 }
0x164d   :  { %v3382_v37 = vsel %vm93_vm1, %v3371_v7, 0 }
0x164e   :  { %3389 = vmatpush.bf16.msra.mxu1 %v3382_v37 }
0x1650   :  { %v3252_v3 = vpop.f32.mrf.mxu3 }
0x1652   :  { %3390 = vmatpush.bf16.msra.mxu1 %v3370_v34  ;;  %v4859_v34 = vld [vmem:[%s6504_s2 + $0x48] sm:$0x3] }
0x1653   :  { %4432 = vmatmul.msk.bf16.gmra.mxu0 %vm394_vm8, %v3256_v42 }
0x1656   :  { %3391 = vmatpush.bf16.msra.mxu1 %v3369_v12 }
0x1680   :  { %v3112_v15 = vpop.f32.mrf.mxu0 }
0x1681   :  { %v6221_v20 = vadd.f32 %v3112_v15, %v2798_v21 }
0x1688   :  { %v6223_v49 = vpop.f32.mrf.mxu0 }
0x1690   :  { %v3117_v1 = vpop.f32.mrf.mxu0 }
0x1691   :  { %v6227_v14 = vadd.f32 %v3117_v1, %v2803_v43 }
0x1698   :  { %v3119_v53 = vpop.f32.mrf.mxu0 }
0x1699   :  { %v6231_v51 = vadd.f32 %v3119_v53, %v2805_v46  ;;  %v3410_v53 = vld [vmem:[%s6503_s1 + $0x204] sm:$0xf] }
0x16a0   :  { %v3122_v29 = vpop.f32.mrf.mxu0 }
0x16a1   :  { %v6235_v39 = vadd.f32 %v3122_v29, %v2808_v55  ;;  %v3421_v55 = vsel %vm837_vm11, %v3410_v53, 0 }
0x16a2   :  { %3430 = vmatpush.bf16.msrb.mxu2 %v3421_v55 }
0x16a8   :  { %v3124_v54 = vpop.f32.mrf.mxu0 }
0x16b0   :  { %v3287_v26 = vpop.f32.mrf.mxu0 }
0x16b1   :  { %v3301_v60 = vmul.f32 0.35355338, %v3287_v26 }
0x16b3   :  { %v3306_v4 = vadd.f32 %v4855_v61, %v3301_v60 }
0x16b5   :  { %v3311_v56 = vsel %vm446_vm9, %v3306_v4, -inf }
0x16b6   :  { %3312 = vmax.xlane.f32.xlu1 %v3311_v56 }
0x16b8   :  { %v3289_v48 = vpop.f32.mrf.mxu0 }
0x16b9   :  { %v3302_v0 = vmul.f32 0.35355338, %v3289_v48 }
0x16bb   :  { %v3307_v45 = vadd.f32 %v4856_v57, %v3302_v0 }
0x16bd   :  { %v3314_v62 = vsel %vm446_vm9, %v3307_v45, -inf }
0x16be   :  { %3315 = vmax.xlane.f32.xlu2 %v3314_v62 }
0x16c0   :  { %v3292_v11 = vpop.f32.mrf.mxu0 }
0x16c1   :  { %v3303_v23 = vmul.f32 0.35355338, %v3292_v11 }
0x16c3   :  { %v3308_v5 = vadd.f32 %v4857_v35, %v3303_v23 }
0x16c5   :  { %v3317_v28 = vsel %vm446_vm9, %v3308_v5, -inf }
0x16c6   :  { %3318 = vmax.xlane.f32.xlu0 %v3317_v28 }
0x16c8   :  { %v3294_v47 = vpop.f32.mrf.mxu0 }
0x16c9   :  { %v3304_v58 = vmul.f32 0.35355338, %v3294_v47 }
0x16cb   :  { %v3309_v59 = vadd.f32 %v4858_v50, %v3304_v58 }
0x16cd   :  { %v3320_v31 = vsel %vm446_vm9, %v3309_v59, -inf }
0x16ce   :  { %3321 = vmax.xlane.f32.xlu1 %v3320_v31 }
0x16d0   :  { %v3297_v36 = vpop.f32.mrf.mxu0 }
0x16d1   :  { %v3305_v37 = vmul.f32 0.35355338, %v3297_v36 }
0x16d3   :  { %v3310_v3 = vadd.f32 %v4859_v34, %v3305_v37 }
0x16d5   :  { %v3323_v15 = vsel %vm459_vm10, %v3310_v3, -inf }
0x16d8   :  { %v3299_v25 = vpop.f32.mrf.mxu0 }
0x1729   :  { %v3313_v10 = vpop.xlane.xlu1 %3312 }
0x172a   :  { %v3326_v41 = vsub.f32 %v3306_v4, %v3313_v10 }
0x172c   :  { %v3331_v63 = vmul.f32 1.442695, %v3326_v41 }
0x172e   :  { %4803 = vpow2.f32 %v3331_v63 }
0x1731   :  { %v3316_v19 = vpop.xlane.xlu2 %3315 }
0x1732   :  { %v3327_v32 = vsub.f32 %v3307_v45, %v3316_v19 }
0x1734   :  { %v4804_v30 = vpop.eup %4803  ;;  %v3333_v9 = vmul.f32 1.442695, %v3327_v32 }
0x1735   :  { %v3341_v13 = vsel %vm446_vm9, %v4804_v30, 0.0 }
0x1736   :  { %4805 = vpow2.f32 %v3333_v9  ;;  %3342 = vadd.xlane.f32.xlu2 %v3341_v13 }
0x1739   :  { %v3319_v6 = vpop.xlane.xlu0 %3318 }
0x173a   :  { %v3328_v7 = vsub.f32 %v3308_v5, %v3319_v6  ;;  %v4613_v6 = vld [vmem:[%s6504_s2 + $0x6b] ss:$0 sm:$0xff] }
0x173c   :  { %v4806_v2 = vpop.eup %4805  ;;  %v3335_v18 = vmul.f32 1.442695, %v3328_v7 }
0x173d   :  { %v3344_v8 = vsel %vm446_vm9, %v4806_v2, 0.0 }
0x173e   :  { %4807 = vpow2.f32 %v3335_v18  ;;  %3345 = vadd.xlane.f32.xlu0 %v3344_v8  ;;  %v2800_v18 = vadd.f32 %v6036_v40, %v6120_v52 }
0x1740   :  { %v3127_v8 = vadd.f32 %v6223_v49, %v2800_v18 }
0x1741   :  { %v3322_v17 = vpop.xlane.xlu1 %3321 }
0x1742   :  { %v3329_v42 = vsub.f32 %v3309_v59, %v3322_v17 }
0x1744   :  { %v4808_v27 = vpop.eup %4807  ;;  %v3337_v12 = vmul.f32 1.442695, %v3329_v42 }
0x1745   :  { %v3347_v21 = vsel %vm446_vm9, %v4808_v27, 0.0 }
0x1746   :  { %4809 = vpow2.f32 %v3337_v12  ;;  %3348 = vadd.xlane.f32.xlu1 %v3347_v21  ;;  %3324 = vmax.xlane.f32.xlu0 %v3323_v15 }
0x174c   :  { %v4810_v43 = vpop.eup %4809 }
0x174d   :  { %v3350_v1 = vsel %vm446_vm9, %v4810_v43, 0.0 }
0x174e   :  { %3351 = vadd.xlane.f32.xlu2 %v3350_v1 }
0x17a9   :  { %v3343_v46 = vpop.xlane.xlu2 %3342 }
0x17aa   :  { %4811 = vrcp.f32 %v3343_v46 }
0x17b0   :  { %v4812_v54 = vpop.eup %4811 }
0x17b1   :  { %v3346_v29 = vpop.xlane.xlu0 %3345  ;;  %v3361_v60 = vmul.f32 %v4812_v54, %v4804_v30 }
0x17b2   :  { %4813 = vrcp.f32 %v3346_v29 }
0x17b8   :  { %v4814_v26 = vpop.eup %4813 }
0x17b9   :  { %v3362_v61 = vmul.f32 %v4814_v26, %v4806_v2  ;;  %v3325_v4 = vpop.xlane.xlu0 %3324  ;;  %v3349_v57 = vpop.xlane.xlu1 %3348 }
0x17ba   :  { %v3330_v56 = vsub.f32 %v3310_v3, %v3325_v4 }
0x17bb   :  { %v3366_v48 = vpack.c.bf16 %v3362_v61, %v3361_v60 }
0x17bc   :  { %v3339_v0 = vmul.f32 1.442695, %v3330_v56 }
0x17bd   :  { %4433 = vmatmul.msk.bf16.vlgmr.msra.gmra.mxu1 %vm446_vm9, %v3366_v48 }
0x17be   :  { %4815 = vpow2.f32 %v3339_v0 }
0x17bf   :  { %4817 = vrcp.f32 %v3349_v57 }
0x17c1   :  { %v3352_v45 = vpop.xlane.xlu2 %3351 }
0x17c2   :  { %4819 = vrcp.f32 %v3352_v45 }
0x17c4   :  { %v4816_v62 = vpop.eup %4815 }
0x17c5   :  { %v3353_v11 = vsel %vm459_vm10, %v4816_v62, 0.0  ;;  %v4818_v23 = vpop.eup %4817 }
0x17c6   :  { %3354 = vadd.xlane.f32.xlu1 %v3353_v11  ;;  %v3363_v5 = vmul.f32 %v4818_v23, %v4808_v27 }
0x17c8   :  { %v4820_v35 = vpop.eup %4819 }
0x17c9   :  { %v3364_v28 = vmul.f32 %v4820_v35, %v4810_v43 }
0x17cb   :  { %v3367_v47 = vpack.c.bf16 %v3364_v28, %v3363_v5 }
0x17cd   :  { %4434 = vmatmul.msk.bf16.gmra.mxu1 %vm446_vm9, %v3367_v47 }
0x1839   :  { %v3355_v58 = vpop.xlane.xlu1 %3354 }
0x183a   :  { %4821 = vrcp.f32 %v3355_v58  ;;  %v3393_v50 = vpop.f32.mrf.mxu1 }
0x1840   :  { %v4822_v59 = vpop.eup %4821 }
0x1841   :  { %v3365_v31 = vmul.f32 %v4822_v59, %v4816_v62  ;;  %v4560_v59 = vld [vmem:[%s6503_s1 + $0x210] sm:$0xff] }
0x1842   :  { %v3395_v36 = vpop.f32.mrf.mxu1  ;;  %3623 = vmatpush.bf16.msrb.mxu3 %v4560_v59 }
0x1843   :  { %v3407_v25 = vpack.c.bf16 %v3395_v36, %v3393_v50  ;;  %v3368_v10 = vpack.c.bf16 %v3365_v31, %v3365_v31  ;;  %v4559_v36 = vld [vmem:[%s6503_s1 + $0x208] sm:$0xff] }
0x1845   :  { %4435 = vmatmul.msk.bf16.gmra.mxu1 %vm446_vm9, %v3368_v10  ;;  %4436 = vmatmul.msk.bf16.vlgmr.msrb.gmra.mxu2 %vm394_vm8, %v3407_v25 }
0x1846   :  { %3624 = vmatpush.bf16.msrb.mxu3 %v4559_v36 }
0x184a   :  { %v3398_v41 = vpop.f32.mrf.mxu1 }
0x1852   :  { %v3400_v63 = vpop.f32.mrf.mxu1 }
0x1853   :  { %v3408_v19 = vpack.c.bf16 %v3400_v63, %v3398_v41 }
0x1855   :  { %4437 = vmatmul.msk.bf16.gmra.mxu2 %vm394_vm8, %v3408_v19 }
0x18c2   :  { %v3403_v32 = vpop.f32.mrf.mxu1 }
0x18c3   :  { %v3409_v30 = vpack.c.bf16 %v3403_v32, %v3403_v32 }
0x18c5   :  { %4438 = vmatmul.msk.bf16.gmra.mxu2 %vm394_vm8, %v3409_v30 }
0x18c8   :  { %v3432_v9 = vpop.f32.mrf.mxu2 }
0x18c9   :  { %v3446_v13 = vadd.f32 %v3432_v9, %v6221_v20 }
0x18ca   :  { %v3405_v7 = vpop.f32.mrf.mxu1 }
0x18cb   :  { %v3451_v2 = vadd.f32 %v3446_v13, %v5725_v16 }
0x18cd   :  { %v6279_v37 = vadd.f32 %v4613_v6, %v3451_v2 }
0x18cf   :  { %v3465_v17 = vsel %vm122_vm2, %v6279_v37, 0.0 }
0x18d0   :  { %v3434_v34 = vpop.f32.mrf.mxu2  ;;  %3466 = vadd.xlane.f32.xlu2 %v3465_v17 }
0x18d1   :  { %v3447_v20 = vadd.f32 %v3434_v34, %v3127_v8 }
0x18d3   :  { %v3452_v3 = vadd.f32 %v3447_v20, %v5730_v33 }
0x18d5   :  { %v3459_v42 = vadd.f32 %v4613_v6, %v3452_v3 }
0x18d7   :  { %v3468_v27 = vsel %vm122_vm2, %v3459_v42, 0.0 }
0x18d8   :  { %v3437_v12 = vpop.f32.mrf.mxu2  ;;  %3469 = vadd.xlane.f32.xlu0 %v3468_v27 }
0x18d9   :  { %v3448_v16 = vadd.f32 %v3437_v12, %v6227_v14 }
0x18db   :  { %v3453_v40 = vadd.f32 %v3448_v16, %v5735_v22 }
0x18dd   :  { %v6288_v52 = vadd.f32 %v4613_v6, %v3453_v40 }
0x18df   :  { %v3471_v49 = vsel %vm122_vm2, %v6288_v52, 0.0 }
0x18e0   :  { %v3439_v21 = vpop.f32.mrf.mxu2  ;;  %3472 = vadd.xlane.f32.xlu1 %v3471_v49 }
0x18e1   :  { %v3449_v15 = vadd.f32 %v3439_v21, %v6231_v51 }
0x18e3   :  { %v3454_v33 = vadd.f32 %v3449_v15, %v5740_v38  ;;  %v4614_v15 = vld [vmem:[%s6504_s2 + $0x6c] ss:$0 sm:$0xff] }
0x18e5   :  { %v3461_v43 = vadd.f32 %v4613_v6, %v3454_v33 }
0x18e7   :  { %v3474_v1 = vsel %vm122_vm2, %v3461_v43, 0.0 }
0x18e8   :  { %3475 = vadd.xlane.f32.xlu2 %v3474_v1 }
0x1943   :  { %v3467_v46 = vpop.xlane.xlu2 %3466 }
0x1944   :  { %v3480_v14 = vmul.f32 %v3467_v46, %v4965_v44 }
0x1946   :  { %v6297_v22 = vsub.f32 %v6279_v37, %v3480_v14 }
0x1948   :  { %v3442_v53 = vpop.f32.mrf.mxu2  ;;  %v3490_v55 = vmul.f32 %v6297_v22, %v6297_v22 }
0x1949   :  { %v3450_v54 = vadd.f32 %v3442_v53, %v6235_v39 }
0x194a   :  { %v3495_v29 = vsel %vm122_vm2, %v3490_v55, 0.0  ;;  %v4615_v55 = vld [vmem:[%s6504_s2 + $0x6d] ss:$0 sm:$0xff] }
0x194b   :  { %3496 = vadd.xlane.f32.xlu0 %v3495_v29  ;;  %v3470_v51 = vpop.xlane.xlu0 %3469  ;;  %v3455_v4 = vadd.f32 %v3450_v54, %v5745_v24 }
0x194c   :  { %v3481_v38 = vmul.f32 %v3470_v51, %v4965_v44 }
0x194d   :  { %v3462_v45 = vadd.f32 %v4613_v6, %v3455_v4 }
0x194e   :  { %v6304_v26 = vsub.f32 %v3459_v42, %v3481_v38 }
0x194f   :  { %v3477_v11 = vsel %vm135_vm4, %v3462_v45, 0.0 }
0x1950   :  { %v3444_v60 = vpop.f32.mrf.mxu2  ;;  %v3491_v61 = vmul.f32 %v6304_v26, %v6304_v26 }
0x1952   :  { %v3498_v56 = vsel %vm122_vm2, %v3491_v61, 0.0 }
0x1953   :  { %v3473_v48 = vpop.xlane.xlu1 %3472  ;;  %3499 = vadd.xlane.f32.xlu1 %v3498_v56 }
0x1954   :  { %v3482_v0 = vmul.f32 %v3473_v48, %v4965_v44 }
0x1956   :  { %v6312_v57 = vsub.f32 %v6288_v52, %v3482_v0 }
0x1958   :  { %v3492_v39 = vmul.f32 %v6312_v57, %v6312_v57 }
0x195a   :  { %v3501_v62 = vsel %vm122_vm2, %v3492_v39, 0.0 }
0x195b   :  { %v3476_v23 = vpop.xlane.xlu2 %3475  ;;  %3502 = vadd.xlane.f32.xlu2 %v3501_v62  ;;  %3478 = vadd.xlane.f32.xlu1 %v3477_v11 }
0x195c   :  { %v3483_v24 = vmul.f32 %v3476_v23, %v4965_v44 }
0x195e   :  { %v6319_v35 = vsub.f32 %v3461_v43, %v3483_v24 }
0x1960   :  { %v3493_v5 = vmul.f32 %v6319_v35, %v6319_v35 }
0x1962   :  { %v3504_v28 = vsel %vm122_vm2, %v3493_v5, 0.0 }
0x1963   :  { %3505 = vadd.xlane.f32.xlu0 %v3504_v28 }
0x19be   :  { %v3497_v47 = vpop.xlane.xlu0 %3496 }
0x19bf   :  { %v3510_v58 = vmul.f32 %v3497_v47, %v4965_v44 }
0x19c1   :  { %v3515_v50 = vadd.f32 1e-05, %v3510_v58 }
0x19c3   :  { %4823 = vrsqrt.f32 %v3515_v50  ;;  %vm3526_vm9 = vweird.f32 %v3515_v50 }
0x19c6   :  { %v3500_v31 = vpop.xlane.xlu1 %3499 }
0x19c7   :  { %v3511_v25 = vmul.f32 %v3500_v31, %v4965_v44 }
0x19c9   :  { %v4824_v10 = vpop.eup %4823  ;;  %v3516_v41 = vadd.f32 1e-05, %v3511_v25 }
0x19ca   :  { %v3521_v63 = vmul.f32 %v4824_v10, %v3515_v50  ;;  %vm3527_vm8 = vweird.f32 %v4824_v10 }
0x19cb   :  { %4825 = vrsqrt.f32 %v3516_v41  ;;  %vm3528_vm10 = vmor %vm3526_vm9, %vm3527_vm8  ;;  %vm3536_vm3 = vweird.f32 %v3516_v41 }
0x19cc   :  { %v3522_v19 = vmul.f32 %v4824_v10, %v3521_v63 }
0x19ce   :  { %v3523_v32 = vmul.f32 0.5, %v3522_v19  ;;  %v3503_v30 = vpop.xlane.xlu2 %3502  ;;  %v3479_v9 = vpop.xlane.xlu1 %3478 }
0x19cf   :  { %v3512_v13 = vmul.f32 %v3503_v30, %v4965_v44  ;;  %v3484_v6 = vmul.f32 %v3479_v9, %v4965_v44 }
0x19d0   :  { %v3524_v7 = vsub.f32 1.5, %v3523_v32 }
0x19d1   :  { %v4826_v2 = vpop.eup %4825  ;;  %v3517_v18 = vadd.f32 1e-05, %v3512_v13  ;;  %v6334_v8 = vsub.f32 %v3462_v45, %v3484_v6  ;;  %v6357_v6 = vld [vmem:[%s6504_s2 + $0x6e] ss:$0 sm:$0xff] }
0x19d2   :  { %v3525_v17 = vmul.f32 %v4824_v10, %v3524_v7  ;;  %v3531_v34 = vmul.f32 %v4826_v2, %v3516_v41  ;;  %vm3537_vm11 = vweird.f32 %v4826_v2 }
0x19d3   :  { %4827 = vrsqrt.f32 %v3517_v18  ;;  %v3494_v20 = vmul.f32 %v6334_v8, %v6334_v8  ;;  %vm3538_vm5 = vmor %vm3536_vm3, %vm3537_vm11  ;;  %vm3546_vm7 = vweird.f32 %v3517_v18 }
0x19d4   :  { %v3532_v3 = vmul.f32 %v4826_v2, %v3531_v34  ;;  %v3529_v27 = vsel %vm3528_vm10, %v4824_v10, %v3525_v17  ;;  %v4568_v34 = vld [vmem:[%s6503_s1 + $0x250] sm:$0xff] }
0x19d5   :  { %v3507_v42 = vsel %vm135_vm4, %v3494_v20, 0.0  ;;  %v3570_v33 = vmul.f32 %v3529_v27, %v6297_v22  ;;  %3929 = vmatpush.bf16.msrb.mxu0 %v4568_v34 }
0x19d6   :  { %v3533_v12 = vmul.f32 0.5, %v3532_v3  ;;  %3508 = vadd.xlane.f32.xlu2 %v3507_v42  ;;  %v3506_v16 = vpop.xlane.xlu0 %3505 }
0x19d7   :  { %v3513_v40 = vmul.f32 %v3506_v16, %v4965_v44  ;;  %v3576_v29 = vmul.f32 %v4614_v15, %v3570_v33  ;;  %v4567_v16 = vld [vmem:[%s6503_s1 + $0x248] sm:$0xff]  ;;  %v4566_v33 = vld [vmem:[%s6503_s1 + $0x240] sm:$0xff] }
0x19d8   :  { %v3534_v49 = vsub.f32 1.5, %v3533_v12 }
0x19d9   :  { %v4828_v21 = vpop.eup %4827  ;;  %v3518_v43 = vadd.f32 1e-05, %v3513_v40  ;;  %v3582_v22 = vadd.f32 %v4615_v55, %v3576_v29  ;;  %3930 = vmatpush.bf16.msrb.mxu0 %v4567_v16 }
0x19da   :  { %v3535_v1 = vmul.f32 %v4826_v2, %v3534_v49  ;;  %v3541_v46 = vmul.f32 %v4828_v21, %v3517_v18  ;;  %vm3547_vm6 = vweird.f32 %v4828_v21 }
0x19db   :  { %4829 = vrsqrt.f32 %v3518_v43  ;;  %vm3548_vm12 = vmor %vm3546_vm7, %vm3547_vm6  ;;  %vm3556_vm14 = vweird.f32 %v3518_v43 }
0x19dc   :  { %v3539_v14 = vsel %vm3538_vm5, %v4826_v2, %v3535_v1  ;;  %v3542_v53 = vmul.f32 %v4828_v21, %v3541_v46 }
0x19dd   :  { %v3571_v51 = vmul.f32 %v3539_v14, %v6304_v26  ;;  %3931 = vmatpush.bf16.msrb.mxu0 %v4566_v33 }
0x19de   :  { %v3543_v38 = vmul.f32 0.5, %v3542_v53 }
0x19df   :  { %v3577_v54 = vmul.f32 %v4614_v15, %v3571_v51  ;;  %v4565_v51 = vld [vmem:[%s6503_s1 + $0x238] sm:$0xff] }
0x19e0   :  { %v3544_v60 = vsub.f32 1.5, %v3543_v38 }
0x19e1   :  { %v4830_v61 = vpop.eup %4829  ;;  %v3583_v4 = vadd.f32 %v4615_v55, %v3577_v54  ;;  %3932 = vmatpush.bf16.msrb.mxu0 %v4565_v51 }
0x19e2   :  { %v3545_v56 = vmul.f32 %v4828_v21, %v3544_v60  ;;  %v3551_v48 = vmul.f32 %v4830_v61, %v3518_v43  ;;  %vm3557_vm13 = vweird.f32 %v4830_v61 }
0x19e3   :  { %v3587_v0 = vpack.c.bf16 %v3583_v4, %v3582_v22  ;;  %vm3558_vm15 = vmor %vm3556_vm14, %vm3557_vm13 }
0x19e4   :  { %v3552_v45 = vmul.f32 %v4830_v61, %v3551_v48  ;;  %v3549_v39 = vsel %vm3548_vm12, %v4828_v21, %v3545_v56 }
0x19e5   :  { %4447 = vmatmul.msk.bf16.vlgmr.msrb.gmra.mxu3 %vm122_vm2, %v3587_v0  ;;  %v3572_v26 = vmul.f32 %v3549_v39, %v6312_v57  ;;  %v4564_v0 = vld [vmem:[%s6503_s1 + $0x230] sm:$0xff] }
0x19e6   :  { %v3553_v62 = vmul.f32 0.5, %v3552_v45  ;;  %3933 = vmatpush.bf16.msrb.mxu0 %v4564_v0 }
0x19e7   :  { %v3578_v28 = vmul.f32 %v4614_v15, %v3572_v26 }
0x19e8   :  { %v3554_v11 = vsub.f32 1.5, %v3553_v62 }
0x19e9   :  { %v3584_v58 = vadd.f32 %v4615_v55, %v3578_v28 }
0x19ea   :  { %v3555_v23 = vmul.f32 %v4830_v61, %v3554_v11 }
0x19ec   :  { %v3559_v24 = vsel %vm3558_vm15, %v4830_v61, %v3555_v23 }
0x19ed   :  { %v3573_v5 = vmul.f32 %v3559_v24, %v6319_v35 }
0x19ef   :  { %v3579_v47 = vmul.f32 %v4614_v15, %v3573_v5 }
0x19f1   :  { %v3585_v50 = vadd.f32 %v4615_v55, %v3579_v47 }
0x19f3   :  { %v3588_v59 = vpack.c.bf16 %v3585_v50, %v3584_v58  ;;  %v4563_v50 = vld [vmem:[%s6503_s1 + $0x228] sm:$0xff] }
0x19f4   :  { %3934 = vmatpush.bf16.msrb.mxu0 %v4563_v50 }
0x19f5   :  { %4448 = vmatmul.msk.bf16.gmra.mxu3 %vm122_vm2, %v3588_v59 }
0x1a49   :  { %v3509_v31 = vpop.xlane.xlu2 %3508 }
0x1a4a   :  { %v3514_v36 = vmul.f32 %v3509_v31, %v4965_v44 }
0x1a4c   :  { %v3519_v25 = vadd.f32 1e-05, %v3514_v36 }
0x1a4e   :  { %4831 = vrsqrt.f32 %v3519_v25  ;;  %vm3566_vm8 = vweird.f32 %v3519_v25 }
0x1a54   :  { %v4832_v10 = vpop.eup %4831 }
0x1a55   :  { %v3561_v57 = vmul.f32 %v4832_v10, %v3519_v25  ;;  %vm3567_vm0 = vweird.f32 %v4832_v10 }
0x1a56   :  { %vm3568_vm9 = vmor %vm3566_vm8, %vm3567_vm0 }
0x1a57   :  { %v3562_v41 = vmul.f32 %v4832_v10, %v3561_v57 }
0x1a59   :  { %v3563_v63 = vmul.f32 0.5, %v3562_v41 }
0x1a5b   :  { %v3564_v19 = vsub.f32 1.5, %v3563_v63 }
0x1a5d   :  { %v3565_v32 = vmul.f32 %v4832_v10, %v3564_v19  ;;  %v4562_v19 = vld [vmem:[%s6503_s1 + $0x220] sm:$0xff] }
0x1a5e   :  { %3935 = vmatpush.bf16.msrb.mxu0 %v4562_v19 }
0x1a5f   :  { %v3569_v35 = vsel %vm3568_vm9, %v4832_v10, %v3565_v32 }
0x1a60   :  { %v3574_v30 = vmul.f32 %v3569_v35, %v6334_v8 }
0x1a62   :  { %v3580_v9 = vmul.f32 %v4614_v15, %v3574_v30 }
0x1a64   :  { %v3586_v13 = vadd.f32 %v4615_v55, %v3580_v9 }
0x1a66   :  { %v3589_v7 = vpack.c.bf16 %v3586_v13, %v3586_v13 }
0x1a68   :  { %v3626_v2 = vpop.f32.mrf.mxu3  ;;  %4449 = vmatmul.msk.bf16.gmra.mxu3 %vm122_vm2, %v3589_v7 }
0x1a69   :  { %v6361_v18 = vadd.f32 %v6357_v6, %v3626_v2 }
0x1a6b   :  { %v6364_v17 = vmul.f32 0.70710677, %v6361_v18 }
0x1a6d   :  { %v3650_v8 = vmul.f32 %v6364_v17, %v6364_v17 }
0x1a6f   :  { %v6371_v20 = vmin.f32 %v3650_v8, 16.0 }
0x1a70   :  { %v3628_v3 = vpop.f32.mrf.mxu3 }
0x1a71   :  { %v3652_v42 = vmul.f32 2.1237322e-06, %v6371_v20  ;;  %v3663_v27 = vmul.f32 3.8918573e-05, %v6371_v20  ;;  %v6376_v12 = vadd.f32 %v6357_v6, %v3628_v3  ;;  %v4561_v3 = vld [vmem:[%s6503_s1 + $0x218] sm:$0xff] }
0x1a72   :  { %3936 = vmatpush.bf16.msrb.mxu0 %v4561_v3 }
0x1a73   :  { %v3653_v40 = vadd.f32 0.00028619796, %v3652_v42  ;;  %v3664_v49 = vadd.f32 0.001143296, %v3663_v27  ;;  %v6382_v21 = vmul.f32 0.70710677, %v6376_v12 }
0x1a75   :  { %v3665_v15 = vmul.f32 %v3664_v49, %v6371_v20  ;;  %v3654_v43 = vmul.f32 %v3653_v40, %v6371_v20  ;;  %v3690_v1 = vmul.f32 %v6382_v21, %v6382_v21 }
0x1a77   :  { %v3666_v46 = vadd.f32 0.014752088, %v3665_v15  ;;  %v6391_v14 = vmin.f32 %v3690_v1, 16.0  ;;  %v3655_v38 = vadd.f32 0.0036580483, %v3654_v43 }
0x1a78   :  { %v3631_v53 = vpop.f32.mrf.mxu3 }
0x1a79   :  { %v3667_v55 = vmul.f32 %v3666_v46, %v6371_v20  ;;  %v6395_v29 = vadd.f32 %v6357_v6, %v3631_v53  ;;  %v3692_v54 = vmul.f32 2.1237322e-06, %v6391_v14  ;;  %v3703_v60 = vmul.f32 3.8918573e-05, %v6391_v14 }
0x1a7a   :  { %v3656_v45 = vmul.f32 %v3655_v38, %v6371_v20 }
0x1a7b   :  { %v3668_v61 = vadd.f32 0.112945676, %v3667_v55  ;;  %v3693_v22 = vadd.f32 0.00028619796, %v3692_v54  ;;  %v3704_v4 = vadd.f32 0.001143296, %v3703_v60 }
0x1a7c   :  { %v6403_v56 = vmul.f32 0.70710677, %v6395_v29  ;;  %v3657_v59 = vadd.f32 0.05243302, %v3656_v45 }
0x1a7d   :  { %v3669_v48 = vmul.f32 %v3668_v61, %v6371_v20  ;;  %v3694_v39 = vmul.f32 %v3693_v22, %v6391_v14  ;;  %v3705_v62 = vmul.f32 %v3704_v4, %v6391_v14 }
0x1a7e   :  { %v3730_v11 = vmul.f32 %v6403_v56, %v6403_v56  ;;  %v3658_v32 = vmul.f32 %v3657_v59, %v6371_v20 }
0x1a7f   :  { %v3670_v26 = vadd.f32 0.4994258, %v3669_v48  ;;  %v3695_v23 = vadd.f32 0.0036580483, %v3694_v39  ;;  %v3706_v24 = vadd.f32 0.014752088, %v3705_v62 }
0x1a80   :  { %v6414_v5 = vmin.f32 %v3730_v11, 16.0  ;;  %v3633_v28 = vpop.f32.mrf.mxu3  ;;  %v3659_v42 = vadd.f32 0.18741608, %v3658_v32 }
0x1a81   :  { %v3671_v47 = vmul.f32 %v3670_v26, %v6371_v20  ;;  %v6418_v58 = vadd.f32 %v6357_v6, %v3633_v28  ;;  %v3696_v31 = vmul.f32 %v3695_v23, %v6391_v14  ;;  %v3707_v36 = vmul.f32 %v3706_v24, %v6391_v14 }
0x1a82   :  { %v3732_v25 = vmul.f32 2.1237322e-06, %v6414_v5  ;;  %v3743_v57 = vmul.f32 3.8918573e-05, %v6414_v5  ;;  %v3660_v60 = vmul.f32 %v3659_v42, %v6371_v20 }
0x1a83   :  { %v3672_v10 = vadd.f32 1.0, %v3671_v47  ;;  %v6428_v41 = vmul.f32 0.70710677, %v6418_v58  ;;  %v3708_v63 = vadd.f32 0.112945676, %v3707_v36 }
0x1a84   :  { %v3697_v35 = vadd.f32 0.05243302, %v3696_v31  ;;  %v3733_v9 = vadd.f32 0.00028619796, %v3732_v25  ;;  %v3744_v13 = vadd.f32 0.001143296, %v3743_v57 }
0x1a85   :  { %4833 = vrcp.f32 %v3672_v10  ;;  %v3709_v30 = vmul.f32 %v3708_v63, %v6391_v14  ;;  %v3770_v7 = vmul.f32 %v6428_v41, %v6428_v41  ;;  %v3684_v54 = vand.u32 2147483648, %v3672_v10 }
0x1a86   :  { %v3745_v8 = vmul.f32 %v3744_v13, %v6414_v5  ;;  %v3698_v27 = vmul.f32 %v3697_v35, %v6391_v14  ;;  %v3734_v49 = vmul.f32 %v3733_v9, %v6414_v5  ;;  %v3682_v39 = vand.u32 2147483647, %v3672_v10 }
0x1a87   :  { %v3710_v2 = vadd.f32 0.4994258, %v3709_v30  ;;  %v6438_v34 = vmin.f32 %v3770_v7, 16.0  ;;  %vm3678_vm11 = vweird.f32 %v3672_v10  ;;  %v3661_v23 = vadd.f32 1.1283791, %v3660_v60 }
0x1a88   :  { %v3746_v15 = vadd.f32 0.014752088, %v3745_v8  ;;  %v3699_v61 = vadd.f32 0.18741608, %v3698_v27  ;;  %v3735_v22 = vadd.f32 0.0036580483, %v3734_v49 }
0x1a89   :  { %v3711_v16 = vmul.f32 %v3710_v2, %v6391_v14  ;;  %v3772_v33 = vmul.f32 2.1237322e-06, %v6438_v34  ;;  %v3783_v43 = vmul.f32 3.8918573e-05, %v6438_v34  ;;  %v3685_v59 = vor.u32 1.1754944e-38, %v3684_v54 }
0x1a8a   :  { %v3747_v53 = vmul.f32 %v3746_v15, %v6414_v5  ;;  %v3700_v24 = vmul.f32 %v3699_v61, %v6391_v14  ;;  %v3736_v20 = vmul.f32 %v3735_v22, %v6414_v5  ;;  %vm3683_vm5 = vcmp.eq.f32.partialorder %v3682_v39, 8.507059e+37 }
0x1a8b   :  { %v4834_v40 = vpop.eup %4833  ;;  %v3712_v46 = vadd.f32 1.0, %v3711_v16  ;;  %v3773_v55 = vadd.f32 0.00028619796, %v3772_v33  ;;  %v3784_v51 = vadd.f32 0.001143296, %v3783_v43  ;;  %v3662_v19 = vmul.f32 %v3661_v23, %v6364_v17 }
0x1a8c   :  { %v3674_v1 = vmul.f32 %v4834_v40, %v3672_v10  ;;  %v3748_v4 = vadd.f32 0.112945676, %v3747_v53  ;;  %vm3679_vm10 = vweird.f32 %v4834_v40  ;;  %v3701_v32 = vadd.f32 1.1283791, %v3700_v24 }
0x1a8d   :  { %4835 = vrcp.f32 %v3712_v46  ;;  %v3774_v0 = vmul.f32 %v3773_v55, %v6438_v34  ;;  %v3785_v45 = vmul.f32 %v3784_v51, %v6438_v34  ;;  %vm3680_vm3 = vmor %vm3678_vm11, %vm3679_vm10  ;;  %v3737_v14 = vadd.f32 0.05243302, %v3736_v20 }
0x1a8e   :  { %v3675_v38 = vsub.f32 1.0, %v3674_v1  ;;  %v3749_v62 = vmul.f32 %v3748_v4, %v6414_v5  ;;  %v3724_v30 = vand.u32 2147483648, %v3712_v46  ;;  %v3722_v3 = vand.u32 2147483647, %v3712_v46 }
0x1a8f   :  { %v3786_v26 = vadd.f32 0.014752088, %v3785_v45  ;;  %v3775_v31 = vadd.f32 0.0036580483, %v3774_v0  ;;  %vm3718_vm7 = vweird.f32 %v3712_v46  ;;  %v3738_v27 = vmul.f32 %v3737_v14, %v6414_v5 }
0x1a90   :  { %v3676_v48 = vmul.f32 %v4834_v40, %v3675_v38  ;;  %v3750_v28 = vadd.f32 0.4994258, %v3749_v62  ;;  %v3702_v17 = vmul.f32 %v3701_v32, %v6382_v21  ;;  %vm3723_vm13 = vcmp.eq.f32.partialorder %v3722_v3, 8.507059e+37 }
0x1a91   :  { %v3787_v36 = vmul.f32 %v3786_v26, %v6438_v34  ;;  %v3776_v13 = vmul.f32 %v3775_v31, %v6438_v34  ;;  %v3739_v55 = vadd.f32 0.18741608, %v3738_v27  ;;  %v3640_v21 = vmul.f32 0.5, %v6361_v18 }
0x1a92   :  { %v3677_v11 = vadd.f32 %v4834_v40, %v3676_v48  ;;  %v3751_v63 = vmul.f32 %v3750_v28, %v6414_v5  ;;  %v3641_v22 = vmul.f32 0.5, %v6376_v12 }
0x1a93   :  { %v4836_v47 = vpop.eup %4835  ;;  %v3788_v10 = vadd.f32 0.112945676, %v3787_v36  ;;  %v3777_v49 = vadd.f32 0.05243302, %v3776_v13  ;;  %v3740_v48 = vmul.f32 %v3739_v55, %v6414_v5 }
0x1a94   :  { %v3681_v50 = vsel %vm3680_vm3, %v4834_v40, %v3677_v11  ;;  %v3714_v25 = vmul.f32 %v4836_v47, %v3712_v46  ;;  %v3752_v9 = vadd.f32 1.0, %v3751_v63  ;;  %vm3719_vm6 = vweird.f32 %v4836_v47 }
0x1a95   :  { %v3686_v57 = vsel %vm3683_vm5, %v3685_v59, %v3681_v50  ;;  %v3789_v7 = vmul.f32 %v3788_v10, %v6438_v34  ;;  %vm3720_vm12 = vmor %vm3718_vm7, %vm3719_vm6  ;;  %v3725_v40 = vor.u32 1.1754944e-38, %v3724_v30  ;;  %v3778_v46 = vmul.f32 %v3777_v49, %v6438_v34 }
0x1a96   :  { %v3715_v35 = vsub.f32 1.0, %v3714_v25  ;;  %v3687_v2 = vmul.f32 %v3686_v57, %v3662_v19  ;;  %4837 = vrcp.f32 %v3752_v9  ;;  %v3762_v45 = vand.u32 2147483647, %v3752_v9 }
0x1a97   :  { %v3790_v16 = vadd.f32 0.4994258, %v3789_v7  ;;  %v3764_v39 = vand.u32 2147483648, %v3752_v9  ;;  %v3779_v62 = vadd.f32 0.18741608, %v3778_v46  ;;  %vm3758_vm15 = vweird.f32 %v3752_v9 }
0x1a98   :  { %v3716_v8 = vmul.f32 %v4836_v47, %v3715_v35  ;;  %v4450_v15 = vclamps-f32 %v3687_v2, 1.0  ;;  %v3741_v20 = vadd.f32 1.1283791, %v3740_v48  ;;  %vm3763_vm8 = vcmp.eq.f32.partialorder %v3762_v45, 8.507059e+37 }
0x1a99   :  { %v3791_v43 = vmul.f32 %v3790_v16, %v6438_v34  ;;  %v3765_v18 = vor.u32 1.1754944e-38, %v3764_v39  ;;  %v3780_v12 = vmul.f32 %v3779_v62, %v6438_v34  ;;  %v3642_v2 = vmul.f32 0.5, %v6395_v29 }
0x1a9a   :  { %v3717_v42 = vadd.f32 %v4836_v47, %v3716_v8  ;;  %v3850_v54 = vadd.f32 1.0, %v4450_v15  ;;  %v3742_v31 = vmul.f32 %v3741_v20, %v6403_v56  ;;  %v3643_v8 = vmul.f32 0.5, %v6418_v58 }
0x1a9b   :  { %v3792_v51 = vadd.f32 1.0, %v3791_v43  ;;  %v3781_v25 = vadd.f32 1.1283791, %v3780_v12 }
0x1a9c   :  { %v3721_v33 = vsel %vm3720_vm12, %v4836_v47, %v3717_v42  ;;  %v4838_v38 = vpop.eup %4837  ;;  %v3855_v11 = vmul.f32 %v3850_v54, %v3640_v21 }
0x1a9d   :  { %v3726_v1 = vsel %vm3723_vm13, %v3725_v40, %v3721_v33  ;;  %v3754_v61 = vmul.f32 %v4838_v38, %v3752_v9  ;;  %4839 = vrcp.f32 %v3792_v51  ;;  %vm3759_vm14 = vweird.f32 %v4838_v38 }
0x1a9e   :  { %v3727_v53 = vmul.f32 %v3726_v1, %v3702_v17  ;;  %vm3760_vm0 = vmor %vm3758_vm15, %vm3759_vm14  ;;  %v3804_v57 = vand.u32 2147483648, %v3792_v51  ;;  %v3802_v19 = vand.u32 2147483647, %v3792_v51  ;;  %vm3798_vm10 = vweird.f32 %v3792_v51 }
0x1a9f   :  { %v3755_v0 = vsub.f32 1.0, %v3754_v61  ;;  %v3782_v34 = vmul.f32 %v3781_v25, %v6428_v41  ;;  %vm4015_vm14 = vcmask 74752  }
0x1aa0   :  { %v4451_v60 = vclamps-f32 %v3727_v53, 1.0  ;;  %v3805_v35 = vor.u32 1.1754944e-38, %v3804_v57  ;;  %vm3803_vm3 = vcmp.eq.f32.partialorder %v3802_v19, 8.507059e+37  ;;  %v4617_v19 = vld [vmem:[%s6504_s2 + $0x6f] ss:$0 sm:$0xff] }
0x1aa1   :  { %v3756_v23 = vmul.f32 %v4838_v38, %v3755_v0 }
0x1aa2   :  { %v3851_v4 = vadd.f32 1.0, %v4451_v60 }
0x1aa3   :  { %v3757_v28 = vadd.f32 %v4838_v38, %v3756_v23  ;;  %v4840_v47 = vpop.eup %4839 }
0x1aa4   :  { %v3856_v26 = vmul.f32 %v3851_v4, %v3641_v22  ;;  %v3794_v5 = vmul.f32 %v4840_v47, %v3792_v51  ;;  %vm3799_vm9 = vweird.f32 %v4840_v47 }
0x1aa5   :  { %v3761_v50 = vsel %vm3760_vm0, %v4838_v38, %v3757_v28  ;;  %vm3800_vm11 = vmor %vm3798_vm10, %vm3799_vm9 }
0x1aa6   :  { %v3860_v24 = vpack.c.bf16 %v3856_v26, %v3855_v11  ;;  %v3766_v59 = vsel %vm3763_vm8, %v3765_v18, %v3761_v50  ;;  %v3795_v36 = vsub.f32 1.0, %v3794_v5 }
0x1aa7   :  { %v3767_v63 = vmul.f32 %v3766_v59, %v3742_v31 }
0x1aa8   :  { %3937 = vmatmul.bf16.vlgmr.msrb.gmra.mxu0 %v3860_v24  ;;  %v3796_v10 = vmul.f32 %v4840_v47, %v3795_v36 }
0x1aa9   :  { %v4452_v14 = vclamps-f32 %v3767_v63, 1.0 }
0x1aaa   :  { %v3797_v32 = vadd.f32 %v4840_v47, %v3796_v10 }
0x1aab   :  { %v3852_v7 = vadd.f32 1.0, %v4452_v14 }
0x1aac   :  { %v3801_v30 = vsel %vm3800_vm11, %v4840_v47, %v3797_v32 }
0x1aad   :  { %v3806_v9 = vsel %vm3803_vm3, %v3805_v35, %v3801_v30  ;;  %v3857_v42 = vmul.f32 %v3852_v7, %v3642_v2 }
0x1aae   :  { %v3807_v13 = vmul.f32 %v3806_v9, %v3782_v34 }
0x1ab0   :  { %v4453_v56 = vclamps-f32 %v3807_v13, 1.0 }
0x1ab2   :  { %v3853_v3 = vadd.f32 1.0, %v4453_v56 }
0x1ab4   :  { %v3858_v27 = vmul.f32 %v3853_v3, %v3643_v8 }
0x1ab6   :  { %v3861_v16 = vpack.c.bf16 %v3858_v27, %v3857_v42 }
0x1ab8   :  { %3941 = vmatmul.bf16.gmra.mxu0 %v3861_v16 }
0x1aeb   :  { %v3636_v17 = vpop.f32.mrf.mxu3 }
0x1aec   :  { %v3637_v40 = vadd.f32 %v6357_v6, %v3636_v17 }
0x1aee   :  { %v3649_v49 = vmul.f32 0.70710677, %v3637_v40  ;;  %v3644_v31 = vmul.f32 0.5, %v3637_v40 }
0x1af0   :  { %v3810_v41 = vmul.f32 %v3649_v49, %v3649_v49 }
0x1af2   :  { %v3811_v15 = vmin.f32 %v3810_v41, 16.0 }
0x1af3   :  { %v3638_v33 = vpop.f32.mrf.mxu3 }
0x1af4   :  { %v3812_v43 = vmul.f32 2.1237322e-06, %v3811_v15  ;;  %v3823_v1 = vmul.f32 3.8918573e-05, %v3811_v15 }
0x1af6   :  { %v3813_v53 = vadd.f32 0.00028619796, %v3812_v43  ;;  %v3824_v55 = vadd.f32 0.001143296, %v3823_v1 }
0x1af8   :  { %v3814_v51 = vmul.f32 %v3813_v53, %v3811_v15  ;;  %v3825_v29 = vmul.f32 %v3824_v55, %v3811_v15  ;;  %v4618_v55 = vld [vmem:[%s6504_s2 + $0x70] ss:$0 sm:$0xff] }
0x1afa   :  { %v3826_v38 = vadd.f32 0.014752088, %v3825_v29  ;;  %v3815_v58 = vadd.f32 0.0036580483, %v3814_v51 }
0x1afc   :  { %v3827_v46 = vmul.f32 %v3826_v38, %v3811_v15  ;;  %v3816_v60 = vmul.f32 %v3815_v58, %v3811_v15 }
0x1afe   :  { %v3828_v54 = vadd.f32 0.112945676, %v3827_v46  ;;  %v3817_v22 = vadd.f32 0.05243302, %v3816_v60 }
0x1b00   :  { %v3829_v61 = vmul.f32 %v3828_v54, %v3811_v15  ;;  %v3818_v48 = vmul.f32 %v3817_v22, %v3811_v15  ;;  %v4620_v54 = vld [vmem:[%s6504_s2 + $0x72] ss:$0 sm:$0xff] }
0x1b02   :  { %v3830_v21 = vadd.f32 0.4994258, %v3829_v61  ;;  %v3819_v0 = vadd.f32 0.18741608, %v3818_v48 }
0x1b04   :  { %v3831_v4 = vmul.f32 %v3830_v21, %v3811_v15  ;;  %v3820_v39 = vmul.f32 %v3819_v0, %v3811_v15 }
0x1b06   :  { %v3832_v6 = vadd.f32 1.0, %v3831_v4  ;;  %v3821_v23 = vadd.f32 1.1283791, %v3820_v39 }
0x1b08   :  { %4841 = vrcp.f32 %v3832_v6  ;;  %v3844_v26 = vand.u32 2147483648, %v3832_v6  ;;  %v3842_v20 = vand.u32 2147483647, %v3832_v6  ;;  %vm3838_vm6 = vweird.f32 %v3832_v6 }
0x1b09   :  { %v3822_v18 = vmul.f32 %v3821_v23, %v3649_v49 }
0x1b0a   :  { %v3845_v47 = vor.u32 1.1754944e-38, %v3844_v26  ;;  %vm3843_vm12 = vcmp.eq.f32.partialorder %v3842_v20, 8.507059e+37 }
0x1b0e   :  { %v4842_v45 = vpop.eup %4841 }
0x1b0f   :  { %v3834_v62 = vmul.f32 %v4842_v45, %v3832_v6  ;;  %vm3839_vm5 = vweird.f32 %v4842_v45 }
0x1b10   :  { %vm3840_vm7 = vmor %vm3838_vm6, %vm3839_vm5 }
0x1b11   :  { %v3835_v11 = vsub.f32 1.0, %v3834_v62 }
0x1b13   :  { %v3836_v24 = vmul.f32 %v4842_v45, %v3835_v11 }
0x1b15   :  { %v3837_v28 = vadd.f32 %v4842_v45, %v3836_v24 }
0x1b17   :  { %v3841_v12 = vsel %vm3840_vm7, %v4842_v45, %v3837_v28 }
0x1b18   :  { %v3846_v50 = vsel %vm3843_vm12, %v3845_v47, %v3841_v12 }
0x1b19   :  { %v3847_v5 = vmul.f32 %v3846_v50, %v3822_v18 }
0x1b1b   :  { %v4454_v59 = vclamps-f32 %v3847_v5, 1.0 }
0x1b1d   :  { %v3854_v36 = vadd.f32 1.0, %v4454_v59 }
0x1b1f   :  { %v3859_v25 = vmul.f32 %v3854_v36, %v3644_v31 }
0x1b21   :  { %v3862_v57 = vpack.c.bf16 %v3859_v25, %v3859_v25 }
0x1b23   :  { %3945 = vmatmul.bf16.gmra.mxu0 %v3862_v57 }
0x1b25   :  { %v3938_v63 = vpop.f32.mrf.mxu0 }
0x1b26   :  { %v3939_v32 = vadd.f32 %v4617_v19, %v3938_v63 }
0x1b28   :  { %v3949_v34 = vadd.f32 %v3939_v32, %v6279_v37  ;;  %v4570_v37 = vld [vmem:[%s6503_s1 + $0x260] sm:$0xff] }
0x1b29   :  { %4008 = vmatpush.bf16.msrb.mxu1 %v4570_v37 }
0x1b2d   :  { %v3940_v10 = vpop.f32.mrf.mxu0 }
0x1b35   :  { %v3942_v35 = vpop.f32.mrf.mxu0 }
0x1b36   :  { %v3943_v14 = vadd.f32 %v4617_v19, %v3942_v35 }
0x1b38   :  { %v3950_v30 = vadd.f32 %v3943_v14, %v6288_v52  ;;  %v4569_v52 = vld [vmem:[%s6503_s1 + $0x258] sm:$0xff] }
0x1b39   :  { %4009 = vmatpush.bf16.msrb.mxu1 %v4569_v52 }
0x1b3a   :  { %v3951_v9 = vsel %vm93_vm1, %v3949_v34, %v3950_v30 }
0x1b3b   :  { %v3954_v13 = vsel %vm135_vm4, %v3951_v9, 0.0 }
0x1b3c   :  { %3955 = vadd.xlane.f32.xlu0 %v3954_v13 }
0x1b3d   :  { %v3944_v7 = vpop.f32.mrf.mxu0 }
0x1ba0   :  { %v3946_v56 = vpop.f32.mrf.mxu0 }
0x1ba8   :  { %v3947_v2 = vpop.f32.mrf.mxu0 }
0x1baf   :  { %v3956_v8 = vpop.xlane.xlu0 %3955 }
0x1bb0   :  { %v3957_v3 = vmul.f32 %v3956_v8, %v4965_v44 }
0x1bb2   :  { %v3958_v42 = vsub.f32 %v3951_v9, %v3957_v3 }
0x1bb4   :  { %v3959_v27 = vmul.f32 %v3958_v42, %v3958_v42 }
0x1bb6   :  { %v3960_v16 = vsel %vm135_vm4, %v3959_v27, 0.0 }
0x1bb7   :  { %3961 = vadd.xlane.f32.xlu1 %v3960_v16 }
0x1c2a   :  { %v3962_v17 = vpop.xlane.xlu1 %3961 }
0x1c2b   :  { %v3963_v40 = vmul.f32 %v3962_v17, %v4965_v44  ;;  %v4619_v44 = vld [vmem:[%s6504_s2 + $0x71] ss:$0 sm:$0xff] }
0x1c2d   :  { %v3964_v49 = vadd.f32 1e-05, %v3963_v40 }
0x1c2f   :  { %4843 = vrsqrt.f32 %v3964_v49  ;;  %vm3971_vm4 = vweird.f32 %v3964_v49 }
0x1c35   :  { %v4844_v41 = vpop.eup %4843 }
0x1c36   :  { %v3966_v15 = vmul.f32 %v4844_v41, %v3964_v49  ;;  %vm3972_vm1 = vweird.f32 %v4844_v41 }
0x1c37   :  { %vm3973_vm13 = vmor %vm3971_vm4, %vm3972_vm1 }
0x1c38   :  { %v3967_v33 = vmul.f32 %v4844_v41, %v3966_v15 }
0x1c3a   :  { %v3968_v43 = vmul.f32 0.5, %v3967_v33 }
0x1c3c   :  { %v3969_v1 = vsub.f32 1.5, %v3968_v43 }
0x1c3e   :  { %v3970_v53 = vmul.f32 %v4844_v41, %v3969_v1 }
0x1c40   :  { %v3974_v51 = vsel %vm3973_vm13, %v4844_v41, %v3970_v53 }
0x1c41   :  { %v3975_v29 = vmul.f32 %v3974_v51, %v3958_v42 }
0x1c43   :  { %v3977_v38 = vmul.f32 %v4618_v55, %v3975_v29 }
0x1c45   :  { %v3979_v58 = vadd.f32 %v4619_v44, %v3977_v38 }
0x1c47   :  { %v3980_v46 = vpack.c.bf16 %v3979_v58, %v3979_v58 }
0x1c49   :  { %4495 = vmatmul.msk.bf16.vlgmr.msrb.gmra.mxu1 %vm122_vm2, %v3980_v46 }
0x1cc6   :  { %v4011_v60 = vpop.f32.mrf.mxu1 }
0x1cc7   :  { %v4012_v61 = vadd.f32 %v4620_v54, %v4011_v60 }
0x1cc9   :  { %4016 = vst.msk [vmem:[#allocation2] sm:$0x3] %vm4015_vm14, %v4012_v61 }
0x1cca   :  { %4027 = dma.vmem_to_hbm [thread:$0]  %s4023_s4, 32, %s4025_s7, [#allocation3]  }
0x1cce   :  { %v4013_v21 = vpop.f32.mrf.mxu1 }
0x1ccf   :  { %4884 = dma.done.wait [#allocation3], 32  }
0x1cd0   :  { %4885 = vsyncadd [#allocation3], 4294967264 }
0x1cd1   :  { %4032 = vsyncpa [#allocation3], 1 }

</bundles_post_ra>
